<compile_context>
chip_gen: v5e
topology: v5e:2x2
jax: 0.10.0
libtpu: 0.0.40
codegen_flags: <defaults>
</compile_context>

<pallas_src>
import functools

import jax
import jax.numpy as jnp
import numpy as np
from jax.experimental import pallas as pl
from jax.experimental.pallas import tpu as pltpu

EPS = 1e-5  # BatchNorm2d default eps


# ----------------------------------------------------------------- fused kernel --

def _cell_kernel(
    # scalar-prefetch refs (SMEM)
    src_ref, dst_ref,
    # inputs
    s0_ref, s1_ref, pre0_ref, pre1_ref, aw_ref,
    dw_a_ref, pw_a_ref, dw_b_ref, pw_b_ref,
    # output
    out_ref,
    # scratch
    states_ref,
    *, N, H, W, C, steps, multiplier):
  """One grid point == one MixedOp edge.  Node states live in VMEM scratch."""
  M = N * H * W
  e = pl.program_id(0)
  num_e = pl.num_programs(0)

  # ---- lane coordinate maps (hoisted; every border mask derives from these) ----
  lane = jax.lax.broadcasted_iota(jnp.int32, (1, M), 1)   # i = n*H*W + h*W + w
  if (W & (W - 1)) == 0 and (H & (H - 1)) == 0:           # power-of-two fast path
    wpos = jnp.bitwise_and(lane, W - 1)
    hpos = jnp.bitwise_and(jnp.right_shift(lane, W.bit_length() - 1), H - 1)
  else:
    wpos = lane % W
    hpos = (lane // W) % H

  mask_cache = {}

  def valid_mask(dh, dw):
    """Lanes whose source pixel (h+dh, w+dw) lies inside the image."""
    key = (dh, dw)
    if key not in mask_cache:
      mask_cache[key] = ((hpos + dh >= 0) & (hpos + dh < H) &
                         (wpos + dw >= 0) & (wpos + dw < W))
    return mask_cache[key]

  def shift(x, dh, dw):
    """y[:, i] = x[:, i + dh*W + dw] (wrapped values are masked by caller)."""
    d = dh * W + dw
    if d == 0:
      return x
    return pltpu.roll(x, (-d) % M, axis=1)      # lane rotation on the XLU

  def masked(x, dh, dw):
    return jnp.where(valid_mask(dh, dw), shift(x, dh, dw), 0.0)

  def conv_offsets(K, dil):
    pad = ((K - 1) // 2) * dil                  # DARTS paddings: 1, 2, 2, 4
    return [(kh * dil - pad, kw * dil - pad) for kh in range(K) for kw in range(K)]

  def bn(x):
    """BatchNorm2d(affine=False), training: per-row (=per-channel) stats over M lanes.
    Two-pass variance to avoid E[x^2]-mean^2 cancellation."""
    m = x.shape[-1]
    mean = jnp.sum(x, axis=-1, keepdims=True) * (1.0 / m)
    xc = x - mean
    var = jnp.sum(xc * xc, axis=-1, keepdims=True) * (1.0 / m)
    return xc * jax.lax.rsqrt(var + EPS)

  def dwconv(x, taps, base, K, dil, shifted=None):
    """Depthwise KxK conv, stride 1, dilation `dil`, zero padding ((K-1)//2)*dil.
    taps: (C, T) per-channel coefficients; columns [base, base+K*K) in (kh, kw) order."""
    acc = jnp.zeros((C, M), jnp.float32)
    t = base
    for kh in range(K):
      dh = kh * dil - ((K - 1) // 2) * dil
      for kw in range(K):
        dw = kw * dil - ((K - 1) // 2) * dil
        v = shifted[(dh, dw)] if shifted is not None else masked(x, dh, dw)
        acc = acc + v * taps[:, t:t + 1]
        t += 1
    return acc

  # ---- first grid point: preprocess0/1 (ReLU->1x1 conv->BN) and zero the nodes ----
  @pl.when(e == 0)
  def _():
    x0 = jnp.maximum(s0_ref[...], 0.0)
    states_ref[0] = bn(jnp.dot(pre0_ref[...], x0, preferred_element_type=jnp.float32))
    x1 = jnp.maximum(s1_ref[...], 0.0)
    states_ref[1] = bn(jnp.dot(pre1_ref[...], x1, preferred_element_type=jnp.float32))
    for i in range(steps):
      states_ref[2 + i] = jnp.zeros((C, M), jnp.float32)

  # ---- this edge: all 7 non-'none' primitives on its source state -----------------
  src = src_ref[e]
  dst = dst_ref[e]
  h = states_ref[src]                                              # (C, M)

  # pools (+ BN, as in MixedOp)
  neg_inf = jnp.float32(-jnp.inf)
  mx = jnp.full((C, M), neg_inf, jnp.float32)
  av = jnp.zeros((C, M), jnp.float32)
  cnt = jnp.zeros((1, M), jnp.float32)
  for (dh, dw) in conv_offsets(3, 1):
    msk = valid_mask(dh, dw)
    sh = shift(h, dh, dw)
    mx = jnp.maximum(mx, jnp.where(msk, sh, neg_inf))              # -inf padding
    av = av + jnp.where(msk, sh, 0.0)
    cnt = cnt + msk.astype(jnp.float32)                            # count_include_pad=False
  maxpool_out = bn(mx)
  avgpool_out = bn(av / cnt)

  # stage 1: ReLU -> {sep3.dw1, sep5.dw1, dil3.dw, dil5.dw} -> block-diag 1x1 -> BN
  u = jnp.maximum(h, 0.0)
  offs1 = []
  for (K, dil) in ((3, 1), (5, 1), (3, 2), (5, 2)):
    offs1 += conv_offsets(K, dil)
  u_sh = {off: masked(u, *off) for off in dict.fromkeys(offs1)}    # shared shifted taps
  dwa = dw_a_ref[0]                                                # (C, 68)
  d_sep3 = dwconv(u, dwa, 0, 3, 1, u_sh)
  d_sep5 = dwconv(u, dwa, 9, 5, 1, u_sh)
  d_dil3 = dwconv(u, dwa, 34, 3, 2, u_sh)
  d_dil5 = dwconv(u, dwa, 43, 5, 2, u_sh)
  stack1 = jnp.concatenate([d_sep3, d_sep5, d_dil3, d_dil5], axis=0)   # (4C, M)
  y1 = bn(jnp.dot(pw_a_ref[0], stack1, preferred_element_type=jnp.float32))
  dil3_out = y1[2 * C:3 * C]
  dil5_out = y1[3 * C:4 * C]

  # stage 2 (sep convs only): ReLU -> dw2 -> block-diag 1x1 -> BN
  u2 = jnp.maximum(y1[0:2 * C], 0.0)
  dwb = dw_b_ref[0]                                                # (C, 34)
  z_sep3 = dwconv(u2[0:C], dwb, 0, 3, 1)
  z_sep5 = dwconv(u2[C:2 * C], dwb, 9, 5, 1)
  stack2 = jnp.concatenate([z_sep3, z_sep5], axis=0)               # (2C, M)
  y2 = bn(jnp.dot(pw_b_ref[0], stack2, preferred_element_type=jnp.float32))
  sep3_out = y2[0:C]
  sep5_out = y2[C:2 * C]

  # architecture-weighted accumulation into the destination node ('none' == exact 0)
  contrib = (aw_ref[e, 1] * maxpool_out +
             aw_ref[e, 2] * avgpool_out +
             aw_ref[e, 3] * h +                                    # skip_connect
             aw_ref[e, 4] * sep3_out +
             aw_ref[e, 5] * sep5_out +
             aw_ref[e, 6] * dil3_out +
             aw_ref[e, 7] * dil5_out)
  states_ref[dst] = states_ref[dst] + contrib

  # ---- last grid point: concat the last `multiplier` nodes into the output --------
  @pl.when(e == num_e - 1)
  def _():
    first = 2 + steps - multiplier
    for i in range(multiplier):
      out_ref[i * C:(i + 1) * C, :] = states_ref[first + i]


# ---------------------------------------------------------------- param packing --

def _pack_edge_params(edges, C):
  """Pack per-edge weights into stacked, kernel-friendly arrays.

  dw_a: (E, C, 68)  depthwise taps [sep3.dw1 | sep5.dw1 | dil3.dw | dil5.dw]
  pw_a: (E, 4C, 4C) block-diag of the 4 first-stage 1x1 convs
  dw_b: (E, C, 34)  depthwise taps [sep3.dw2 | sep5.dw2]
  pw_b: (E, 2C, 2C) block-diag of the 2 second-stage 1x1 convs
  """
  dw_a, pw_a, dw_b, pw_b = [], [], [], []
  for p in edges:
    dw_a.append(jnp.concatenate([
        p['sep3']['dw1'].reshape(C, 9), p['sep5']['dw1'].reshape(C, 25),
        p['dil3']['dw'].reshape(C, 9), p['dil5']['dw'].reshape(C, 25)], axis=1))
    pw_a.append(jax.scipy.linalg.block_diag(
        p['sep3']['pw1'], p['sep5']['pw1'], p['dil3']['pw'], p['dil5']['pw']))
    dw_b.append(jnp.concatenate([
        p['sep3']['dw2'].reshape(C, 9), p['sep5']['dw2'].reshape(C, 25)], axis=1))
    pw_b.append(jax.scipy.linalg.block_diag(p['sep3']['pw2'], p['sep5']['pw2']))
  return dict(dw_a=jnp.stack(dw_a), pw_a=jnp.stack(pw_a),
              dw_b=jnp.stack(dw_b), pw_b=jnp.stack(pw_b))


# --------------------------------------------------------------- Cell forward --

def cell_forward(s0_nchw, s1_nchw, arch_weights, params, steps=4, multiplier=4):
  N, C_pp, H, W = s0_nchw.shape
  _, C_prev, _, _ = s1_nchw.shape
  C = params['pre0'].shape[0]
  M = N * H * W
  E = arch_weights.shape[0]

  # NCHW -> lane-dense (C, N*H*W): lane index i = n*H*W + h*W + w
  s0 = jnp.transpose(s0_nchw, (1, 0, 2, 3)).reshape(C_pp, M).astype(jnp.float32)
  s1 = jnp.transpose(s1_nchw, (1, 0, 2, 3)).reshape(C_prev, M).astype(jnp.float32)

  # static edge wiring: edge (step i, input j) reads node j, writes node 2+i
  src, dst = [], []
  for i in range(steps):
    for j in range(i + 2):
      src.append(j)
      dst.append(2 + i)
  src = jnp.asarray(src, jnp.int32)
  dst = jnp.asarray(dst, jnp.int32)

  packed = _pack_edge_params(params['edges'], C)
  TA = 9 + 25 + 9 + 25
  TB = 9 + 25

  kernel = functools.partial(_cell_kernel, N=N, H=H, W=W, C=C,
                             steps=steps, multiplier=multiplier)
  out_cm = pl.pallas_call(
      kernel,
      out_shape=jax.ShapeDtypeStruct((multiplier * C, M), jnp.float32),
      grid_spec=pltpu.PrefetchScalarGridSpec(
          num_scalar_prefetch=2,                       # src, dst node indices -> SMEM
          grid=(E,),
          in_specs=[
              pl.BlockSpec((C_pp, M), lambda e, *_: (0, 0)),      # s0 (VMEM resident)
              pl.BlockSpec((C_prev, M), lambda e, *_: (0, 0)),    # s1
              pl.BlockSpec((C, C_pp), lambda e, *_: (0, 0)),      # preprocess0 weight
              pl.BlockSpec((C, C_prev), lambda e, *_: (0, 0)),    # preprocess1 weight
              pl.BlockSpec(memory_space=pltpu.MemorySpace.SMEM),  # arch weights (E, 8)
              pl.BlockSpec((1, C, TA), lambda e, *_: (e, 0, 0)),  # per-edge dw taps (stage 1)
              pl.BlockSpec((1, 4 * C, 4 * C), lambda e, *_: (e, 0, 0)),  # block-diag pw (stage 1)
              pl.BlockSpec((1, C, TB), lambda e, *_: (e, 0, 0)),  # per-edge dw taps (stage 2)
              pl.BlockSpec((1, 2 * C, 2 * C), lambda e, *_: (e, 0, 0)),  # block-diag pw (stage 2)
          ],
          out_specs=pl.BlockSpec((multiplier * C, M), lambda e, *_: (0, 0)),
          scratch_shapes=[pltpu.VMEM((2 + steps, C, M), jnp.float32)],  # node states
      ),
      compiler_params=pltpu.CompilerParams(
          # sequential node dependencies -> the edge axis cannot be 'parallel'
          dimension_semantics=("arbitrary",)),
  )(src, dst, s0, s1, params['pre0'], params['pre1'],
    arch_weights.astype(jnp.float32),
    packed['dw_a'], packed['pw_a'], packed['dw_b'], packed['pw_b'])

  # (4C, N*H*W) -> NCHW
  return out_cm.reshape(multiplier * C, N, H, W).transpose(1, 0, 2, 3)


# -------------------------------------------------------- pure-JAX reference --

def _ref_cell_forward(s0_nchw, s1_nchw, arch_weights, params, steps, multiplier):
  hi = jax.lax.Precision.HIGHEST

  def bn(x):
    mean = jnp.mean(x, axis=(0, 1, 2), keepdims=True)
    var = jnp.mean((x - mean) ** 2, axis=(0, 1, 2), keepdims=True)
    return (x - mean) * jax.lax.rsqrt(var + EPS)

  def conv1x1(x, w):
    return jnp.einsum('nhwc,oc->nhwo', x, w, precision=hi)

  def dwconv(x, w, dil):
    N, H, W, C = x.shape
    K = w.shape[-1]
    pad = ((K - 1) // 2) * dil
    xp = jnp.pad(x, ((0, 0), (pad, pad), (pad, pad), (0, 0)))
    acc = jnp.zeros_like(x)
    for kh in range(K):
      for kw in range(K):
        acc = acc + xp[:, kh * dil:kh * dil + H, kw * dil:kw * dil + W, :] * w[:, kh, kw]
    return acc

  def maxpool(x):
    N, H, W, C = x.shape
    xp = jnp.pad(x, ((0, 0), (1, 1), (1, 1), (0, 0)), constant_values=-jnp.inf)
    acc = jnp.full_like(x, -jnp.inf)
    for kh in range(3):
      for kw in range(3):
        acc = jnp.maximum(acc, xp[:, kh:kh + H, kw:kw + W, :])
    return acc

  def avgpool(x):
    N, H, W, C = x.shape
    xp = jnp.pad(x, ((0, 0), (1, 1), (1, 1), (0, 0)))
    ones = jnp.pad(jnp.ones((1, H, W, 1), x.dtype), ((0, 0), (1, 1), (1, 1), (0, 0)))
    acc = jnp.zeros_like(x)
    cnt = jnp.zeros((1, H, W, 1), x.dtype)
    for kh in range(3):
      for kw in range(3):
        acc = acc + xp[:, kh:kh + H, kw:kw + W, :]
        cnt = cnt + ones[:, kh:kh + H, kw:kw + W, :]
    return acc / cnt

  def sep_conv(x, p):
    y = bn(conv1x1(dwconv(jax.nn.relu(x), p['dw1'], 1), p['pw1']))
    y = bn(conv1x1(dwconv(jax.nn.relu(y), p['dw2'], 1), p['pw2']))
    return y

  def dil_conv(x, p):
    return bn(conv1x1(dwconv(jax.nn.relu(x), p['dw'], 2), p['pw']))

  def mixed(x, p, w):
    outs = [bn(maxpool(x)), bn(avgpool(x)), x,
            sep_conv(x, p['sep3']), sep_conv(x, p['sep5']),
            dil_conv(x, p['dil3']), dil_conv(x, p['dil5'])]     # 'none' == 0, skipped
    return sum(w[k + 1] * o for k, o in enumerate(outs))

  s0 = jnp.transpose(s0_nchw, (0, 2, 3, 1)).astype(jnp.float32)
  s1 = jnp.transpose(s1_nchw, (0, 2, 3, 1)).astype(jnp.float32)
  s0 = bn(conv1x1(jax.nn.relu(s0), params['pre0']))
  s1 = bn(conv1x1(jax.nn.relu(s1), params['pre1']))
  states = [s0, s1]
  offset = 0
  for _ in range(steps):
    s = sum(mixed(h, params['edges'][offset + j], arch_weights[offset + j])
            for j, h in enumerate(states))
    offset += len(states)
    states.append(s)
  out = jnp.concatenate(states[-multiplier:], axis=-1)
  return jnp.transpose(out, (0, 3, 1, 2))


# --------------------------------------------------------------------- params --

def _rand(key, shape):
  return 0.1 * jax.random.normal(key, shape, jnp.float32)


def init_params(key, c_pp, c_prev, c, num_edges):
  k0, k1, k2 = jax.random.split(key, 3)
  params = {'pre0': _rand(k0, (c, c_pp)),       # (C_out, C_in) 1x1-conv weights
            'pre1': _rand(k1, (c, c_prev)),
            'edges': []}
  for ek in jax.random.split(k2, num_edges):
    sk = jax.random.split(ek, 12)
    params['edges'].append({
        'sep3': {'dw1': _rand(sk[0], (c, 3, 3)), 'pw1': _rand(sk[1], (c, c)),
                 'dw2': _rand(sk[2], (c, 3, 3)), 'pw2': _rand(sk[3], (c, c))},
        'sep5': {'dw1': _rand(sk[4], (c, 5, 5)), 'pw1': _rand(sk[5], (c, c)),
                 'dw2': _rand(sk[6], (c, 5, 5)), 'pw2': _rand(sk[7], (c, c))},
        'dil3': {'dw': _rand(sk[8], (c, 3, 3)), 'pw': _rand(sk[9], (c, c))},
        'dil5': {'dw': _rand(sk[10], (c, 5, 5)), 'pw': _rand(sk[11], (c, c))},
    })
  return params


# ----------------------------------------------------------------------- main --

if __name__ == "__main__":
  key = jax.random.PRNGKey(0)
  k1, k2, k3, k4 = jax.random.split(key, 4)

  N, H, W = 2, 8, 8
  C_pp, C_prev, C = 8, 8, 8
  steps, multiplier = 4, 4
  num_edges = sum(i + 2 for i in range(steps))  # 14

  s0 = jax.random.normal(k1, (N, C_pp, H, W), jnp.float32)
  s1 = jax.random.normal(k2, (N, C_prev, H, W), jnp.float32)
  arch_weights = jax.nn.softmax(jax.random.normal(k3, (num_edges, 8), jnp.float32), axis=-1)
  params = init_params(k4, C_pp, C_prev, C, num_edges)

  cell_fn = jax.jit(functools.partial(cell_forward, steps=steps, multiplier=multiplier))
  out = jax.block_until_ready(cell_fn(s0, s1, arch_weights, params))

  assert out.shape == (N, multiplier * C, H, W), out.shape
  assert bool(jnp.all(jnp.isfinite(out)))

  # correctness check against a pure-JAX reference of the PyTorch module
  ref_fn = jax.jit(functools.partial(_ref_cell_forward, steps=steps, multiplier=multiplier))
  ref = jax.block_until_ready(ref_fn(s0, s1, arch_weights, params))
  np.testing.assert_allclose(np.asarray(out), np.asarray(ref), rtol=5e-2, atol=5e-2)

  print("KERNEL_OK")
</pallas_src>

<mosaic_0001>
module attributes {stable_mosaic.version = 11 : i64} {
  func.func @_cell_kernel(%arg0: i32, %arg1: memref<14xi32, #tpu.memory_space<smem>>, %arg2: memref<14xi32, #tpu.memory_space<smem>>, %arg3: memref<8x128xf32, #tpu.memory_space<vmem>>, %arg4: memref<8x128xf32, #tpu.memory_space<vmem>>, %arg5: memref<8x8xf32, #tpu.memory_space<vmem>>, %arg6: memref<8x8xf32, #tpu.memory_space<vmem>>, %arg7: memref<14x8xf32, #tpu.memory_space<smem>>, %arg8: memref<1x8x68xf32, #tpu.memory_space<vmem>>, %arg9: memref<1x32x32xf32, #tpu.memory_space<vmem>>, %arg10: memref<1x8x34xf32, #tpu.memory_space<vmem>>, %arg11: memref<1x16x16xf32, #tpu.memory_space<vmem>>, %arg12: memref<32x128xf32, #tpu.memory_space<vmem>>, %arg13: memref<6x8x128xf32, #tpu.memory_space<vmem>>) attributes {dimension_semantics = [#tpu.dimension_semantics<arbitrary>], iteration_bounds = array<i64: 14>, scalar_prefetch = 2 : i64, scratch_operands = 1 : i64, tpu.core_type = #tpu.core_type<tc>, window_params = [{pipeline_mode = #tpu.pipeline_mode<synchronous>, transform_indices = @transform_0, window_bounds = array<i64: 8, 128>}, {pipeline_mode = #tpu.pipeline_mode<synchronous>, transform_indices = @transform_1, window_bounds = array<i64: 8, 128>}, {pipeline_mode = #tpu.pipeline_mode<synchronous>, transform_indices = @transform_2, window_bounds = array<i64: 8, 8>}, {pipeline_mode = #tpu.pipeline_mode<synchronous>, transform_indices = @transform_3, window_bounds = array<i64: 8, 8>}, {transform_indices = @transform_4, window_bounds = array<i64: 14, 8>}, {transform_indices = @transform_5, window_bounds = array<i64: 1, 8, 68>}, {transform_indices = @transform_6, window_bounds = array<i64: 1, 32, 32>}, {transform_indices = @transform_7, window_bounds = array<i64: 1, 8, 34>}, {transform_indices = @transform_8, window_bounds = array<i64: 1, 16, 16>}, {pipeline_mode = #tpu.pipeline_mode<synchronous>, transform_indices = @transform_9, window_bounds = array<i64: 32, 128>}]} {
    %0 = tpu.iota {dimensions = array<i32: 1>} : vector<1x128xi32>
    %c7_i32 = arith.constant 7 : i32
    %1 = vector.broadcast %c7_i32 : i32 to vector<1x128xi32>
    %2 = arith.andi %0, %1 : vector<1x128xi32>
    %c3_i32 = arith.constant 3 : i32
    %3 = vector.broadcast %c3_i32 : i32 to vector<1x128xi32>
    %4 = arith.shrsi %0, %3 : vector<1x128xi32>
    %c7_i32_0 = arith.constant 7 : i32
    %5 = vector.broadcast %c7_i32_0 : i32 to vector<1x128xi32>
    %6 = arith.andi %4, %5 : vector<1x128xi32>
    %c0_i32 = arith.constant 0 : i32
    %7 = arith.cmpi eq, %arg0, %c0_i32 : i32
    %8 = arith.extui %7 : i1 to i32
    %c0_i32_1 = arith.constant 0 : i32
    %9 = arith.cmpi ne, %8, %c0_i32_1 : i32
    scf.if %9 {
      %c0_511 = arith.constant 0 : index
      %c0_512 = arith.constant 0 : index
      %1844 = vector.load %arg3[%c0_511, %c0_512] : memref<8x128xf32, #tpu.memory_space<vmem>>, vector<8x128xf32>
      %cst_513 = arith.constant 0.000000e+00 : f32
      %1845 = vector.broadcast %cst_513 : f32 to vector<8x128xf32>
      %1846 = arith.maximumf %1844, %1845 : vector<8x128xf32>
      %c0_514 = arith.constant 0 : index
      %c0_515 = arith.constant 0 : index
      %1847 = vector.load %arg5[%c0_514, %c0_515] : memref<8x8xf32, #tpu.memory_space<vmem>>, vector<8x8xf32>
      %cst_516 = arith.constant dense<0.000000e+00> : vector<8x128xf32>
      %1848 = tpu.matmul %1847, %1846, %cst_516 {dimension_numbers = #tpu.dot_dimension_numbers<[1], [0], [0], [1], [0, 0, 1, 1], [], []>} : vector<8x8xf32>, vector<8x128xf32>, vector<8x128xf32> -> vector<8x128xf32>
      %cst_517 = arith.constant dense<0.000000e+00> : vector<8xf32>
      %1849 = vector.multi_reduction <add>, %1848, %cst_517 [1] : vector<8x128xf32> to vector<8xf32>
      %1850 = vector.shape_cast %1849 : vector<8xf32> to vector<8x1xf32>
      %cst_518 = arith.constant 7.812500e-03 : f32
      %1851 = vector.broadcast %cst_518 : f32 to vector<8x1xf32>
      %1852 = arith.mulf %1850, %1851 : vector<8x1xf32>
      %1853 = vector.broadcast %1852 : vector<8x1xf32> to vector<8x128xf32>
      %1854 = arith.subf %1848, %1853 : vector<8x128xf32>
      %1855 = arith.mulf %1854, %1854 : vector<8x128xf32>
      %cst_519 = arith.constant dense<0.000000e+00> : vector<8xf32>
      %1856 = vector.multi_reduction <add>, %1855, %cst_519 [1] : vector<8x128xf32> to vector<8xf32>
      %1857 = vector.shape_cast %1856 : vector<8xf32> to vector<8x1xf32>
      %cst_520 = arith.constant 7.812500e-03 : f32
      %1858 = vector.broadcast %cst_520 : f32 to vector<8x1xf32>
      %1859 = arith.mulf %1857, %1858 : vector<8x1xf32>
      %cst_521 = arith.constant 9.99999974E-6 : f32
      %1860 = vector.broadcast %cst_521 : f32 to vector<8x1xf32>
      %1861 = arith.addf %1859, %1860 : vector<8x1xf32>
      %1862 = math.rsqrt %1861 : vector<8x1xf32>
      %1863 = vector.broadcast %1862 : vector<8x1xf32> to vector<8x128xf32>
      %1864 = arith.mulf %1854, %1863 : vector<8x128xf32>
      %c0_522 = arith.constant 0 : index
      %c0_523 = arith.constant 0 : index
      %c0_524 = arith.constant 0 : index
      %1865 = vector.load %arg13[%c0_522, %c0_523, %c0_524] : memref<6x8x128xf32, #tpu.memory_space<vmem>>, vector<1x8x128xf32>
      %1866 = vector.shape_cast %1865 : vector<1x8x128xf32> to vector<8x128xf32>
      %1867 = vector.shape_cast %1864 : vector<8x128xf32> to vector<1x8x128xf32>
      tpu.vector_store %arg13[%c0_522, %c0_523, %c0_524], %1867 {strides = array<i32>} : memref<6x8x128xf32, #tpu.memory_space<vmem>>, vector<1x8x128xf32>,
      %c0_525 = arith.constant 0 : index
      %c0_526 = arith.constant 0 : index
      %1868 = vector.load %arg4[%c0_525, %c0_526] : memref<8x128xf32, #tpu.memory_space<vmem>>, vector<8x128xf32>
      %cst_527 = arith.constant 0.000000e+00 : f32
      %1869 = vector.broadcast %cst_527 : f32 to vector<8x128xf32>
      %1870 = arith.maximumf %1868, %1869 : vector<8x128xf32>
      %c0_528 = arith.constant 0 : index
      %c0_529 = arith.constant 0 : index
      %1871 = vector.load %arg6[%c0_528, %c0_529] : memref<8x8xf32, #tpu.memory_space<vmem>>, vector<8x8xf32>
      %cst_530 = arith.constant dense<0.000000e+00> : vector<8x128xf32>
      %1872 = tpu.matmul %1871, %1870, %cst_530 {dimension_numbers = #tpu.dot_dimension_numbers<[1], [0], [0], [1], [0, 0, 1, 1], [], []>} : vector<8x8xf32>, vector<8x128xf32>, vector<8x128xf32> -> vector<8x128xf32>
      %cst_531 = arith.constant dense<0.000000e+00> : vector<8xf32>
      %1873 = vector.multi_reduction <add>, %1872, %cst_531 [1] : vector<8x128xf32> to vector<8xf32>
      %1874 = vector.shape_cast %1873 : vector<8xf32> to vector<8x1xf32>
      %cst_532 = arith.constant 7.812500e-03 : f32
      %1875 = vector.broadcast %cst_532 : f32 to vector<8x1xf32>
      %1876 = arith.mulf %1874, %1875 : vector<8x1xf32>
      %1877 = vector.broadcast %1876 : vector<8x1xf32> to vector<8x128xf32>
      %1878 = arith.subf %1872, %1877 : vector<8x128xf32>
      %1879 = arith.mulf %1878, %1878 : vector<8x128xf32>
      %cst_533 = arith.constant dense<0.000000e+00> : vector<8xf32>
      %1880 = vector.multi_reduction <add>, %1879, %cst_533 [1] : vector<8x128xf32> to vector<8xf32>
      %1881 = vector.shape_cast %1880 : vector<8xf32> to vector<8x1xf32>
      %cst_534 = arith.constant 7.812500e-03 : f32
      %1882 = vector.broadcast %cst_534 : f32 to vector<8x1xf32>
      %1883 = arith.mulf %1881, %1882 : vector<8x1xf32>
      %cst_535 = arith.constant 9.99999974E-6 : f32
      %1884 = vector.broadcast %cst_535 : f32 to vector<8x1xf32>
      %1885 = arith.addf %1883, %1884 : vector<8x1xf32>
      %1886 = math.rsqrt %1885 : vector<8x1xf32>
      %1887 = vector.broadcast %1886 : vector<8x1xf32> to vector<8x128xf32>
      %1888 = arith.mulf %1878, %1887 : vector<8x128xf32>
      %c1_536 = arith.constant 1 : index
      %c0_537 = arith.constant 0 : index
      %c0_538 = arith.constant 0 : index
      %1889 = vector.load %arg13[%c1_536, %c0_537, %c0_538] : memref<6x8x128xf32, #tpu.memory_space<vmem>>, vector<1x8x128xf32>
      %1890 = vector.shape_cast %1889 : vector<1x8x128xf32> to vector<8x128xf32>
      %1891 = vector.shape_cast %1888 : vector<8x128xf32> to vector<1x8x128xf32>
      tpu.vector_store %arg13[%c1_536, %c0_537, %c0_538], %1891 {strides = array<i32>} : memref<6x8x128xf32, #tpu.memory_space<vmem>>, vector<1x8x128xf32>,
      %cst_539 = arith.constant 0.000000e+00 : f32
      %1892 = vector.broadcast %cst_539 : f32 to vector<8x128xf32>
      %c2_540 = arith.constant 2 : index
      %c0_541 = arith.constant 0 : index
      %c0_542 = arith.constant 0 : index
      %1893 = vector.load %arg13[%c2_540, %c0_541, %c0_542] : memref<6x8x128xf32, #tpu.memory_space<vmem>>, vector<1x8x128xf32>
      %1894 = vector.shape_cast %1893 : vector<1x8x128xf32> to vector<8x128xf32>
      %1895 = vector.shape_cast %1892 : vector<8x128xf32> to vector<1x8x128xf32>
      tpu.vector_store %arg13[%c2_540, %c0_541, %c0_542], %1895 {strides = array<i32>} : memref<6x8x128xf32, #tpu.memory_space<vmem>>, vector<1x8x128xf32>,
      %cst_543 = arith.constant 0.000000e+00 : f32
      %1896 = vector.broadcast %cst_543 : f32 to vector<8x128xf32>
      %c3_544 = arith.constant 3 : index
      %c0_545 = arith.constant 0 : index
      %c0_546 = arith.constant 0 : index
      %1897 = vector.load %arg13[%c3_544, %c0_545, %c0_546] : memref<6x8x128xf32, #tpu.memory_space<vmem>>, vector<1x8x128xf32>
      %1898 = vector.shape_cast %1897 : vector<1x8x128xf32> to vector<8x128xf32>
      %1899 = vector.shape_cast %1896 : vector<8x128xf32> to vector<1x8x128xf32>
      tpu.vector_store %arg13[%c3_544, %c0_545, %c0_546], %1899 {strides = array<i32>} : memref<6x8x128xf32, #tpu.memory_space<vmem>>, vector<1x8x128xf32>,
      %cst_547 = arith.constant 0.000000e+00 : f32
      %1900 = vector.broadcast %cst_547 : f32 to vector<8x128xf32>
      %c4_548 = arith.constant 4 : index
      %c0_549 = arith.constant 0 : index
      %c0_550 = arith.constant 0 : index
      %1901 = vector.load %arg13[%c4_548, %c0_549, %c0_550] : memref<6x8x128xf32, #tpu.memory_space<vmem>>, vector<1x8x128xf32>
      %1902 = vector.shape_cast %1901 : vector<1x8x128xf32> to vector<8x128xf32>
      %1903 = vector.shape_cast %1900 : vector<8x128xf32> to vector<1x8x128xf32>
      tpu.vector_store %arg13[%c4_548, %c0_549, %c0_550], %1903 {strides = array<i32>} : memref<6x8x128xf32, #tpu.memory_space<vmem>>, vector<1x8x128xf32>,
      %cst_551 = arith.constant 0.000000e+00 : f32
      %1904 = vector.broadcast %cst_551 : f32 to vector<8x128xf32>
      %c5_552 = arith.constant 5 : index
      %c0_553 = arith.constant 0 : index
      %c0_554 = arith.constant 0 : index
      %1905 = vector.load %arg13[%c5_552, %c0_553, %c0_554] : memref<6x8x128xf32, #tpu.memory_space<vmem>>, vector<1x8x128xf32>
      %1906 = vector.shape_cast %1905 : vector<1x8x128xf32> to vector<8x128xf32>
      %1907 = vector.shape_cast %1904 : vector<8x128xf32> to vector<1x8x128xf32>
      tpu.vector_store %arg13[%c5_552, %c0_553, %c0_554], %1907 {strides = array<i32>} : memref<6x8x128xf32, #tpu.memory_space<vmem>>, vector<1x8x128xf32>,
    } else {
    }
    %10 = arith.index_cast %arg0 : i32 to index
    %11 = memref.load %arg1[%10] : memref<14xi32, #tpu.memory_space<smem>>
    %12 = arith.index_cast %arg0 : i32 to index
    %13 = memref.load %arg2[%12] : memref<14xi32, #tpu.memory_space<smem>>
    %14 = arith.index_cast %11 : i32 to index
    %c0 = arith.constant 0 : index
    %c0_2 = arith.constant 0 : index
    %15 = vector.load %arg13[%14, %c0, %c0_2] : memref<6x8x128xf32, #tpu.memory_space<vmem>>, vector<1x8x128xf32>
    %16 = vector.shape_cast %15 : vector<1x8x128xf32> to vector<8x128xf32>
    %cst = arith.constant 0xFF800000 : f32
    %17 = vector.broadcast %cst : f32 to vector<8x128xf32>
    %cst_3 = arith.constant 0.000000e+00 : f32
    %18 = vector.broadcast %cst_3 : f32 to vector<8x128xf32>
    %cst_4 = arith.constant 0.000000e+00 : f32
    %19 = vector.broadcast %cst_4 : f32 to vector<1x128xf32>
    %c-1_i32 = arith.constant -1 : i32
    %20 = vector.broadcast %c-1_i32 : i32 to vector<1x128xi32>
    %21 = arith.addi %6, %20 : vector<1x128xi32>
    %c0_i32_5 = arith.constant 0 : i32
    %22 = vector.broadcast %c0_i32_5 : i32 to vector<1x128xi32>
    %23 = arith.cmpi sge, %21, %22 : vector<1x128xi32>
    %c-1_i32_6 = arith.constant -1 : i32
    %24 = vector.broadcast %c-1_i32_6 : i32 to vector<1x128xi32>
    %25 = arith.addi %6, %24 : vector<1x128xi32>
    %c8_i32 = arith.constant 8 : i32
    %26 = vector.broadcast %c8_i32 : i32 to vector<1x128xi32>
    %27 = arith.cmpi slt, %25, %26 : vector<1x128xi32>
    %28 = arith.andi %23, %27 : vector<1x128xi1>
    %c-1_i32_7 = arith.constant -1 : i32
    %29 = vector.broadcast %c-1_i32_7 : i32 to vector<1x128xi32>
    %30 = arith.addi %2, %29 : vector<1x128xi32>
    %c0_i32_8 = arith.constant 0 : i32
    %31 = vector.broadcast %c0_i32_8 : i32 to vector<1x128xi32>
    %32 = arith.cmpi sge, %30, %31 : vector<1x128xi32>
    %33 = arith.andi %28, %32 : vector<1x128xi1>
    %c-1_i32_9 = arith.constant -1 : i32
    %34 = vector.broadcast %c-1_i32_9 : i32 to vector<1x128xi32>
    %35 = arith.addi %2, %34 : vector<1x128xi32>
    %c8_i32_10 = arith.constant 8 : i32
    %36 = vector.broadcast %c8_i32_10 : i32 to vector<1x128xi32>
    %37 = arith.cmpi slt, %35, %36 : vector<1x128xi32>
    %38 = arith.andi %33, %37 : vector<1x128xi1>
    %c9_i32 = arith.constant 9 : i32
    %39 = tpu.dynamic_rotate %16 by %c9_i32 dim 1 : vector<8x128xf32>, i32 -> vector<8x128xf32>
    %cst_11 = arith.constant 0xFF800000 : f32
    %40 = vector.shape_cast %38 : vector<1x128xi1> to vector<1x128xi1>
    %41 = vector.broadcast %40 : vector<1x128xi1> to vector<8x128xi1>
    %42 = vector.broadcast %cst_11 : f32 to vector<8x128xf32>
    %43 = arith.select %41, %39, %42 : vector<8x128xi1>, vector<8x128xf32>
    %44 = arith.maximumf %17, %43 : vector<8x128xf32>
    %cst_12 = arith.constant 0.000000e+00 : f32
    %45 = vector.shape_cast %38 : vector<1x128xi1> to vector<1x128xi1>
    %46 = vector.broadcast %45 : vector<1x128xi1> to vector<8x128xi1>
    %47 = vector.broadcast %cst_12 : f32 to vector<8x128xf32>
    %48 = arith.select %46, %39, %47 : vector<8x128xi1>, vector<8x128xf32>
    %49 = arith.addf %18, %48 : vector<8x128xf32>
    %50 = arith.extui %38 : vector<1x128xi1> to vector<1x128xi32>
    %51 = arith.sitofp %50 : vector<1x128xi32> to vector<1x128xf32>
    %52 = arith.addf %19, %51 : vector<1x128xf32>
    %c-1_i32_13 = arith.constant -1 : i32
    %53 = vector.broadcast %c-1_i32_13 : i32 to vector<1x128xi32>
    %54 = arith.addi %6, %53 : vector<1x128xi32>
    %c0_i32_14 = arith.constant 0 : i32
    %55 = vector.broadcast %c0_i32_14 : i32 to vector<1x128xi32>
    %56 = arith.cmpi sge, %54, %55 : vector<1x128xi32>
    %c-1_i32_15 = arith.constant -1 : i32
    %57 = vector.broadcast %c-1_i32_15 : i32 to vector<1x128xi32>
    %58 = arith.addi %6, %57 : vector<1x128xi32>
    %c8_i32_16 = arith.constant 8 : i32
    %59 = vector.broadcast %c8_i32_16 : i32 to vector<1x128xi32>
    %60 = arith.cmpi slt, %58, %59 : vector<1x128xi32>
    %61 = arith.andi %56, %60 : vector<1x128xi1>
    %c0_i32_17 = arith.constant 0 : i32
    %62 = vector.broadcast %c0_i32_17 : i32 to vector<1x128xi32>
    %63 = arith.addi %2, %62 : vector<1x128xi32>
    %c0_i32_18 = arith.constant 0 : i32
    %64 = vector.broadcast %c0_i32_18 : i32 to vector<1x128xi32>
    %65 = arith.cmpi sge, %63, %64 : vector<1x128xi32>
    %66 = arith.andi %61, %65 : vector<1x128xi1>
    %c0_i32_19 = arith.constant 0 : i32
    %67 = vector.broadcast %c0_i32_19 : i32 to vector<1x128xi32>
    %68 = arith.addi %2, %67 : vector<1x128xi32>
    %c8_i32_20 = arith.constant 8 : i32
    %69 = vector.broadcast %c8_i32_20 : i32 to vector<1x128xi32>
    %70 = arith.cmpi slt, %68, %69 : vector<1x128xi32>
    %71 = arith.andi %66, %70 : vector<1x128xi1>
    %c8_i32_21 = arith.constant 8 : i32
    %72 = tpu.dynamic_rotate %16 by %c8_i32_21 dim 1 : vector<8x128xf32>, i32 -> vector<8x128xf32>
    %cst_22 = arith.constant 0xFF800000 : f32
    %73 = vector.shape_cast %71 : vector<1x128xi1> to vector<1x128xi1>
    %74 = vector.broadcast %73 : vector<1x128xi1> to vector<8x128xi1>
    %75 = vector.broadcast %cst_22 : f32 to vector<8x128xf32>
    %76 = arith.select %74, %72, %75 : vector<8x128xi1>, vector<8x128xf32>
    %77 = arith.maximumf %44, %76 : vector<8x128xf32>
    %cst_23 = arith.constant 0.000000e+00 : f32
    %78 = vector.shape_cast %71 : vector<1x128xi1> to vector<1x128xi1>
    %79 = vector.broadcast %78 : vector<1x128xi1> to vector<8x128xi1>
    %80 = vector.broadcast %cst_23 : f32 to vector<8x128xf32>
    %81 = arith.select %79, %72, %80 : vector<8x128xi1>, vector<8x128xf32>
    %82 = arith.addf %49, %81 : vector<8x128xf32>
    %83 = arith.extui %71 : vector<1x128xi1> to vector<1x128xi32>
    %84 = arith.sitofp %83 : vector<1x128xi32> to vector<1x128xf32>
    %85 = arith.addf %52, %84 : vector<1x128xf32>
    %c-1_i32_24 = arith.constant -1 : i32
    %86 = vector.broadcast %c-1_i32_24 : i32 to vector<1x128xi32>
    %87 = arith.addi %6, %86 : vector<1x128xi32>
    %c0_i32_25 = arith.constant 0 : i32
    %88 = vector.broadcast %c0_i32_25 : i32 to vector<1x128xi32>
    %89 = arith.cmpi sge, %87, %88 : vector<1x128xi32>
    %c-1_i32_26 = arith.constant -1 : i32
    %90 = vector.broadcast %c-1_i32_26 : i32 to vector<1x128xi32>
    %91 = arith.addi %6, %90 : vector<1x128xi32>
    %c8_i32_27 = arith.constant 8 : i32
    %92 = vector.broadcast %c8_i32_27 : i32 to vector<1x128xi32>
    %93 = arith.cmpi slt, %91, %92 : vector<1x128xi32>
    %94 = arith.andi %89, %93 : vector<1x128xi1>
    %c1_i32 = arith.constant 1 : i32
    %95 = vector.broadcast %c1_i32 : i32 to vector<1x128xi32>
    %96 = arith.addi %2, %95 : vector<1x128xi32>
    %c0_i32_28 = arith.constant 0 : i32
    %97 = vector.broadcast %c0_i32_28 : i32 to vector<1x128xi32>
    %98 = arith.cmpi sge, %96, %97 : vector<1x128xi32>
    %99 = arith.andi %94, %98 : vector<1x128xi1>
    %c1_i32_29 = arith.constant 1 : i32
    %100 = vector.broadcast %c1_i32_29 : i32 to vector<1x128xi32>
    %101 = arith.addi %2, %100 : vector<1x128xi32>
    %c8_i32_30 = arith.constant 8 : i32
    %102 = vector.broadcast %c8_i32_30 : i32 to vector<1x128xi32>
    %103 = arith.cmpi slt, %101, %102 : vector<1x128xi32>
    %104 = arith.andi %99, %103 : vector<1x128xi1>
    %c7_i32_31 = arith.constant 7 : i32
    %105 = tpu.dynamic_rotate %16 by %c7_i32_31 dim 1 : vector<8x128xf32>, i32 -> vector<8x128xf32>
    %cst_32 = arith.constant 0xFF800000 : f32
    %106 = vector.shape_cast %104 : vector<1x128xi1> to vector<1x128xi1>
    %107 = vector.broadcast %106 : vector<1x128xi1> to vector<8x128xi1>
    %108 = vector.broadcast %cst_32 : f32 to vector<8x128xf32>
    %109 = arith.select %107, %105, %108 : vector<8x128xi1>, vector<8x128xf32>
    %110 = arith.maximumf %77, %109 : vector<8x128xf32>
    %cst_33 = arith.constant 0.000000e+00 : f32
    %111 = vector.shape_cast %104 : vector<1x128xi1> to vector<1x128xi1>
    %112 = vector.broadcast %111 : vector<1x128xi1> to vector<8x128xi1>
    %113 = vector.broadcast %cst_33 : f32 to vector<8x128xf32>
    %114 = arith.select %112, %105, %113 : vector<8x128xi1>, vector<8x128xf32>
    %115 = arith.addf %82, %114 : vector<8x128xf32>
    %116 = arith.extui %104 : vector<1x128xi1> to vector<1x128xi32>
    %117 = arith.sitofp %116 : vector<1x128xi32> to vector<1x128xf32>
    %118 = arith.addf %85, %117 : vector<1x128xf32>
    %c0_i32_34 = arith.constant 0 : i32
    %119 = vector.broadcast %c0_i32_34 : i32 to vector<1x128xi32>
    %120 = arith.addi %6, %119 : vector<1x128xi32>
    %c0_i32_35 = arith.constant 0 : i32
    %121 = vector.broadcast %c0_i32_35 : i32 to vector<1x128xi32>
    %122 = arith.cmpi sge, %120, %121 : vector<1x128xi32>
    %c0_i32_36 = arith.constant 0 : i32
    %123 = vector.broadcast %c0_i32_36 : i32 to vector<1x128xi32>
    %124 = arith.addi %6, %123 : vector<1x128xi32>
    %c8_i32_37 = arith.constant 8 : i32
    %125 = vector.broadcast %c8_i32_37 : i32 to vector<1x128xi32>
    %126 = arith.cmpi slt, %124, %125 : vector<1x128xi32>
    %127 = arith.andi %122, %126 : vector<1x128xi1>
    %c-1_i32_38 = arith.constant -1 : i32
    %128 = vector.broadcast %c-1_i32_38 : i32 to vector<1x128xi32>
    %129 = arith.addi %2, %128 : vector<1x128xi32>
    %c0_i32_39 = arith.constant 0 : i32
    %130 = vector.broadcast %c0_i32_39 : i32 to vector<1x128xi32>
    %131 = arith.cmpi sge, %129, %130 : vector<1x128xi32>
    %132 = arith.andi %127, %131 : vector<1x128xi1>
    %c-1_i32_40 = arith.constant -1 : i32
    %133 = vector.broadcast %c-1_i32_40 : i32 to vector<1x128xi32>
    %134 = arith.addi %2, %133 : vector<1x128xi32>
    %c8_i32_41 = arith.constant 8 : i32
    %135 = vector.broadcast %c8_i32_41 : i32 to vector<1x128xi32>
    %136 = arith.cmpi slt, %134, %135 : vector<1x128xi32>
    %137 = arith.andi %132, %136 : vector<1x128xi1>
    %c1_i32_42 = arith.constant 1 : i32
    %138 = tpu.dynamic_rotate %16 by %c1_i32_42 dim 1 : vector<8x128xf32>, i32 -> vector<8x128xf32>
    %cst_43 = arith.constant 0xFF800000 : f32
    %139 = vector.shape_cast %137 : vector<1x128xi1> to vector<1x128xi1>
    %140 = vector.broadcast %139 : vector<1x128xi1> to vector<8x128xi1>
    %141 = vector.broadcast %cst_43 : f32 to vector<8x128xf32>
    %142 = arith.select %140, %138, %141 : vector<8x128xi1>, vector<8x128xf32>
    %143 = arith.maximumf %110, %142 : vector<8x128xf32>
    %cst_44 = arith.constant 0.000000e+00 : f32
    %144 = vector.shape_cast %137 : vector<1x128xi1> to vector<1x128xi1>
    %145 = vector.broadcast %144 : vector<1x128xi1> to vector<8x128xi1>
    %146 = vector.broadcast %cst_44 : f32 to vector<8x128xf32>
    %147 = arith.select %145, %138, %146 : vector<8x128xi1>, vector<8x128xf32>
    %148 = arith.addf %115, %147 : vector<8x128xf32>
    %149 = arith.extui %137 : vector<1x128xi1> to vector<1x128xi32>
    %150 = arith.sitofp %149 : vector<1x128xi32> to vector<1x128xf32>
    %151 = arith.addf %118, %150 : vector<1x128xf32>
    %c0_i32_45 = arith.constant 0 : i32
    %152 = vector.broadcast %c0_i32_45 : i32 to vector<1x128xi32>
    %153 = arith.addi %6, %152 : vector<1x128xi32>
    %c0_i32_46 = arith.constant 0 : i32
    %154 = vector.broadcast %c0_i32_46 : i32 to vector<1x128xi32>
    %155 = arith.cmpi sge, %153, %154 : vector<1x128xi32>
    %c0_i32_47 = arith.constant 0 : i32
    %156 = vector.broadcast %c0_i32_47 : i32 to vector<1x128xi32>
    %157 = arith.addi %6, %156 : vector<1x128xi32>
    %c8_i32_48 = arith.constant 8 : i32
    %158 = vector.broadcast %c8_i32_48 : i32 to vector<1x128xi32>
    %159 = arith.cmpi slt, %157, %158 : vector<1x128xi32>
    %160 = arith.andi %155, %159 : vector<1x128xi1>
    %c0_i32_49 = arith.constant 0 : i32
    %161 = vector.broadcast %c0_i32_49 : i32 to vector<1x128xi32>
    %162 = arith.addi %2, %161 : vector<1x128xi32>
    %c0_i32_50 = arith.constant 0 : i32
    %163 = vector.broadcast %c0_i32_50 : i32 to vector<1x128xi32>
    %164 = arith.cmpi sge, %162, %163 : vector<1x128xi32>
    %165 = arith.andi %160, %164 : vector<1x128xi1>
    %c0_i32_51 = arith.constant 0 : i32
    %166 = vector.broadcast %c0_i32_51 : i32 to vector<1x128xi32>
    %167 = arith.addi %2, %166 : vector<1x128xi32>
    %c8_i32_52 = arith.constant 8 : i32
    %168 = vector.broadcast %c8_i32_52 : i32 to vector<1x128xi32>
    %169 = arith.cmpi slt, %167, %168 : vector<1x128xi32>
    %170 = arith.andi %165, %169 : vector<1x128xi1>
    %cst_53 = arith.constant 0xFF800000 : f32
    %171 = vector.shape_cast %170 : vector<1x128xi1> to vector<1x128xi1>
    %172 = vector.broadcast %171 : vector<1x128xi1> to vector<8x128xi1>
    %173 = vector.broadcast %cst_53 : f32 to vector<8x128xf32>
    %174 = arith.select %172, %16, %173 : vector<8x128xi1>, vector<8x128xf32>
    %175 = arith.maximumf %143, %174 : vector<8x128xf32>
    %cst_54 = arith.constant 0.000000e+00 : f32
    %176 = vector.shape_cast %170 : vector<1x128xi1> to vector<1x128xi1>
    %177 = vector.broadcast %176 : vector<1x128xi1> to vector<8x128xi1>
    %178 = vector.broadcast %cst_54 : f32 to vector<8x128xf32>
    %179 = arith.select %177, %16, %178 : vector<8x128xi1>, vector<8x128xf32>
    %180 = arith.addf %148, %179 : vector<8x128xf32>
    %181 = arith.extui %170 : vector<1x128xi1> to vector<1x128xi32>
    %182 = arith.sitofp %181 : vector<1x128xi32> to vector<1x128xf32>
    %183 = arith.addf %151, %182 : vector<1x128xf32>
    %c0_i32_55 = arith.constant 0 : i32
    %184 = vector.broadcast %c0_i32_55 : i32 to vector<1x128xi32>
    %185 = arith.addi %6, %184 : vector<1x128xi32>
    %c0_i32_56 = arith.constant 0 : i32
    %186 = vector.broadcast %c0_i32_56 : i32 to vector<1x128xi32>
    %187 = arith.cmpi sge, %185, %186 : vector<1x128xi32>
    %c0_i32_57 = arith.constant 0 : i32
    %188 = vector.broadcast %c0_i32_57 : i32 to vector<1x128xi32>
    %189 = arith.addi %6, %188 : vector<1x128xi32>
    %c8_i32_58 = arith.constant 8 : i32
    %190 = vector.broadcast %c8_i32_58 : i32 to vector<1x128xi32>
    %191 = arith.cmpi slt, %189, %190 : vector<1x128xi32>
    %192 = arith.andi %187, %191 : vector<1x128xi1>
    %c1_i32_59 = arith.constant 1 : i32
    %193 = vector.broadcast %c1_i32_59 : i32 to vector<1x128xi32>
    %194 = arith.addi %2, %193 : vector<1x128xi32>
    %c0_i32_60 = arith.constant 0 : i32
    %195 = vector.broadcast %c0_i32_60 : i32 to vector<1x128xi32>
    %196 = arith.cmpi sge, %194, %195 : vector<1x128xi32>
    %197 = arith.andi %192, %196 : vector<1x128xi1>
    %c1_i32_61 = arith.constant 1 : i32
    %198 = vector.broadcast %c1_i32_61 : i32 to vector<1x128xi32>
    %199 = arith.addi %2, %198 : vector<1x128xi32>
    %c8_i32_62 = arith.constant 8 : i32
    %200 = vector.broadcast %c8_i32_62 : i32 to vector<1x128xi32>
    %201 = arith.cmpi slt, %199, %200 : vector<1x128xi32>
    %202 = arith.andi %197, %201 : vector<1x128xi1>
    %c127_i32 = arith.constant 127 : i32
    %203 = tpu.dynamic_rotate %16 by %c127_i32 dim 1 : vector<8x128xf32>, i32 -> vector<8x128xf32>
    %cst_63 = arith.constant 0xFF800000 : f32
    %204 = vector.shape_cast %202 : vector<1x128xi1> to vector<1x128xi1>
    %205 = vector.broadcast %204 : vector<1x128xi1> to vector<8x128xi1>
    %206 = vector.broadcast %cst_63 : f32 to vector<8x128xf32>
    %207 = arith.select %205, %203, %206 : vector<8x128xi1>, vector<8x128xf32>
    %208 = arith.maximumf %175, %207 : vector<8x128xf32>
    %cst_64 = arith.constant 0.000000e+00 : f32
    %209 = vector.shape_cast %202 : vector<1x128xi1> to vector<1x128xi1>
    %210 = vector.broadcast %209 : vector<1x128xi1> to vector<8x128xi1>
    %211 = vector.broadcast %cst_64 : f32 to vector<8x128xf32>
    %212 = arith.select %210, %203, %211 : vector<8x128xi1>, vector<8x128xf32>
    %213 = arith.addf %180, %212 : vector<8x128xf32>
    %214 = arith.extui %202 : vector<1x128xi1> to vector<1x128xi32>
    %215 = arith.sitofp %214 : vector<1x128xi32> to vector<1x128xf32>
    %216 = arith.addf %183, %215 : vector<1x128xf32>
    %c1_i32_65 = arith.constant 1 : i32
    %217 = vector.broadcast %c1_i32_65 : i32 to vector<1x128xi32>
    %218 = arith.addi %6, %217 : vector<1x128xi32>
    %c0_i32_66 = arith.constant 0 : i32
    %219 = vector.broadcast %c0_i32_66 : i32 to vector<1x128xi32>
    %220 = arith.cmpi sge, %218, %219 : vector<1x128xi32>
    %c1_i32_67 = arith.constant 1 : i32
    %221 = vector.broadcast %c1_i32_67 : i32 to vector<1x128xi32>
    %222 = arith.addi %6, %221 : vector<1x128xi32>
    %c8_i32_68 = arith.constant 8 : i32
    %223 = vector.broadcast %c8_i32_68 : i32 to vector<1x128xi32>
    %224 = arith.cmpi slt, %222, %223 : vector<1x128xi32>
    %225 = arith.andi %220, %224 : vector<1x128xi1>
    %c-1_i32_69 = arith.constant -1 : i32
    %226 = vector.broadcast %c-1_i32_69 : i32 to vector<1x128xi32>
    %227 = arith.addi %2, %226 : vector<1x128xi32>
    %c0_i32_70 = arith.constant 0 : i32
    %228 = vector.broadcast %c0_i32_70 : i32 to vector<1x128xi32>
    %229 = arith.cmpi sge, %227, %228 : vector<1x128xi32>
    %230 = arith.andi %225, %229 : vector<1x128xi1>
    %c-1_i32_71 = arith.constant -1 : i32
    %231 = vector.broadcast %c-1_i32_71 : i32 to vector<1x128xi32>
    %232 = arith.addi %2, %231 : vector<1x128xi32>
    %c8_i32_72 = arith.constant 8 : i32
    %233 = vector.broadcast %c8_i32_72 : i32 to vector<1x128xi32>
    %234 = arith.cmpi slt, %232, %233 : vector<1x128xi32>
    %235 = arith.andi %230, %234 : vector<1x128xi1>
    %c121_i32 = arith.constant 121 : i32
    %236 = tpu.dynamic_rotate %16 by %c121_i32 dim 1 : vector<8x128xf32>, i32 -> vector<8x128xf32>
    %cst_73 = arith.constant 0xFF800000 : f32
    %237 = vector.shape_cast %235 : vector<1x128xi1> to vector<1x128xi1>
    %238 = vector.broadcast %237 : vector<1x128xi1> to vector<8x128xi1>
    %239 = vector.broadcast %cst_73 : f32 to vector<8x128xf32>
    %240 = arith.select %238, %236, %239 : vector<8x128xi1>, vector<8x128xf32>
    %241 = arith.maximumf %208, %240 : vector<8x128xf32>
    %cst_74 = arith.constant 0.000000e+00 : f32
    %242 = vector.shape_cast %235 : vector<1x128xi1> to vector<1x128xi1>
    %243 = vector.broadcast %242 : vector<1x128xi1> to vector<8x128xi1>
    %244 = vector.broadcast %cst_74 : f32 to vector<8x128xf32>
    %245 = arith.select %243, %236, %244 : vector<8x128xi1>, vector<8x128xf32>
    %246 = arith.addf %213, %245 : vector<8x128xf32>
    %247 = arith.extui %235 : vector<1x128xi1> to vector<1x128xi32>
    %248 = arith.sitofp %247 : vector<1x128xi32> to vector<1x128xf32>
    %249 = arith.addf %216, %248 : vector<1x128xf32>
    %c1_i32_75 = arith.constant 1 : i32
    %250 = vector.broadcast %c1_i32_75 : i32 to vector<1x128xi32>
    %251 = arith.addi %6, %250 : vector<1x128xi32>
    %c0_i32_76 = arith.constant 0 : i32
    %252 = vector.broadcast %c0_i32_76 : i32 to vector<1x128xi32>
    %253 = arith.cmpi sge, %251, %252 : vector<1x128xi32>
    %c1_i32_77 = arith.constant 1 : i32
    %254 = vector.broadcast %c1_i32_77 : i32 to vector<1x128xi32>
    %255 = arith.addi %6, %254 : vector<1x128xi32>
    %c8_i32_78 = arith.constant 8 : i32
    %256 = vector.broadcast %c8_i32_78 : i32 to vector<1x128xi32>
    %257 = arith.cmpi slt, %255, %256 : vector<1x128xi32>
    %258 = arith.andi %253, %257 : vector<1x128xi1>
    %c0_i32_79 = arith.constant 0 : i32
    %259 = vector.broadcast %c0_i32_79 : i32 to vector<1x128xi32>
    %260 = arith.addi %2, %259 : vector<1x128xi32>
    %c0_i32_80 = arith.constant 0 : i32
    %261 = vector.broadcast %c0_i32_80 : i32 to vector<1x128xi32>
    %262 = arith.cmpi sge, %260, %261 : vector<1x128xi32>
    %263 = arith.andi %258, %262 : vector<1x128xi1>
    %c0_i32_81 = arith.constant 0 : i32
    %264 = vector.broadcast %c0_i32_81 : i32 to vector<1x128xi32>
    %265 = arith.addi %2, %264 : vector<1x128xi32>
    %c8_i32_82 = arith.constant 8 : i32
    %266 = vector.broadcast %c8_i32_82 : i32 to vector<1x128xi32>
    %267 = arith.cmpi slt, %265, %266 : vector<1x128xi32>
    %268 = arith.andi %263, %267 : vector<1x128xi1>
    %c120_i32 = arith.constant 120 : i32
    %269 = tpu.dynamic_rotate %16 by %c120_i32 dim 1 : vector<8x128xf32>, i32 -> vector<8x128xf32>
    %cst_83 = arith.constant 0xFF800000 : f32
    %270 = vector.shape_cast %268 : vector<1x128xi1> to vector<1x128xi1>
    %271 = vector.broadcast %270 : vector<1x128xi1> to vector<8x128xi1>
    %272 = vector.broadcast %cst_83 : f32 to vector<8x128xf32>
    %273 = arith.select %271, %269, %272 : vector<8x128xi1>, vector<8x128xf32>
    %274 = arith.maximumf %241, %273 : vector<8x128xf32>
    %cst_84 = arith.constant 0.000000e+00 : f32
    %275 = vector.shape_cast %268 : vector<1x128xi1> to vector<1x128xi1>
    %276 = vector.broadcast %275 : vector<1x128xi1> to vector<8x128xi1>
    %277 = vector.broadcast %cst_84 : f32 to vector<8x128xf32>
    %278 = arith.select %276, %269, %277 : vector<8x128xi1>, vector<8x128xf32>
    %279 = arith.addf %246, %278 : vector<8x128xf32>
    %280 = arith.extui %268 : vector<1x128xi1> to vector<1x128xi32>
    %281 = arith.sitofp %280 : vector<1x128xi32> to vector<1x128xf32>
    %282 = arith.addf %249, %281 : vector<1x128xf32>
    %c1_i32_85 = arith.constant 1 : i32
    %283 = vector.broadcast %c1_i32_85 : i32 to vector<1x128xi32>
    %284 = arith.addi %6, %283 : vector<1x128xi32>
    %c0_i32_86 = arith.constant 0 : i32
    %285 = vector.broadcast %c0_i32_86 : i32 to vector<1x128xi32>
    %286 = arith.cmpi sge, %284, %285 : vector<1x128xi32>
    %c1_i32_87 = arith.constant 1 : i32
    %287 = vector.broadcast %c1_i32_87 : i32 to vector<1x128xi32>
    %288 = arith.addi %6, %287 : vector<1x128xi32>
    %c8_i32_88 = arith.constant 8 : i32
    %289 = vector.broadcast %c8_i32_88 : i32 to vector<1x128xi32>
    %290 = arith.cmpi slt, %288, %289 : vector<1x128xi32>
    %291 = arith.andi %286, %290 : vector<1x128xi1>
    %c1_i32_89 = arith.constant 1 : i32
    %292 = vector.broadcast %c1_i32_89 : i32 to vector<1x128xi32>
    %293 = arith.addi %2, %292 : vector<1x128xi32>
    %c0_i32_90 = arith.constant 0 : i32
    %294 = vector.broadcast %c0_i32_90 : i32 to vector<1x128xi32>
    %295 = arith.cmpi sge, %293, %294 : vector<1x128xi32>
    %296 = arith.andi %291, %295 : vector<1x128xi1>
    %c1_i32_91 = arith.constant 1 : i32
    %297 = vector.broadcast %c1_i32_91 : i32 to vector<1x128xi32>
    %298 = arith.addi %2, %297 : vector<1x128xi32>
    %c8_i32_92 = arith.constant 8 : i32
    %299 = vector.broadcast %c8_i32_92 : i32 to vector<1x128xi32>
    %300 = arith.cmpi slt, %298, %299 : vector<1x128xi32>
    %301 = arith.andi %296, %300 : vector<1x128xi1>
    %c119_i32 = arith.constant 119 : i32
    %302 = tpu.dynamic_rotate %16 by %c119_i32 dim 1 : vector<8x128xf32>, i32 -> vector<8x128xf32>
    %cst_93 = arith.constant 0xFF800000 : f32
    %303 = vector.shape_cast %301 : vector<1x128xi1> to vector<1x128xi1>
    %304 = vector.broadcast %303 : vector<1x128xi1> to vector<8x128xi1>
    %305 = vector.broadcast %cst_93 : f32 to vector<8x128xf32>
    %306 = arith.select %304, %302, %305 : vector<8x128xi1>, vector<8x128xf32>
    %307 = arith.maximumf %274, %306 : vector<8x128xf32>
    %cst_94 = arith.constant 0.000000e+00 : f32
    %308 = vector.shape_cast %301 : vector<1x128xi1> to vector<1x128xi1>
    %309 = vector.broadcast %308 : vector<1x128xi1> to vector<8x128xi1>
    %310 = vector.broadcast %cst_94 : f32 to vector<8x128xf32>
    %311 = arith.select %309, %302, %310 : vector<8x128xi1>, vector<8x128xf32>
    %312 = arith.addf %279, %311 : vector<8x128xf32>
    %313 = arith.extui %301 : vector<1x128xi1> to vector<1x128xi32>
    %314 = arith.sitofp %313 : vector<1x128xi32> to vector<1x128xf32>
    %315 = arith.addf %282, %314 : vector<1x128xf32>
    %cst_95 = arith.constant dense<0.000000e+00> : vector<8xf32>
    %316 = vector.multi_reduction <add>, %307, %cst_95 [1] : vector<8x128xf32> to vector<8xf32>
    %317 = vector.shape_cast %316 : vector<8xf32> to vector<8x1xf32>
    %cst_96 = arith.constant 7.812500e-03 : f32
    %318 = vector.broadcast %cst_96 : f32 to vector<8x1xf32>
    %319 = arith.mulf %317, %318 : vector<8x1xf32>
    %320 = vector.broadcast %319 : vector<8x1xf32> to vector<8x128xf32>
    %321 = arith.subf %307, %320 : vector<8x128xf32>
    %322 = arith.mulf %321, %321 : vector<8x128xf32>
    %cst_97 = arith.constant dense<0.000000e+00> : vector<8xf32>
    %323 = vector.multi_reduction <add>, %322, %cst_97 [1] : vector<8x128xf32> to vector<8xf32>
    %324 = vector.shape_cast %323 : vector<8xf32> to vector<8x1xf32>
    %cst_98 = arith.constant 7.812500e-03 : f32
    %325 = vector.broadcast %cst_98 : f32 to vector<8x1xf32>
    %326 = arith.mulf %324, %325 : vector<8x1xf32>
    %cst_99 = arith.constant 9.99999974E-6 : f32
    %327 = vector.broadcast %cst_99 : f32 to vector<8x1xf32>
    %328 = arith.addf %326, %327 : vector<8x1xf32>
    %329 = math.rsqrt %328 : vector<8x1xf32>
    %330 = vector.broadcast %329 : vector<8x1xf32> to vector<8x128xf32>
    %331 = arith.mulf %321, %330 : vector<8x128xf32>
    %332 = vector.broadcast %315 : vector<1x128xf32> to vector<8x128xf32>
    %333 = arith.divf %312, %332 : vector<8x128xf32>
    %cst_100 = arith.constant dense<0.000000e+00> : vector<8xf32>
    %334 = vector.multi_reduction <add>, %333, %cst_100 [1] : vector<8x128xf32> to vector<8xf32>
    %335 = vector.shape_cast %334 : vector<8xf32> to vector<8x1xf32>
    %cst_101 = arith.constant 7.812500e-03 : f32
    %336 = vector.broadcast %cst_101 : f32 to vector<8x1xf32>
    %337 = arith.mulf %335, %336 : vector<8x1xf32>
    %338 = vector.broadcast %337 : vector<8x1xf32> to vector<8x128xf32>
    %339 = arith.subf %333, %338 : vector<8x128xf32>
    %340 = arith.mulf %339, %339 : vector<8x128xf32>
    %cst_102 = arith.constant dense<0.000000e+00> : vector<8xf32>
    %341 = vector.multi_reduction <add>, %340, %cst_102 [1] : vector<8x128xf32> to vector<8xf32>
    %342 = vector.shape_cast %341 : vector<8xf32> to vector<8x1xf32>
    %cst_103 = arith.constant 7.812500e-03 : f32
    %343 = vector.broadcast %cst_103 : f32 to vector<8x1xf32>
    %344 = arith.mulf %342, %343 : vector<8x1xf32>
    %cst_104 = arith.constant 9.99999974E-6 : f32
    %345 = vector.broadcast %cst_104 : f32 to vector<8x1xf32>
    %346 = arith.addf %344, %345 : vector<8x1xf32>
    %347 = math.rsqrt %346 : vector<8x1xf32>
    %348 = vector.broadcast %347 : vector<8x1xf32> to vector<8x128xf32>
    %349 = arith.mulf %339, %348 : vector<8x128xf32>
    %cst_105 = arith.constant 0.000000e+00 : f32
    %350 = vector.broadcast %cst_105 : f32 to vector<8x128xf32>
    %351 = arith.maximumf %16, %350 : vector<8x128xf32>
    %c9_i32_106 = arith.constant 9 : i32
    %352 = tpu.dynamic_rotate %351 by %c9_i32_106 dim 1 : vector<8x128xf32>, i32 -> vector<8x128xf32>
    %cst_107 = arith.constant 0.000000e+00 : f32
    %353 = vector.shape_cast %38 : vector<1x128xi1> to vector<1x128xi1>
    %354 = vector.broadcast %353 : vector<1x128xi1> to vector<8x128xi1>
    %355 = vector.broadcast %cst_107 : f32 to vector<8x128xf32>
    %356 = arith.select %354, %352, %355 : vector<8x128xi1>, vector<8x128xf32>
    %c8_i32_108 = arith.constant 8 : i32
    %357 = tpu.dynamic_rotate %351 by %c8_i32_108 dim 1 : vector<8x128xf32>, i32 -> vector<8x128xf32>
    %cst_109 = arith.constant 0.000000e+00 : f32
    %358 = vector.shape_cast %71 : vector<1x128xi1> to vector<1x128xi1>
    %359 = vector.broadcast %358 : vector<1x128xi1> to vector<8x128xi1>
    %360 = vector.broadcast %cst_109 : f32 to vector<8x128xf32>
    %361 = arith.select %359, %357, %360 : vector<8x128xi1>, vector<8x128xf32>
    %c7_i32_110 = arith.constant 7 : i32
    %362 = tpu.dynamic_rotate %351 by %c7_i32_110 dim 1 : vector<8x128xf32>, i32 -> vector<8x128xf32>
    %cst_111 = arith.constant 0.000000e+00 : f32
    %363 = vector.shape_cast %104 : vector<1x128xi1> to vector<1x128xi1>
    %364 = vector.broadcast %363 : vector<1x128xi1> to vector<8x128xi1>
    %365 = vector.broadcast %cst_111 : f32 to vector<8x128xf32>
    %366 = arith.select %364, %362, %365 : vector<8x128xi1>, vector<8x128xf32>
    %c1_i32_112 = arith.constant 1 : i32
    %367 = tpu.dynamic_rotate %351 by %c1_i32_112 dim 1 : vector<8x128xf32>, i32 -> vector<8x128xf32>
    %cst_113 = arith.constant 0.000000e+00 : f32
    %368 = vector.shape_cast %137 : vector<1x128xi1> to vector<1x128xi1>
    %369 = vector.broadcast %368 : vector<1x128xi1> to vector<8x128xi1>
    %370 = vector.broadcast %cst_113 : f32 to vector<8x128xf32>
    %371 = arith.select %369, %367, %370 : vector<8x128xi1>, vector<8x128xf32>
    %cst_114 = arith.constant 0.000000e+00 : f32
    %372 = vector.shape_cast %170 : vector<1x128xi1> to vector<1x128xi1>
    %373 = vector.broadcast %372 : vector<1x128xi1> to vector<8x128xi1>
    %374 = vector.broadcast %cst_114 : f32 to vector<8x128xf32>
    %375 = arith.select %373, %351, %374 : vector<8x128xi1>, vector<8x128xf32>
    %c127_i32_115 = arith.constant 127 : i32
    %376 = tpu.dynamic_rotate %351 by %c127_i32_115 dim 1 : vector<8x128xf32>, i32 -> vector<8x128xf32>
    %cst_116 = arith.constant 0.000000e+00 : f32
    %377 = vector.shape_cast %202 : vector<1x128xi1> to vector<1x128xi1>
    %378 = vector.broadcast %377 : vector<1x128xi1> to vector<8x128xi1>
    %379 = vector.broadcast %cst_116 : f32 to vector<8x128xf32>
    %380 = arith.select %378, %376, %379 : vector<8x128xi1>, vector<8x128xf32>
    %c121_i32_117 = arith.constant 121 : i32
    %381 = tpu.dynamic_rotate %351 by %c121_i32_117 dim 1 : vector<8x128xf32>, i32 -> vector<8x128xf32>
    %cst_118 = arith.constant 0.000000e+00 : f32
    %382 = vector.shape_cast %235 : vector<1x128xi1> to vector<1x128xi1>
    %383 = vector.broadcast %382 : vector<1x128xi1> to vector<8x128xi1>
    %384 = vector.broadcast %cst_118 : f32 to vector<8x128xf32>
    %385 = arith.select %383, %381, %384 : vector<8x128xi1>, vector<8x128xf32>
    %c120_i32_119 = arith.constant 120 : i32
    %386 = tpu.dynamic_rotate %351 by %c120_i32_119 dim 1 : vector<8x128xf32>, i32 -> vector<8x128xf32>
    %cst_120 = arith.constant 0.000000e+00 : f32
    %387 = vector.shape_cast %268 : vector<1x128xi1> to vector<1x128xi1>
    %388 = vector.broadcast %387 : vector<1x128xi1> to vector<8x128xi1>
    %389 = vector.broadcast %cst_120 : f32 to vector<8x128xf32>
    %390 = arith.select %388, %386, %389 : vector<8x128xi1>, vector<8x128xf32>
    %c119_i32_121 = arith.constant 119 : i32
    %391 = tpu.dynamic_rotate %351 by %c119_i32_121 dim 1 : vector<8x128xf32>, i32 -> vector<8x128xf32>
    %cst_122 = arith.constant 0.000000e+00 : f32
    %392 = vector.shape_cast %301 : vector<1x128xi1> to vector<1x128xi1>
    %393 = vector.broadcast %392 : vector<1x128xi1> to vector<8x128xi1>
    %394 = vector.broadcast %cst_122 : f32 to vector<8x128xf32>
    %395 = arith.select %393, %391, %394 : vector<8x128xi1>, vector<8x128xf32>
    %c-2_i32 = arith.constant -2 : i32
    %396 = vector.broadcast %c-2_i32 : i32 to vector<1x128xi32>
    %397 = arith.addi %6, %396 : vector<1x128xi32>
    %c0_i32_123 = arith.constant 0 : i32
    %398 = vector.broadcast %c0_i32_123 : i32 to vector<1x128xi32>
    %399 = arith.cmpi sge, %397, %398 : vector<1x128xi32>
    %c-2_i32_124 = arith.constant -2 : i32
    %400 = vector.broadcast %c-2_i32_124 : i32 to vector<1x128xi32>
    %401 = arith.addi %6, %400 : vector<1x128xi32>
    %c8_i32_125 = arith.constant 8 : i32
    %402 = vector.broadcast %c8_i32_125 : i32 to vector<1x128xi32>
    %403 = arith.cmpi slt, %401, %402 : vector<1x128xi32>
    %404 = arith.andi %399, %403 : vector<1x128xi1>
    %c-2_i32_126 = arith.constant -2 : i32
    %405 = vector.broadcast %c-2_i32_126 : i32 to vector<1x128xi32>
    %406 = arith.addi %2, %405 : vector<1x128xi32>
    %c0_i32_127 = arith.constant 0 : i32
    %407 = vector.broadcast %c0_i32_127 : i32 to vector<1x128xi32>
    %408 = arith.cmpi sge, %406, %407 : vector<1x128xi32>
    %409 = arith.andi %404, %408 : vector<1x128xi1>
    %c-2_i32_128 = arith.constant -2 : i32
    %410 = vector.broadcast %c-2_i32_128 : i32 to vector<1x128xi32>
    %411 = arith.addi %2, %410 : vector<1x128xi32>
    %c8_i32_129 = arith.constant 8 : i32
    %412 = vector.broadcast %c8_i32_129 : i32 to vector<1x128xi32>
    %413 = arith.cmpi slt, %411, %412 : vector<1x128xi32>
    %414 = arith.andi %409, %413 : vector<1x128xi1>
    %c18_i32 = arith.constant 18 : i32
    %415 = tpu.dynamic_rotate %351 by %c18_i32 dim 1 : vector<8x128xf32>, i32 -> vector<8x128xf32>
    %cst_130 = arith.constant 0.000000e+00 : f32
    %416 = vector.shape_cast %414 : vector<1x128xi1> to vector<1x128xi1>
    %417 = vector.broadcast %416 : vector<1x128xi1> to vector<8x128xi1>
    %418 = vector.broadcast %cst_130 : f32 to vector<8x128xf32>
    %419 = arith.select %417, %415, %418 : vector<8x128xi1>, vector<8x128xf32>
    %c-2_i32_131 = arith.constant -2 : i32
    %420 = vector.broadcast %c-2_i32_131 : i32 to vector<1x128xi32>
    %421 = arith.addi %6, %420 : vector<1x128xi32>
    %c0_i32_132 = arith.constant 0 : i32
    %422 = vector.broadcast %c0_i32_132 : i32 to vector<1x128xi32>
    %423 = arith.cmpi sge, %421, %422 : vector<1x128xi32>
    %c-2_i32_133 = arith.constant -2 : i32
    %424 = vector.broadcast %c-2_i32_133 : i32 to vector<1x128xi32>
    %425 = arith.addi %6, %424 : vector<1x128xi32>
    %c8_i32_134 = arith.constant 8 : i32
    %426 = vector.broadcast %c8_i32_134 : i32 to vector<1x128xi32>
    %427 = arith.cmpi slt, %425, %426 : vector<1x128xi32>
    %428 = arith.andi %423, %427 : vector<1x128xi1>
    %c-1_i32_135 = arith.constant -1 : i32
    %429 = vector.broadcast %c-1_i32_135 : i32 to vector<1x128xi32>
    %430 = arith.addi %2, %429 : vector<1x128xi32>
    %c0_i32_136 = arith.constant 0 : i32
    %431 = vector.broadcast %c0_i32_136 : i32 to vector<1x128xi32>
    %432 = arith.cmpi sge, %430, %431 : vector<1x128xi32>
    %433 = arith.andi %428, %432 : vector<1x128xi1>
    %c-1_i32_137 = arith.constant -1 : i32
    %434 = vector.broadcast %c-1_i32_137 : i32 to vector<1x128xi32>
    %435 = arith.addi %2, %434 : vector<1x128xi32>
    %c8_i32_138 = arith.constant 8 : i32
    %436 = vector.broadcast %c8_i32_138 : i32 to vector<1x128xi32>
    %437 = arith.cmpi slt, %435, %436 : vector<1x128xi32>
    %438 = arith.andi %433, %437 : vector<1x128xi1>
    %c17_i32 = arith.constant 17 : i32
    %439 = tpu.dynamic_rotate %351 by %c17_i32 dim 1 : vector<8x128xf32>, i32 -> vector<8x128xf32>
    %cst_139 = arith.constant 0.000000e+00 : f32
    %440 = vector.shape_cast %438 : vector<1x128xi1> to vector<1x128xi1>
    %441 = vector.broadcast %440 : vector<1x128xi1> to vector<8x128xi1>
    %442 = vector.broadcast %cst_139 : f32 to vector<8x128xf32>
    %443 = arith.select %441, %439, %442 : vector<8x128xi1>, vector<8x128xf32>
    %c-2_i32_140 = arith.constant -2 : i32
    %444 = vector.broadcast %c-2_i32_140 : i32 to vector<1x128xi32>
    %445 = arith.addi %6, %444 : vector<1x128xi32>
    %c0_i32_141 = arith.constant 0 : i32
    %446 = vector.broadcast %c0_i32_141 : i32 to vector<1x128xi32>
    %447 = arith.cmpi sge, %445, %446 : vector<1x128xi32>
    %c-2_i32_142 = arith.constant -2 : i32
    %448 = vector.broadcast %c-2_i32_142 : i32 to vector<1x128xi32>
    %449 = arith.addi %6, %448 : vector<1x128xi32>
    %c8_i32_143 = arith.constant 8 : i32
    %450 = vector.broadcast %c8_i32_143 : i32 to vector<1x128xi32>
    %451 = arith.cmpi slt, %449, %450 : vector<1x128xi32>
    %452 = arith.andi %447, %451 : vector<1x128xi1>
    %c0_i32_144 = arith.constant 0 : i32
    %453 = vector.broadcast %c0_i32_144 : i32 to vector<1x128xi32>
    %454 = arith.addi %2, %453 : vector<1x128xi32>
    %c0_i32_145 = arith.constant 0 : i32
    %455 = vector.broadcast %c0_i32_145 : i32 to vector<1x128xi32>
    %456 = arith.cmpi sge, %454, %455 : vector<1x128xi32>
    %457 = arith.andi %452, %456 : vector<1x128xi1>
    %c0_i32_146 = arith.constant 0 : i32
    %458 = vector.broadcast %c0_i32_146 : i32 to vector<1x128xi32>
    %459 = arith.addi %2, %458 : vector<1x128xi32>
    %c8_i32_147 = arith.constant 8 : i32
    %460 = vector.broadcast %c8_i32_147 : i32 to vector<1x128xi32>
    %461 = arith.cmpi slt, %459, %460 : vector<1x128xi32>
    %462 = arith.andi %457, %461 : vector<1x128xi1>
    %c16_i32 = arith.constant 16 : i32
    %463 = tpu.dynamic_rotate %351 by %c16_i32 dim 1 : vector<8x128xf32>, i32 -> vector<8x128xf32>
    %cst_148 = arith.constant 0.000000e+00 : f32
    %464 = vector.shape_cast %462 : vector<1x128xi1> to vector<1x128xi1>
    %465 = vector.broadcast %464 : vector<1x128xi1> to vector<8x128xi1>
    %466 = vector.broadcast %cst_148 : f32 to vector<8x128xf32>
    %467 = arith.select %465, %463, %466 : vector<8x128xi1>, vector<8x128xf32>
    %c-2_i32_149 = arith.constant -2 : i32
    %468 = vector.broadcast %c-2_i32_149 : i32 to vector<1x128xi32>
    %469 = arith.addi %6, %468 : vector<1x128xi32>
    %c0_i32_150 = arith.constant 0 : i32
    %470 = vector.broadcast %c0_i32_150 : i32 to vector<1x128xi32>
    %471 = arith.cmpi sge, %469, %470 : vector<1x128xi32>
    %c-2_i32_151 = arith.constant -2 : i32
    %472 = vector.broadcast %c-2_i32_151 : i32 to vector<1x128xi32>
    %473 = arith.addi %6, %472 : vector<1x128xi32>
    %c8_i32_152 = arith.constant 8 : i32
    %474 = vector.broadcast %c8_i32_152 : i32 to vector<1x128xi32>
    %475 = arith.cmpi slt, %473, %474 : vector<1x128xi32>
    %476 = arith.andi %471, %475 : vector<1x128xi1>
    %c1_i32_153 = arith.constant 1 : i32
    %477 = vector.broadcast %c1_i32_153 : i32 to vector<1x128xi32>
    %478 = arith.addi %2, %477 : vector<1x128xi32>
    %c0_i32_154 = arith.constant 0 : i32
    %479 = vector.broadcast %c0_i32_154 : i32 to vector<1x128xi32>
    %480 = arith.cmpi sge, %478, %479 : vector<1x128xi32>
    %481 = arith.andi %476, %480 : vector<1x128xi1>
    %c1_i32_155 = arith.constant 1 : i32
    %482 = vector.broadcast %c1_i32_155 : i32 to vector<1x128xi32>
    %483 = arith.addi %2, %482 : vector<1x128xi32>
    %c8_i32_156 = arith.constant 8 : i32
    %484 = vector.broadcast %c8_i32_156 : i32 to vector<1x128xi32>
    %485 = arith.cmpi slt, %483, %484 : vector<1x128xi32>
    %486 = arith.andi %481, %485 : vector<1x128xi1>
    %c15_i32 = arith.constant 15 : i32
    %487 = tpu.dynamic_rotate %351 by %c15_i32 dim 1 : vector<8x128xf32>, i32 -> vector<8x128xf32>
    %cst_157 = arith.constant 0.000000e+00 : f32
    %488 = vector.shape_cast %486 : vector<1x128xi1> to vector<1x128xi1>
    %489 = vector.broadcast %488 : vector<1x128xi1> to vector<8x128xi1>
    %490 = vector.broadcast %cst_157 : f32 to vector<8x128xf32>
    %491 = arith.select %489, %487, %490 : vector<8x128xi1>, vector<8x128xf32>
    %c-2_i32_158 = arith.constant -2 : i32
    %492 = vector.broadcast %c-2_i32_158 : i32 to vector<1x128xi32>
    %493 = arith.addi %6, %492 : vector<1x128xi32>
    %c0_i32_159 = arith.constant 0 : i32
    %494 = vector.broadcast %c0_i32_159 : i32 to vector<1x128xi32>
    %495 = arith.cmpi sge, %493, %494 : vector<1x128xi32>
    %c-2_i32_160 = arith.constant -2 : i32
    %496 = vector.broadcast %c-2_i32_160 : i32 to vector<1x128xi32>
    %497 = arith.addi %6, %496 : vector<1x128xi32>
    %c8_i32_161 = arith.constant 8 : i32
    %498 = vector.broadcast %c8_i32_161 : i32 to vector<1x128xi32>
    %499 = arith.cmpi slt, %497, %498 : vector<1x128xi32>
    %500 = arith.andi %495, %499 : vector<1x128xi1>
    %c2_i32 = arith.constant 2 : i32
    %501 = vector.broadcast %c2_i32 : i32 to vector<1x128xi32>
    %502 = arith.addi %2, %501 : vector<1x128xi32>
    %c0_i32_162 = arith.constant 0 : i32
    %503 = vector.broadcast %c0_i32_162 : i32 to vector<1x128xi32>
    %504 = arith.cmpi sge, %502, %503 : vector<1x128xi32>
    %505 = arith.andi %500, %504 : vector<1x128xi1>
    %c2_i32_163 = arith.constant 2 : i32
    %506 = vector.broadcast %c2_i32_163 : i32 to vector<1x128xi32>
    %507 = arith.addi %2, %506 : vector<1x128xi32>
    %c8_i32_164 = arith.constant 8 : i32
    %508 = vector.broadcast %c8_i32_164 : i32 to vector<1x128xi32>
    %509 = arith.cmpi slt, %507, %508 : vector<1x128xi32>
    %510 = arith.andi %505, %509 : vector<1x128xi1>
    %c14_i32 = arith.constant 14 : i32
    %511 = tpu.dynamic_rotate %351 by %c14_i32 dim 1 : vector<8x128xf32>, i32 -> vector<8x128xf32>
    %cst_165 = arith.constant 0.000000e+00 : f32
    %512 = vector.shape_cast %510 : vector<1x128xi1> to vector<1x128xi1>
    %513 = vector.broadcast %512 : vector<1x128xi1> to vector<8x128xi1>
    %514 = vector.broadcast %cst_165 : f32 to vector<8x128xf32>
    %515 = arith.select %513, %511, %514 : vector<8x128xi1>, vector<8x128xf32>
    %c-1_i32_166 = arith.constant -1 : i32
    %516 = vector.broadcast %c-1_i32_166 : i32 to vector<1x128xi32>
    %517 = arith.addi %6, %516 : vector<1x128xi32>
    %c0_i32_167 = arith.constant 0 : i32
    %518 = vector.broadcast %c0_i32_167 : i32 to vector<1x128xi32>
    %519 = arith.cmpi sge, %517, %518 : vector<1x128xi32>
    %c-1_i32_168 = arith.constant -1 : i32
    %520 = vector.broadcast %c-1_i32_168 : i32 to vector<1x128xi32>
    %521 = arith.addi %6, %520 : vector<1x128xi32>
    %c8_i32_169 = arith.constant 8 : i32
    %522 = vector.broadcast %c8_i32_169 : i32 to vector<1x128xi32>
    %523 = arith.cmpi slt, %521, %522 : vector<1x128xi32>
    %524 = arith.andi %519, %523 : vector<1x128xi1>
    %c-2_i32_170 = arith.constant -2 : i32
    %525 = vector.broadcast %c-2_i32_170 : i32 to vector<1x128xi32>
    %526 = arith.addi %2, %525 : vector<1x128xi32>
    %c0_i32_171 = arith.constant 0 : i32
    %527 = vector.broadcast %c0_i32_171 : i32 to vector<1x128xi32>
    %528 = arith.cmpi sge, %526, %527 : vector<1x128xi32>
    %529 = arith.andi %524, %528 : vector<1x128xi1>
    %c-2_i32_172 = arith.constant -2 : i32
    %530 = vector.broadcast %c-2_i32_172 : i32 to vector<1x128xi32>
    %531 = arith.addi %2, %530 : vector<1x128xi32>
    %c8_i32_173 = arith.constant 8 : i32
    %532 = vector.broadcast %c8_i32_173 : i32 to vector<1x128xi32>
    %533 = arith.cmpi slt, %531, %532 : vector<1x128xi32>
    %534 = arith.andi %529, %533 : vector<1x128xi1>
    %c10_i32 = arith.constant 10 : i32
    %535 = tpu.dynamic_rotate %351 by %c10_i32 dim 1 : vector<8x128xf32>, i32 -> vector<8x128xf32>
    %cst_174 = arith.constant 0.000000e+00 : f32
    %536 = vector.shape_cast %534 : vector<1x128xi1> to vector<1x128xi1>
    %537 = vector.broadcast %536 : vector<1x128xi1> to vector<8x128xi1>
    %538 = vector.broadcast %cst_174 : f32 to vector<8x128xf32>
    %539 = arith.select %537, %535, %538 : vector<8x128xi1>, vector<8x128xf32>
    %c-1_i32_175 = arith.constant -1 : i32
    %540 = vector.broadcast %c-1_i32_175 : i32 to vector<1x128xi32>
    %541 = arith.addi %6, %540 : vector<1x128xi32>
    %c0_i32_176 = arith.constant 0 : i32
    %542 = vector.broadcast %c0_i32_176 : i32 to vector<1x128xi32>
    %543 = arith.cmpi sge, %541, %542 : vector<1x128xi32>
    %c-1_i32_177 = arith.constant -1 : i32
    %544 = vector.broadcast %c-1_i32_177 : i32 to vector<1x128xi32>
    %545 = arith.addi %6, %544 : vector<1x128xi32>
    %c8_i32_178 = arith.constant 8 : i32
    %546 = vector.broadcast %c8_i32_178 : i32 to vector<1x128xi32>
    %547 = arith.cmpi slt, %545, %546 : vector<1x128xi32>
    %548 = arith.andi %543, %547 : vector<1x128xi1>
    %c2_i32_179 = arith.constant 2 : i32
    %549 = vector.broadcast %c2_i32_179 : i32 to vector<1x128xi32>
    %550 = arith.addi %2, %549 : vector<1x128xi32>
    %c0_i32_180 = arith.constant 0 : i32
    %551 = vector.broadcast %c0_i32_180 : i32 to vector<1x128xi32>
    %552 = arith.cmpi sge, %550, %551 : vector<1x128xi32>
    %553 = arith.andi %548, %552 : vector<1x128xi1>
    %c2_i32_181 = arith.constant 2 : i32
    %554 = vector.broadcast %c2_i32_181 : i32 to vector<1x128xi32>
    %555 = arith.addi %2, %554 : vector<1x128xi32>
    %c8_i32_182 = arith.constant 8 : i32
    %556 = vector.broadcast %c8_i32_182 : i32 to vector<1x128xi32>
    %557 = arith.cmpi slt, %555, %556 : vector<1x128xi32>
    %558 = arith.andi %553, %557 : vector<1x128xi1>
    %c6_i32 = arith.constant 6 : i32
    %559 = tpu.dynamic_rotate %351 by %c6_i32 dim 1 : vector<8x128xf32>, i32 -> vector<8x128xf32>
    %cst_183 = arith.constant 0.000000e+00 : f32
    %560 = vector.shape_cast %558 : vector<1x128xi1> to vector<1x128xi1>
    %561 = vector.broadcast %560 : vector<1x128xi1> to vector<8x128xi1>
    %562 = vector.broadcast %cst_183 : f32 to vector<8x128xf32>
    %563 = arith.select %561, %559, %562 : vector<8x128xi1>, vector<8x128xf32>
    %c0_i32_184 = arith.constant 0 : i32
    %564 = vector.broadcast %c0_i32_184 : i32 to vector<1x128xi32>
    %565 = arith.addi %6, %564 : vector<1x128xi32>
    %c0_i32_185 = arith.constant 0 : i32
    %566 = vector.broadcast %c0_i32_185 : i32 to vector<1x128xi32>
    %567 = arith.cmpi sge, %565, %566 : vector<1x128xi32>
    %c0_i32_186 = arith.constant 0 : i32
    %568 = vector.broadcast %c0_i32_186 : i32 to vector<1x128xi32>
    %569 = arith.addi %6, %568 : vector<1x128xi32>
    %c8_i32_187 = arith.constant 8 : i32
    %570 = vector.broadcast %c8_i32_187 : i32 to vector<1x128xi32>
    %571 = arith.cmpi slt, %569, %570 : vector<1x128xi32>
    %572 = arith.andi %567, %571 : vector<1x128xi1>
    %c-2_i32_188 = arith.constant -2 : i32
    %573 = vector.broadcast %c-2_i32_188 : i32 to vector<1x128xi32>
    %574 = arith.addi %2, %573 : vector<1x128xi32>
    %c0_i32_189 = arith.constant 0 : i32
    %575 = vector.broadcast %c0_i32_189 : i32 to vector<1x128xi32>
    %576 = arith.cmpi sge, %574, %575 : vector<1x128xi32>
    %577 = arith.andi %572, %576 : vector<1x128xi1>
    %c-2_i32_190 = arith.constant -2 : i32
    %578 = vector.broadcast %c-2_i32_190 : i32 to vector<1x128xi32>
    %579 = arith.addi %2, %578 : vector<1x128xi32>
    %c8_i32_191 = arith.constant 8 : i32
    %580 = vector.broadcast %c8_i32_191 : i32 to vector<1x128xi32>
    %581 = arith.cmpi slt, %579, %580 : vector<1x128xi32>
    %582 = arith.andi %577, %581 : vector<1x128xi1>
    %c2_i32_192 = arith.constant 2 : i32
    %583 = tpu.dynamic_rotate %351 by %c2_i32_192 dim 1 : vector<8x128xf32>, i32 -> vector<8x128xf32>
    %cst_193 = arith.constant 0.000000e+00 : f32
    %584 = vector.shape_cast %582 : vector<1x128xi1> to vector<1x128xi1>
    %585 = vector.broadcast %584 : vector<1x128xi1> to vector<8x128xi1>
    %586 = vector.broadcast %cst_193 : f32 to vector<8x128xf32>
    %587 = arith.select %585, %583, %586 : vector<8x128xi1>, vector<8x128xf32>
    %c0_i32_194 = arith.constant 0 : i32
    %588 = vector.broadcast %c0_i32_194 : i32 to vector<1x128xi32>
    %589 = arith.addi %6, %588 : vector<1x128xi32>
    %c0_i32_195 = arith.constant 0 : i32
    %590 = vector.broadcast %c0_i32_195 : i32 to vector<1x128xi32>
    %591 = arith.cmpi sge, %589, %590 : vector<1x128xi32>
    %c0_i32_196 = arith.constant 0 : i32
    %592 = vector.broadcast %c0_i32_196 : i32 to vector<1x128xi32>
    %593 = arith.addi %6, %592 : vector<1x128xi32>
    %c8_i32_197 = arith.constant 8 : i32
    %594 = vector.broadcast %c8_i32_197 : i32 to vector<1x128xi32>
    %595 = arith.cmpi slt, %593, %594 : vector<1x128xi32>
    %596 = arith.andi %591, %595 : vector<1x128xi1>
    %c2_i32_198 = arith.constant 2 : i32
    %597 = vector.broadcast %c2_i32_198 : i32 to vector<1x128xi32>
    %598 = arith.addi %2, %597 : vector<1x128xi32>
    %c0_i32_199 = arith.constant 0 : i32
    %599 = vector.broadcast %c0_i32_199 : i32 to vector<1x128xi32>
    %600 = arith.cmpi sge, %598, %599 : vector<1x128xi32>
    %601 = arith.andi %596, %600 : vector<1x128xi1>
    %c2_i32_200 = arith.constant 2 : i32
    %602 = vector.broadcast %c2_i32_200 : i32 to vector<1x128xi32>
    %603 = arith.addi %2, %602 : vector<1x128xi32>
    %c8_i32_201 = arith.constant 8 : i32
    %604 = vector.broadcast %c8_i32_201 : i32 to vector<1x128xi32>
    %605 = arith.cmpi slt, %603, %604 : vector<1x128xi32>
    %606 = arith.andi %601, %605 : vector<1x128xi1>
    %c126_i32 = arith.constant 126 : i32
    %607 = tpu.dynamic_rotate %351 by %c126_i32 dim 1 : vector<8x128xf32>, i32 -> vector<8x128xf32>
    %cst_202 = arith.constant 0.000000e+00 : f32
    %608 = vector.shape_cast %606 : vector<1x128xi1> to vector<1x128xi1>
    %609 = vector.broadcast %608 : vector<1x128xi1> to vector<8x128xi1>
    %610 = vector.broadcast %cst_202 : f32 to vector<8x128xf32>
    %611 = arith.select %609, %607, %610 : vector<8x128xi1>, vector<8x128xf32>
    %c1_i32_203 = arith.constant 1 : i32
    %612 = vector.broadcast %c1_i32_203 : i32 to vector<1x128xi32>
    %613 = arith.addi %6, %612 : vector<1x128xi32>
    %c0_i32_204 = arith.constant 0 : i32
    %614 = vector.broadcast %c0_i32_204 : i32 to vector<1x128xi32>
    %615 = arith.cmpi sge, %613, %614 : vector<1x128xi32>
    %c1_i32_205 = arith.constant 1 : i32
    %616 = vector.broadcast %c1_i32_205 : i32 to vector<1x128xi32>
    %617 = arith.addi %6, %616 : vector<1x128xi32>
    %c8_i32_206 = arith.constant 8 : i32
    %618 = vector.broadcast %c8_i32_206 : i32 to vector<1x128xi32>
    %619 = arith.cmpi slt, %617, %618 : vector<1x128xi32>
    %620 = arith.andi %615, %619 : vector<1x128xi1>
    %c-2_i32_207 = arith.constant -2 : i32
    %621 = vector.broadcast %c-2_i32_207 : i32 to vector<1x128xi32>
    %622 = arith.addi %2, %621 : vector<1x128xi32>
    %c0_i32_208 = arith.constant 0 : i32
    %623 = vector.broadcast %c0_i32_208 : i32 to vector<1x128xi32>
    %624 = arith.cmpi sge, %622, %623 : vector<1x128xi32>
    %625 = arith.andi %620, %624 : vector<1x128xi1>
    %c-2_i32_209 = arith.constant -2 : i32
    %626 = vector.broadcast %c-2_i32_209 : i32 to vector<1x128xi32>
    %627 = arith.addi %2, %626 : vector<1x128xi32>
    %c8_i32_210 = arith.constant 8 : i32
    %628 = vector.broadcast %c8_i32_210 : i32 to vector<1x128xi32>
    %629 = arith.cmpi slt, %627, %628 : vector<1x128xi32>
    %630 = arith.andi %625, %629 : vector<1x128xi1>
    %c122_i32 = arith.constant 122 : i32
    %631 = tpu.dynamic_rotate %351 by %c122_i32 dim 1 : vector<8x128xf32>, i32 -> vector<8x128xf32>
    %cst_211 = arith.constant 0.000000e+00 : f32
    %632 = vector.shape_cast %630 : vector<1x128xi1> to vector<1x128xi1>
    %633 = vector.broadcast %632 : vector<1x128xi1> to vector<8x128xi1>
    %634 = vector.broadcast %cst_211 : f32 to vector<8x128xf32>
    %635 = arith.select %633, %631, %634 : vector<8x128xi1>, vector<8x128xf32>
    %c1_i32_212 = arith.constant 1 : i32
    %636 = vector.broadcast %c1_i32_212 : i32 to vector<1x128xi32>
    %637 = arith.addi %6, %636 : vector<1x128xi32>
    %c0_i32_213 = arith.constant 0 : i32
    %638 = vector.broadcast %c0_i32_213 : i32 to vector<1x128xi32>
    %639 = arith.cmpi sge, %637, %638 : vector<1x128xi32>
    %c1_i32_214 = arith.constant 1 : i32
    %640 = vector.broadcast %c1_i32_214 : i32 to vector<1x128xi32>
    %641 = arith.addi %6, %640 : vector<1x128xi32>
    %c8_i32_215 = arith.constant 8 : i32
    %642 = vector.broadcast %c8_i32_215 : i32 to vector<1x128xi32>
    %643 = arith.cmpi slt, %641, %642 : vector<1x128xi32>
    %644 = arith.andi %639, %643 : vector<1x128xi1>
    %c2_i32_216 = arith.constant 2 : i32
    %645 = vector.broadcast %c2_i32_216 : i32 to vector<1x128xi32>
    %646 = arith.addi %2, %645 : vector<1x128xi32>
    %c0_i32_217 = arith.constant 0 : i32
    %647 = vector.broadcast %c0_i32_217 : i32 to vector<1x128xi32>
    %648 = arith.cmpi sge, %646, %647 : vector<1x128xi32>
    %649 = arith.andi %644, %648 : vector<1x128xi1>
    %c2_i32_218 = arith.constant 2 : i32
    %650 = vector.broadcast %c2_i32_218 : i32 to vector<1x128xi32>
    %651 = arith.addi %2, %650 : vector<1x128xi32>
    %c8_i32_219 = arith.constant 8 : i32
    %652 = vector.broadcast %c8_i32_219 : i32 to vector<1x128xi32>
    %653 = arith.cmpi slt, %651, %652 : vector<1x128xi32>
    %654 = arith.andi %649, %653 : vector<1x128xi1>
    %c118_i32 = arith.constant 118 : i32
    %655 = tpu.dynamic_rotate %351 by %c118_i32 dim 1 : vector<8x128xf32>, i32 -> vector<8x128xf32>
    %cst_220 = arith.constant 0.000000e+00 : f32
    %656 = vector.shape_cast %654 : vector<1x128xi1> to vector<1x128xi1>
    %657 = vector.broadcast %656 : vector<1x128xi1> to vector<8x128xi1>
    %658 = vector.broadcast %cst_220 : f32 to vector<8x128xf32>
    %659 = arith.select %657, %655, %658 : vector<8x128xi1>, vector<8x128xf32>
    %c2_i32_221 = arith.constant 2 : i32
    %660 = vector.broadcast %c2_i32_221 : i32 to vector<1x128xi32>
    %661 = arith.addi %6, %660 : vector<1x128xi32>
    %c0_i32_222 = arith.constant 0 : i32
    %662 = vector.broadcast %c0_i32_222 : i32 to vector<1x128xi32>
    %663 = arith.cmpi sge, %661, %662 : vector<1x128xi32>
    %c2_i32_223 = arith.constant 2 : i32
    %664 = vector.broadcast %c2_i32_223 : i32 to vector<1x128xi32>
    %665 = arith.addi %6, %664 : vector<1x128xi32>
    %c8_i32_224 = arith.constant 8 : i32
    %666 = vector.broadcast %c8_i32_224 : i32 to vector<1x128xi32>
    %667 = arith.cmpi slt, %665, %666 : vector<1x128xi32>
    %668 = arith.andi %663, %667 : vector<1x128xi1>
    %c-2_i32_225 = arith.constant -2 : i32
    %669 = vector.broadcast %c-2_i32_225 : i32 to vector<1x128xi32>
    %670 = arith.addi %2, %669 : vector<1x128xi32>
    %c0_i32_226 = arith.constant 0 : i32
    %671 = vector.broadcast %c0_i32_226 : i32 to vector<1x128xi32>
    %672 = arith.cmpi sge, %670, %671 : vector<1x128xi32>
    %673 = arith.andi %668, %672 : vector<1x128xi1>
    %c-2_i32_227 = arith.constant -2 : i32
    %674 = vector.broadcast %c-2_i32_227 : i32 to vector<1x128xi32>
    %675 = arith.addi %2, %674 : vector<1x128xi32>
    %c8_i32_228 = arith.constant 8 : i32
    %676 = vector.broadcast %c8_i32_228 : i32 to vector<1x128xi32>
    %677 = arith.cmpi slt, %675, %676 : vector<1x128xi32>
    %678 = arith.andi %673, %677 : vector<1x128xi1>
    %c114_i32 = arith.constant 114 : i32
    %679 = tpu.dynamic_rotate %351 by %c114_i32 dim 1 : vector<8x128xf32>, i32 -> vector<8x128xf32>
    %cst_229 = arith.constant 0.000000e+00 : f32
    %680 = vector.shape_cast %678 : vector<1x128xi1> to vector<1x128xi1>
    %681 = vector.broadcast %680 : vector<1x128xi1> to vector<8x128xi1>
    %682 = vector.broadcast %cst_229 : f32 to vector<8x128xf32>
    %683 = arith.select %681, %679, %682 : vector<8x128xi1>, vector<8x128xf32>
    %c2_i32_230 = arith.constant 2 : i32
    %684 = vector.broadcast %c2_i32_230 : i32 to vector<1x128xi32>
    %685 = arith.addi %6, %684 : vector<1x128xi32>
    %c0_i32_231 = arith.constant 0 : i32
    %686 = vector.broadcast %c0_i32_231 : i32 to vector<1x128xi32>
    %687 = arith.cmpi sge, %685, %686 : vector<1x128xi32>
    %c2_i32_232 = arith.constant 2 : i32
    %688 = vector.broadcast %c2_i32_232 : i32 to vector<1x128xi32>
    %689 = arith.addi %6, %688 : vector<1x128xi32>
    %c8_i32_233 = arith.constant 8 : i32
    %690 = vector.broadcast %c8_i32_233 : i32 to vector<1x128xi32>
    %691 = arith.cmpi slt, %689, %690 : vector<1x128xi32>
    %692 = arith.andi %687, %691 : vector<1x128xi1>
    %c-1_i32_234 = arith.constant -1 : i32
    %693 = vector.broadcast %c-1_i32_234 : i32 to vector<1x128xi32>
    %694 = arith.addi %2, %693 : vector<1x128xi32>
    %c0_i32_235 = arith.constant 0 : i32
    %695 = vector.broadcast %c0_i32_235 : i32 to vector<1x128xi32>
    %696 = arith.cmpi sge, %694, %695 : vector<1x128xi32>
    %697 = arith.andi %692, %696 : vector<1x128xi1>
    %c-1_i32_236 = arith.constant -1 : i32
    %698 = vector.broadcast %c-1_i32_236 : i32 to vector<1x128xi32>
    %699 = arith.addi %2, %698 : vector<1x128xi32>
    %c8_i32_237 = arith.constant 8 : i32
    %700 = vector.broadcast %c8_i32_237 : i32 to vector<1x128xi32>
    %701 = arith.cmpi slt, %699, %700 : vector<1x128xi32>
    %702 = arith.andi %697, %701 : vector<1x128xi1>
    %c113_i32 = arith.constant 113 : i32
    %703 = tpu.dynamic_rotate %351 by %c113_i32 dim 1 : vector<8x128xf32>, i32 -> vector<8x128xf32>
    %cst_238 = arith.constant 0.000000e+00 : f32
    %704 = vector.shape_cast %702 : vector<1x128xi1> to vector<1x128xi1>
    %705 = vector.broadcast %704 : vector<1x128xi1> to vector<8x128xi1>
    %706 = vector.broadcast %cst_238 : f32 to vector<8x128xf32>
    %707 = arith.select %705, %703, %706 : vector<8x128xi1>, vector<8x128xf32>
    %c2_i32_239 = arith.constant 2 : i32
    %708 = vector.broadcast %c2_i32_239 : i32 to vector<1x128xi32>
    %709 = arith.addi %6, %708 : vector<1x128xi32>
    %c0_i32_240 = arith.constant 0 : i32
    %710 = vector.broadcast %c0_i32_240 : i32 to vector<1x128xi32>
    %711 = arith.cmpi sge, %709, %710 : vector<1x128xi32>
    %c2_i32_241 = arith.constant 2 : i32
    %712 = vector.broadcast %c2_i32_241 : i32 to vector<1x128xi32>
    %713 = arith.addi %6, %712 : vector<1x128xi32>
    %c8_i32_242 = arith.constant 8 : i32
    %714 = vector.broadcast %c8_i32_242 : i32 to vector<1x128xi32>
    %715 = arith.cmpi slt, %713, %714 : vector<1x128xi32>
    %716 = arith.andi %711, %715 : vector<1x128xi1>
    %c0_i32_243 = arith.constant 0 : i32
    %717 = vector.broadcast %c0_i32_243 : i32 to vector<1x128xi32>
    %718 = arith.addi %2, %717 : vector<1x128xi32>
    %c0_i32_244 = arith.constant 0 : i32
    %719 = vector.broadcast %c0_i32_244 : i32 to vector<1x128xi32>
    %720 = arith.cmpi sge, %718, %719 : vector<1x128xi32>
    %721 = arith.andi %716, %720 : vector<1x128xi1>
    %c0_i32_245 = arith.constant 0 : i32
    %722 = vector.broadcast %c0_i32_245 : i32 to vector<1x128xi32>
    %723 = arith.addi %2, %722 : vector<1x128xi32>
    %c8_i32_246 = arith.constant 8 : i32
    %724 = vector.broadcast %c8_i32_246 : i32 to vector<1x128xi32>
    %725 = arith.cmpi slt, %723, %724 : vector<1x128xi32>
    %726 = arith.andi %721, %725 : vector<1x128xi1>
    %c112_i32 = arith.constant 112 : i32
    %727 = tpu.dynamic_rotate %351 by %c112_i32 dim 1 : vector<8x128xf32>, i32 -> vector<8x128xf32>
    %cst_247 = arith.constant 0.000000e+00 : f32
    %728 = vector.shape_cast %726 : vector<1x128xi1> to vector<1x128xi1>
    %729 = vector.broadcast %728 : vector<1x128xi1> to vector<8x128xi1>
    %730 = vector.broadcast %cst_247 : f32 to vector<8x128xf32>
    %731 = arith.select %729, %727, %730 : vector<8x128xi1>, vector<8x128xf32>
    %c2_i32_248 = arith.constant 2 : i32
    %732 = vector.broadcast %c2_i32_248 : i32 to vector<1x128xi32>
    %733 = arith.addi %6, %732 : vector<1x128xi32>
    %c0_i32_249 = arith.constant 0 : i32
    %734 = vector.broadcast %c0_i32_249 : i32 to vector<1x128xi32>
    %735 = arith.cmpi sge, %733, %734 : vector<1x128xi32>
    %c2_i32_250 = arith.constant 2 : i32
    %736 = vector.broadcast %c2_i32_250 : i32 to vector<1x128xi32>
    %737 = arith.addi %6, %736 : vector<1x128xi32>
    %c8_i32_251 = arith.constant 8 : i32
    %738 = vector.broadcast %c8_i32_251 : i32 to vector<1x128xi32>
    %739 = arith.cmpi slt, %737, %738 : vector<1x128xi32>
    %740 = arith.andi %735, %739 : vector<1x128xi1>
    %c1_i32_252 = arith.constant 1 : i32
    %741 = vector.broadcast %c1_i32_252 : i32 to vector<1x128xi32>
    %742 = arith.addi %2, %741 : vector<1x128xi32>
    %c0_i32_253 = arith.constant 0 : i32
    %743 = vector.broadcast %c0_i32_253 : i32 to vector<1x128xi32>
    %744 = arith.cmpi sge, %742, %743 : vector<1x128xi32>
    %745 = arith.andi %740, %744 : vector<1x128xi1>
    %c1_i32_254 = arith.constant 1 : i32
    %746 = vector.broadcast %c1_i32_254 : i32 to vector<1x128xi32>
    %747 = arith.addi %2, %746 : vector<1x128xi32>
    %c8_i32_255 = arith.constant 8 : i32
    %748 = vector.broadcast %c8_i32_255 : i32 to vector<1x128xi32>
    %749 = arith.cmpi slt, %747, %748 : vector<1x128xi32>
    %750 = arith.andi %745, %749 : vector<1x128xi1>
    %c111_i32 = arith.constant 111 : i32
    %751 = tpu.dynamic_rotate %351 by %c111_i32 dim 1 : vector<8x128xf32>, i32 -> vector<8x128xf32>
    %cst_256 = arith.constant 0.000000e+00 : f32
    %752 = vector.shape_cast %750 : vector<1x128xi1> to vector<1x128xi1>
    %753 = vector.broadcast %752 : vector<1x128xi1> to vector<8x128xi1>
    %754 = vector.broadcast %cst_256 : f32 to vector<8x128xf32>
    %755 = arith.select %753, %751, %754 : vector<8x128xi1>, vector<8x128xf32>
    %c2_i32_257 = arith.constant 2 : i32
    %756 = vector.broadcast %c2_i32_257 : i32 to vector<1x128xi32>
    %757 = arith.addi %6, %756 : vector<1x128xi32>
    %c0_i32_258 = arith.constant 0 : i32
    %758 = vector.broadcast %c0_i32_258 : i32 to vector<1x128xi32>
    %759 = arith.cmpi sge, %757, %758 : vector<1x128xi32>
    %c2_i32_259 = arith.constant 2 : i32
    %760 = vector.broadcast %c2_i32_259 : i32 to vector<1x128xi32>
    %761 = arith.addi %6, %760 : vector<1x128xi32>
    %c8_i32_260 = arith.constant 8 : i32
    %762 = vector.broadcast %c8_i32_260 : i32 to vector<1x128xi32>
    %763 = arith.cmpi slt, %761, %762 : vector<1x128xi32>
    %764 = arith.andi %759, %763 : vector<1x128xi1>
    %c2_i32_261 = arith.constant 2 : i32
    %765 = vector.broadcast %c2_i32_261 : i32 to vector<1x128xi32>
    %766 = arith.addi %2, %765 : vector<1x128xi32>
    %c0_i32_262 = arith.constant 0 : i32
    %767 = vector.broadcast %c0_i32_262 : i32 to vector<1x128xi32>
    %768 = arith.cmpi sge, %766, %767 : vector<1x128xi32>
    %769 = arith.andi %764, %768 : vector<1x128xi1>
    %c2_i32_263 = arith.constant 2 : i32
    %770 = vector.broadcast %c2_i32_263 : i32 to vector<1x128xi32>
    %771 = arith.addi %2, %770 : vector<1x128xi32>
    %c8_i32_264 = arith.constant 8 : i32
    %772 = vector.broadcast %c8_i32_264 : i32 to vector<1x128xi32>
    %773 = arith.cmpi slt, %771, %772 : vector<1x128xi32>
    %774 = arith.andi %769, %773 : vector<1x128xi1>
    %c110_i32 = arith.constant 110 : i32
    %775 = tpu.dynamic_rotate %351 by %c110_i32 dim 1 : vector<8x128xf32>, i32 -> vector<8x128xf32>
    %cst_265 = arith.constant 0.000000e+00 : f32
    %776 = vector.shape_cast %774 : vector<1x128xi1> to vector<1x128xi1>
    %777 = vector.broadcast %776 : vector<1x128xi1> to vector<8x128xi1>
    %778 = vector.broadcast %cst_265 : f32 to vector<8x128xf32>
    %779 = arith.select %777, %775, %778 : vector<8x128xi1>, vector<8x128xf32>
    %c-4_i32 = arith.constant -4 : i32
    %780 = vector.broadcast %c-4_i32 : i32 to vector<1x128xi32>
    %781 = arith.addi %6, %780 : vector<1x128xi32>
    %c0_i32_266 = arith.constant 0 : i32
    %782 = vector.broadcast %c0_i32_266 : i32 to vector<1x128xi32>
    %783 = arith.cmpi sge, %781, %782 : vector<1x128xi32>
    %c-4_i32_267 = arith.constant -4 : i32
    %784 = vector.broadcast %c-4_i32_267 : i32 to vector<1x128xi32>
    %785 = arith.addi %6, %784 : vector<1x128xi32>
    %c8_i32_268 = arith.constant 8 : i32
    %786 = vector.broadcast %c8_i32_268 : i32 to vector<1x128xi32>
    %787 = arith.cmpi slt, %785, %786 : vector<1x128xi32>
    %788 = arith.andi %783, %787 : vector<1x128xi1>
    %c-4_i32_269 = arith.constant -4 : i32
    %789 = vector.broadcast %c-4_i32_269 : i32 to vector<1x128xi32>
    %790 = arith.addi %2, %789 : vector<1x128xi32>
    %c0_i32_270 = arith.constant 0 : i32
    %791 = vector.broadcast %c0_i32_270 : i32 to vector<1x128xi32>
    %792 = arith.cmpi sge, %790, %791 : vector<1x128xi32>
    %793 = arith.andi %788, %792 : vector<1x128xi1>
    %c-4_i32_271 = arith.constant -4 : i32
    %794 = vector.broadcast %c-4_i32_271 : i32 to vector<1x128xi32>
    %795 = arith.addi %2, %794 : vector<1x128xi32>
    %c8_i32_272 = arith.constant 8 : i32
    %796 = vector.broadcast %c8_i32_272 : i32 to vector<1x128xi32>
    %797 = arith.cmpi slt, %795, %796 : vector<1x128xi32>
    %798 = arith.andi %793, %797 : vector<1x128xi1>
    %c36_i32 = arith.constant 36 : i32
    %799 = tpu.dynamic_rotate %351 by %c36_i32 dim 1 : vector<8x128xf32>, i32 -> vector<8x128xf32>
    %cst_273 = arith.constant 0.000000e+00 : f32
    %800 = vector.shape_cast %798 : vector<1x128xi1> to vector<1x128xi1>
    %801 = vector.broadcast %800 : vector<1x128xi1> to vector<8x128xi1>
    %802 = vector.broadcast %cst_273 : f32 to vector<8x128xf32>
    %803 = arith.select %801, %799, %802 : vector<8x128xi1>, vector<8x128xf32>
    %c-4_i32_274 = arith.constant -4 : i32
    %804 = vector.broadcast %c-4_i32_274 : i32 to vector<1x128xi32>
    %805 = arith.addi %6, %804 : vector<1x128xi32>
    %c0_i32_275 = arith.constant 0 : i32
    %806 = vector.broadcast %c0_i32_275 : i32 to vector<1x128xi32>
    %807 = arith.cmpi sge, %805, %806 : vector<1x128xi32>
    %c-4_i32_276 = arith.constant -4 : i32
    %808 = vector.broadcast %c-4_i32_276 : i32 to vector<1x128xi32>
    %809 = arith.addi %6, %808 : vector<1x128xi32>
    %c8_i32_277 = arith.constant 8 : i32
    %810 = vector.broadcast %c8_i32_277 : i32 to vector<1x128xi32>
    %811 = arith.cmpi slt, %809, %810 : vector<1x128xi32>
    %812 = arith.andi %807, %811 : vector<1x128xi1>
    %c-2_i32_278 = arith.constant -2 : i32
    %813 = vector.broadcast %c-2_i32_278 : i32 to vector<1x128xi32>
    %814 = arith.addi %2, %813 : vector<1x128xi32>
    %c0_i32_279 = arith.constant 0 : i32
    %815 = vector.broadcast %c0_i32_279 : i32 to vector<1x128xi32>
    %816 = arith.cmpi sge, %814, %815 : vector<1x128xi32>
    %817 = arith.andi %812, %816 : vector<1x128xi1>
    %c-2_i32_280 = arith.constant -2 : i32
    %818 = vector.broadcast %c-2_i32_280 : i32 to vector<1x128xi32>
    %819 = arith.addi %2, %818 : vector<1x128xi32>
    %c8_i32_281 = arith.constant 8 : i32
    %820 = vector.broadcast %c8_i32_281 : i32 to vector<1x128xi32>
    %821 = arith.cmpi slt, %819, %820 : vector<1x128xi32>
    %822 = arith.andi %817, %821 : vector<1x128xi1>
    %c34_i32 = arith.constant 34 : i32
    %823 = tpu.dynamic_rotate %351 by %c34_i32 dim 1 : vector<8x128xf32>, i32 -> vector<8x128xf32>
    %cst_282 = arith.constant 0.000000e+00 : f32
    %824 = vector.shape_cast %822 : vector<1x128xi1> to vector<1x128xi1>
    %825 = vector.broadcast %824 : vector<1x128xi1> to vector<8x128xi1>
    %826 = vector.broadcast %cst_282 : f32 to vector<8x128xf32>
    %827 = arith.select %825, %823, %826 : vector<8x128xi1>, vector<8x128xf32>
    %c-4_i32_283 = arith.constant -4 : i32
    %828 = vector.broadcast %c-4_i32_283 : i32 to vector<1x128xi32>
    %829 = arith.addi %6, %828 : vector<1x128xi32>
    %c0_i32_284 = arith.constant 0 : i32
    %830 = vector.broadcast %c0_i32_284 : i32 to vector<1x128xi32>
    %831 = arith.cmpi sge, %829, %830 : vector<1x128xi32>
    %c-4_i32_285 = arith.constant -4 : i32
    %832 = vector.broadcast %c-4_i32_285 : i32 to vector<1x128xi32>
    %833 = arith.addi %6, %832 : vector<1x128xi32>
    %c8_i32_286 = arith.constant 8 : i32
    %834 = vector.broadcast %c8_i32_286 : i32 to vector<1x128xi32>
    %835 = arith.cmpi slt, %833, %834 : vector<1x128xi32>
    %836 = arith.andi %831, %835 : vector<1x128xi1>
    %c0_i32_287 = arith.constant 0 : i32
    %837 = vector.broadcast %c0_i32_287 : i32 to vector<1x128xi32>
    %838 = arith.addi %2, %837 : vector<1x128xi32>
    %c0_i32_288 = arith.constant 0 : i32
    %839 = vector.broadcast %c0_i32_288 : i32 to vector<1x128xi32>
    %840 = arith.cmpi sge, %838, %839 : vector<1x128xi32>
    %841 = arith.andi %836, %840 : vector<1x128xi1>
    %c0_i32_289 = arith.constant 0 : i32
    %842 = vector.broadcast %c0_i32_289 : i32 to vector<1x128xi32>
    %843 = arith.addi %2, %842 : vector<1x128xi32>
    %c8_i32_290 = arith.constant 8 : i32
    %844 = vector.broadcast %c8_i32_290 : i32 to vector<1x128xi32>
    %845 = arith.cmpi slt, %843, %844 : vector<1x128xi32>
    %846 = arith.andi %841, %845 : vector<1x128xi1>
    %c32_i32 = arith.constant 32 : i32
    %847 = tpu.dynamic_rotate %351 by %c32_i32 dim 1 : vector<8x128xf32>, i32 -> vector<8x128xf32>
    %cst_291 = arith.constant 0.000000e+00 : f32
    %848 = vector.shape_cast %846 : vector<1x128xi1> to vector<1x128xi1>
    %849 = vector.broadcast %848 : vector<1x128xi1> to vector<8x128xi1>
    %850 = vector.broadcast %cst_291 : f32 to vector<8x128xf32>
    %851 = arith.select %849, %847, %850 : vector<8x128xi1>, vector<8x128xf32>
    %c-4_i32_292 = arith.constant -4 : i32
    %852 = vector.broadcast %c-4_i32_292 : i32 to vector<1x128xi32>
    %853 = arith.addi %6, %852 : vector<1x128xi32>
    %c0_i32_293 = arith.constant 0 : i32
    %854 = vector.broadcast %c0_i32_293 : i32 to vector<1x128xi32>
    %855 = arith.cmpi sge, %853, %854 : vector<1x128xi32>
    %c-4_i32_294 = arith.constant -4 : i32
    %856 = vector.broadcast %c-4_i32_294 : i32 to vector<1x128xi32>
    %857 = arith.addi %6, %856 : vector<1x128xi32>
    %c8_i32_295 = arith.constant 8 : i32
    %858 = vector.broadcast %c8_i32_295 : i32 to vector<1x128xi32>
    %859 = arith.cmpi slt, %857, %858 : vector<1x128xi32>
    %860 = arith.andi %855, %859 : vector<1x128xi1>
    %c2_i32_296 = arith.constant 2 : i32
    %861 = vector.broadcast %c2_i32_296 : i32 to vector<1x128xi32>
    %862 = arith.addi %2, %861 : vector<1x128xi32>
    %c0_i32_297 = arith.constant 0 : i32
    %863 = vector.broadcast %c0_i32_297 : i32 to vector<1x128xi32>
    %864 = arith.cmpi sge, %862, %863 : vector<1x128xi32>
    %865 = arith.andi %860, %864 : vector<1x128xi1>
    %c2_i32_298 = arith.constant 2 : i32
    %866 = vector.broadcast %c2_i32_298 : i32 to vector<1x128xi32>
    %867 = arith.addi %2, %866 : vector<1x128xi32>
    %c8_i32_299 = arith.constant 8 : i32
    %868 = vector.broadcast %c8_i32_299 : i32 to vector<1x128xi32>
    %869 = arith.cmpi slt, %867, %868 : vector<1x128xi32>
    %870 = arith.andi %865, %869 : vector<1x128xi1>
    %c30_i32 = arith.constant 30 : i32
    %871 = tpu.dynamic_rotate %351 by %c30_i32 dim 1 : vector<8x128xf32>, i32 -> vector<8x128xf32>
    %cst_300 = arith.constant 0.000000e+00 : f32
    %872 = vector.shape_cast %870 : vector<1x128xi1> to vector<1x128xi1>
    %873 = vector.broadcast %872 : vector<1x128xi1> to vector<8x128xi1>
    %874 = vector.broadcast %cst_300 : f32 to vector<8x128xf32>
    %875 = arith.select %873, %871, %874 : vector<8x128xi1>, vector<8x128xf32>
    %c-4_i32_301 = arith.constant -4 : i32
    %876 = vector.broadcast %c-4_i32_301 : i32 to vector<1x128xi32>
    %877 = arith.addi %6, %876 : vector<1x128xi32>
    %c0_i32_302 = arith.constant 0 : i32
    %878 = vector.broadcast %c0_i32_302 : i32 to vector<1x128xi32>
    %879 = arith.cmpi sge, %877, %878 : vector<1x128xi32>
    %c-4_i32_303 = arith.constant -4 : i32
    %880 = vector.broadcast %c-4_i32_303 : i32 to vector<1x128xi32>
    %881 = arith.addi %6, %880 : vector<1x128xi32>
    %c8_i32_304 = arith.constant 8 : i32
    %882 = vector.broadcast %c8_i32_304 : i32 to vector<1x128xi32>
    %883 = arith.cmpi slt, %881, %882 : vector<1x128xi32>
    %884 = arith.andi %879, %883 : vector<1x128xi1>
    %c4_i32 = arith.constant 4 : i32
    %885 = vector.broadcast %c4_i32 : i32 to vector<1x128xi32>
    %886 = arith.addi %2, %885 : vector<1x128xi32>
    %c0_i32_305 = arith.constant 0 : i32
    %887 = vector.broadcast %c0_i32_305 : i32 to vector<1x128xi32>
    %888 = arith.cmpi sge, %886, %887 : vector<1x128xi32>
    %889 = arith.andi %884, %888 : vector<1x128xi1>
    %c4_i32_306 = arith.constant 4 : i32
    %890 = vector.broadcast %c4_i32_306 : i32 to vector<1x128xi32>
    %891 = arith.addi %2, %890 : vector<1x128xi32>
    %c8_i32_307 = arith.constant 8 : i32
    %892 = vector.broadcast %c8_i32_307 : i32 to vector<1x128xi32>
    %893 = arith.cmpi slt, %891, %892 : vector<1x128xi32>
    %894 = arith.andi %889, %893 : vector<1x128xi1>
    %c28_i32 = arith.constant 28 : i32
    %895 = tpu.dynamic_rotate %351 by %c28_i32 dim 1 : vector<8x128xf32>, i32 -> vector<8x128xf32>
    %cst_308 = arith.constant 0.000000e+00 : f32
    %896 = vector.shape_cast %894 : vector<1x128xi1> to vector<1x128xi1>
    %897 = vector.broadcast %896 : vector<1x128xi1> to vector<8x128xi1>
    %898 = vector.broadcast %cst_308 : f32 to vector<8x128xf32>
    %899 = arith.select %897, %895, %898 : vector<8x128xi1>, vector<8x128xf32>
    %c-2_i32_309 = arith.constant -2 : i32
    %900 = vector.broadcast %c-2_i32_309 : i32 to vector<1x128xi32>
    %901 = arith.addi %6, %900 : vector<1x128xi32>
    %c0_i32_310 = arith.constant 0 : i32
    %902 = vector.broadcast %c0_i32_310 : i32 to vector<1x128xi32>
    %903 = arith.cmpi sge, %901, %902 : vector<1x128xi32>
    %c-2_i32_311 = arith.constant -2 : i32
    %904 = vector.broadcast %c-2_i32_311 : i32 to vector<1x128xi32>
    %905 = arith.addi %6, %904 : vector<1x128xi32>
    %c8_i32_312 = arith.constant 8 : i32
    %906 = vector.broadcast %c8_i32_312 : i32 to vector<1x128xi32>
    %907 = arith.cmpi slt, %905, %906 : vector<1x128xi32>
    %908 = arith.andi %903, %907 : vector<1x128xi1>
    %c-4_i32_313 = arith.constant -4 : i32
    %909 = vector.broadcast %c-4_i32_313 : i32 to vector<1x128xi32>
    %910 = arith.addi %2, %909 : vector<1x128xi32>
    %c0_i32_314 = arith.constant 0 : i32
    %911 = vector.broadcast %c0_i32_314 : i32 to vector<1x128xi32>
    %912 = arith.cmpi sge, %910, %911 : vector<1x128xi32>
    %913 = arith.andi %908, %912 : vector<1x128xi1>
    %c-4_i32_315 = arith.constant -4 : i32
    %914 = vector.broadcast %c-4_i32_315 : i32 to vector<1x128xi32>
    %915 = arith.addi %2, %914 : vector<1x128xi32>
    %c8_i32_316 = arith.constant 8 : i32
    %916 = vector.broadcast %c8_i32_316 : i32 to vector<1x128xi32>
    %917 = arith.cmpi slt, %915, %916 : vector<1x128xi32>
    %918 = arith.andi %913, %917 : vector<1x128xi1>
    %c20_i32 = arith.constant 20 : i32
    %919 = tpu.dynamic_rotate %351 by %c20_i32 dim 1 : vector<8x128xf32>, i32 -> vector<8x128xf32>
    %cst_317 = arith.constant 0.000000e+00 : f32
    %920 = vector.shape_cast %918 : vector<1x128xi1> to vector<1x128xi1>
    %921 = vector.broadcast %920 : vector<1x128xi1> to vector<8x128xi1>
    %922 = vector.broadcast %cst_317 : f32 to vector<8x128xf32>
    %923 = arith.select %921, %919, %922 : vector<8x128xi1>, vector<8x128xf32>
    %c-2_i32_318 = arith.constant -2 : i32
    %924 = vector.broadcast %c-2_i32_318 : i32 to vector<1x128xi32>
    %925 = arith.addi %6, %924 : vector<1x128xi32>
    %c0_i32_319 = arith.constant 0 : i32
    %926 = vector.broadcast %c0_i32_319 : i32 to vector<1x128xi32>
    %927 = arith.cmpi sge, %925, %926 : vector<1x128xi32>
    %c-2_i32_320 = arith.constant -2 : i32
    %928 = vector.broadcast %c-2_i32_320 : i32 to vector<1x128xi32>
    %929 = arith.addi %6, %928 : vector<1x128xi32>
    %c8_i32_321 = arith.constant 8 : i32
    %930 = vector.broadcast %c8_i32_321 : i32 to vector<1x128xi32>
    %931 = arith.cmpi slt, %929, %930 : vector<1x128xi32>
    %932 = arith.andi %927, %931 : vector<1x128xi1>
    %c4_i32_322 = arith.constant 4 : i32
    %933 = vector.broadcast %c4_i32_322 : i32 to vector<1x128xi32>
    %934 = arith.addi %2, %933 : vector<1x128xi32>
    %c0_i32_323 = arith.constant 0 : i32
    %935 = vector.broadcast %c0_i32_323 : i32 to vector<1x128xi32>
    %936 = arith.cmpi sge, %934, %935 : vector<1x128xi32>
    %937 = arith.andi %932, %936 : vector<1x128xi1>
    %c4_i32_324 = arith.constant 4 : i32
    %938 = vector.broadcast %c4_i32_324 : i32 to vector<1x128xi32>
    %939 = arith.addi %2, %938 : vector<1x128xi32>
    %c8_i32_325 = arith.constant 8 : i32
    %940 = vector.broadcast %c8_i32_325 : i32 to vector<1x128xi32>
    %941 = arith.cmpi slt, %939, %940 : vector<1x128xi32>
    %942 = arith.andi %937, %941 : vector<1x128xi1>
    %c12_i32 = arith.constant 12 : i32
    %943 = tpu.dynamic_rotate %351 by %c12_i32 dim 1 : vector<8x128xf32>, i32 -> vector<8x128xf32>
    %cst_326 = arith.constant 0.000000e+00 : f32
    %944 = vector.shape_cast %942 : vector<1x128xi1> to vector<1x128xi1>
    %945 = vector.broadcast %944 : vector<1x128xi1> to vector<8x128xi1>
    %946 = vector.broadcast %cst_326 : f32 to vector<8x128xf32>
    %947 = arith.select %945, %943, %946 : vector<8x128xi1>, vector<8x128xf32>
    %c0_i32_327 = arith.constant 0 : i32
    %948 = vector.broadcast %c0_i32_327 : i32 to vector<1x128xi32>
    %949 = arith.addi %6, %948 : vector<1x128xi32>
    %c0_i32_328 = arith.constant 0 : i32
    %950 = vector.broadcast %c0_i32_328 : i32 to vector<1x128xi32>
    %951 = arith.cmpi sge, %949, %950 : vector<1x128xi32>
    %c0_i32_329 = arith.constant 0 : i32
    %952 = vector.broadcast %c0_i32_329 : i32 to vector<1x128xi32>
    %953 = arith.addi %6, %952 : vector<1x128xi32>
    %c8_i32_330 = arith.constant 8 : i32
    %954 = vector.broadcast %c8_i32_330 : i32 to vector<1x128xi32>
    %955 = arith.cmpi slt, %953, %954 : vector<1x128xi32>
    %956 = arith.andi %951, %955 : vector<1x128xi1>
    %c-4_i32_331 = arith.constant -4 : i32
    %957 = vector.broadcast %c-4_i32_331 : i32 to vector<1x128xi32>
    %958 = arith.addi %2, %957 : vector<1x128xi32>
    %c0_i32_332 = arith.constant 0 : i32
    %959 = vector.broadcast %c0_i32_332 : i32 to vector<1x128xi32>
    %960 = arith.cmpi sge, %958, %959 : vector<1x128xi32>
    %961 = arith.andi %956, %960 : vector<1x128xi1>
    %c-4_i32_333 = arith.constant -4 : i32
    %962 = vector.broadcast %c-4_i32_333 : i32 to vector<1x128xi32>
    %963 = arith.addi %2, %962 : vector<1x128xi32>
    %c8_i32_334 = arith.constant 8 : i32
    %964 = vector.broadcast %c8_i32_334 : i32 to vector<1x128xi32>
    %965 = arith.cmpi slt, %963, %964 : vector<1x128xi32>
    %966 = arith.andi %961, %965 : vector<1x128xi1>
    %c4_i32_335 = arith.constant 4 : i32
    %967 = tpu.dynamic_rotate %351 by %c4_i32_335 dim 1 : vector<8x128xf32>, i32 -> vector<8x128xf32>
    %cst_336 = arith.constant 0.000000e+00 : f32
    %968 = vector.shape_cast %966 : vector<1x128xi1> to vector<1x128xi1>
    %969 = vector.broadcast %968 : vector<1x128xi1> to vector<8x128xi1>
    %970 = vector.broadcast %cst_336 : f32 to vector<8x128xf32>
    %971 = arith.select %969, %967, %970 : vector<8x128xi1>, vector<8x128xf32>
    %c0_i32_337 = arith.constant 0 : i32
    %972 = vector.broadcast %c0_i32_337 : i32 to vector<1x128xi32>
    %973 = arith.addi %6, %972 : vector<1x128xi32>
    %c0_i32_338 = arith.constant 0 : i32
    %974 = vector.broadcast %c0_i32_338 : i32 to vector<1x128xi32>
    %975 = arith.cmpi sge, %973, %974 : vector<1x128xi32>
    %c0_i32_339 = arith.constant 0 : i32
    %976 = vector.broadcast %c0_i32_339 : i32 to vector<1x128xi32>
    %977 = arith.addi %6, %976 : vector<1x128xi32>
    %c8_i32_340 = arith.constant 8 : i32
    %978 = vector.broadcast %c8_i32_340 : i32 to vector<1x128xi32>
    %979 = arith.cmpi slt, %977, %978 : vector<1x128xi32>
    %980 = arith.andi %975, %979 : vector<1x128xi1>
    %c4_i32_341 = arith.constant 4 : i32
    %981 = vector.broadcast %c4_i32_341 : i32 to vector<1x128xi32>
    %982 = arith.addi %2, %981 : vector<1x128xi32>
    %c0_i32_342 = arith.constant 0 : i32
    %983 = vector.broadcast %c0_i32_342 : i32 to vector<1x128xi32>
    %984 = arith.cmpi sge, %982, %983 : vector<1x128xi32>
    %985 = arith.andi %980, %984 : vector<1x128xi1>
    %c4_i32_343 = arith.constant 4 : i32
    %986 = vector.broadcast %c4_i32_343 : i32 to vector<1x128xi32>
    %987 = arith.addi %2, %986 : vector<1x128xi32>
    %c8_i32_344 = arith.constant 8 : i32
    %988 = vector.broadcast %c8_i32_344 : i32 to vector<1x128xi32>
    %989 = arith.cmpi slt, %987, %988 : vector<1x128xi32>
    %990 = arith.andi %985, %989 : vector<1x128xi1>
    %c124_i32 = arith.constant 124 : i32
    %991 = tpu.dynamic_rotate %351 by %c124_i32 dim 1 : vector<8x128xf32>, i32 -> vector<8x128xf32>
    %cst_345 = arith.constant 0.000000e+00 : f32
    %992 = vector.shape_cast %990 : vector<1x128xi1> to vector<1x128xi1>
    %993 = vector.broadcast %992 : vector<1x128xi1> to vector<8x128xi1>
    %994 = vector.broadcast %cst_345 : f32 to vector<8x128xf32>
    %995 = arith.select %993, %991, %994 : vector<8x128xi1>, vector<8x128xf32>
    %c2_i32_346 = arith.constant 2 : i32
    %996 = vector.broadcast %c2_i32_346 : i32 to vector<1x128xi32>
    %997 = arith.addi %6, %996 : vector<1x128xi32>
    %c0_i32_347 = arith.constant 0 : i32
    %998 = vector.broadcast %c0_i32_347 : i32 to vector<1x128xi32>
    %999 = arith.cmpi sge, %997, %998 : vector<1x128xi32>
    %c2_i32_348 = arith.constant 2 : i32
    %1000 = vector.broadcast %c2_i32_348 : i32 to vector<1x128xi32>
    %1001 = arith.addi %6, %1000 : vector<1x128xi32>
    %c8_i32_349 = arith.constant 8 : i32
    %1002 = vector.broadcast %c8_i32_349 : i32 to vector<1x128xi32>
    %1003 = arith.cmpi slt, %1001, %1002 : vector<1x128xi32>
    %1004 = arith.andi %999, %1003 : vector<1x128xi1>
    %c-4_i32_350 = arith.constant -4 : i32
    %1005 = vector.broadcast %c-4_i32_350 : i32 to vector<1x128xi32>
    %1006 = arith.addi %2, %1005 : vector<1x128xi32>
    %c0_i32_351 = arith.constant 0 : i32
    %1007 = vector.broadcast %c0_i32_351 : i32 to vector<1x128xi32>
    %1008 = arith.cmpi sge, %1006, %1007 : vector<1x128xi32>
    %1009 = arith.andi %1004, %1008 : vector<1x128xi1>
    %c-4_i32_352 = arith.constant -4 : i32
    %1010 = vector.broadcast %c-4_i32_352 : i32 to vector<1x128xi32>
    %1011 = arith.addi %2, %1010 : vector<1x128xi32>
    %c8_i32_353 = arith.constant 8 : i32
    %1012 = vector.broadcast %c8_i32_353 : i32 to vector<1x128xi32>
    %1013 = arith.cmpi slt, %1011, %1012 : vector<1x128xi32>
    %1014 = arith.andi %1009, %1013 : vector<1x128xi1>
    %c116_i32 = arith.constant 116 : i32
    %1015 = tpu.dynamic_rotate %351 by %c116_i32 dim 1 : vector<8x128xf32>, i32 -> vector<8x128xf32>
    %cst_354 = arith.constant 0.000000e+00 : f32
    %1016 = vector.shape_cast %1014 : vector<1x128xi1> to vector<1x128xi1>
    %1017 = vector.broadcast %1016 : vector<1x128xi1> to vector<8x128xi1>
    %1018 = vector.broadcast %cst_354 : f32 to vector<8x128xf32>
    %1019 = arith.select %1017, %1015, %1018 : vector<8x128xi1>, vector<8x128xf32>
    %c2_i32_355 = arith.constant 2 : i32
    %1020 = vector.broadcast %c2_i32_355 : i32 to vector<1x128xi32>
    %1021 = arith.addi %6, %1020 : vector<1x128xi32>
    %c0_i32_356 = arith.constant 0 : i32
    %1022 = vector.broadcast %c0_i32_356 : i32 to vector<1x128xi32>
    %1023 = arith.cmpi sge, %1021, %1022 : vector<1x128xi32>
    %c2_i32_357 = arith.constant 2 : i32
    %1024 = vector.broadcast %c2_i32_357 : i32 to vector<1x128xi32>
    %1025 = arith.addi %6, %1024 : vector<1x128xi32>
    %c8_i32_358 = arith.constant 8 : i32
    %1026 = vector.broadcast %c8_i32_358 : i32 to vector<1x128xi32>
    %1027 = arith.cmpi slt, %1025, %1026 : vector<1x128xi32>
    %1028 = arith.andi %1023, %1027 : vector<1x128xi1>
    %c4_i32_359 = arith.constant 4 : i32
    %1029 = vector.broadcast %c4_i32_359 : i32 to vector<1x128xi32>
    %1030 = arith.addi %2, %1029 : vector<1x128xi32>
    %c0_i32_360 = arith.constant 0 : i32
    %1031 = vector.broadcast %c0_i32_360 : i32 to vector<1x128xi32>
    %1032 = arith.cmpi sge, %1030, %1031 : vector<1x128xi32>
    %1033 = arith.andi %1028, %1032 : vector<1x128xi1>
    %c4_i32_361 = arith.constant 4 : i32
    %1034 = vector.broadcast %c4_i32_361 : i32 to vector<1x128xi32>
    %1035 = arith.addi %2, %1034 : vector<1x128xi32>
    %c8_i32_362 = arith.constant 8 : i32
    %1036 = vector.broadcast %c8_i32_362 : i32 to vector<1x128xi32>
    %1037 = arith.cmpi slt, %1035, %1036 : vector<1x128xi32>
    %1038 = arith.andi %1033, %1037 : vector<1x128xi1>
    %c108_i32 = arith.constant 108 : i32
    %1039 = tpu.dynamic_rotate %351 by %c108_i32 dim 1 : vector<8x128xf32>, i32 -> vector<8x128xf32>
    %cst_363 = arith.constant 0.000000e+00 : f32
    %1040 = vector.shape_cast %1038 : vector<1x128xi1> to vector<1x128xi1>
    %1041 = vector.broadcast %1040 : vector<1x128xi1> to vector<8x128xi1>
    %1042 = vector.broadcast %cst_363 : f32 to vector<8x128xf32>
    %1043 = arith.select %1041, %1039, %1042 : vector<8x128xi1>, vector<8x128xf32>
    %c4_i32_364 = arith.constant 4 : i32
    %1044 = vector.broadcast %c4_i32_364 : i32 to vector<1x128xi32>
    %1045 = arith.addi %6, %1044 : vector<1x128xi32>
    %c0_i32_365 = arith.constant 0 : i32
    %1046 = vector.broadcast %c0_i32_365 : i32 to vector<1x128xi32>
    %1047 = arith.cmpi sge, %1045, %1046 : vector<1x128xi32>
    %c4_i32_366 = arith.constant 4 : i32
    %1048 = vector.broadcast %c4_i32_366 : i32 to vector<1x128xi32>
    %1049 = arith.addi %6, %1048 : vector<1x128xi32>
    %c8_i32_367 = arith.constant 8 : i32
    %1050 = vector.broadcast %c8_i32_367 : i32 to vector<1x128xi32>
    %1051 = arith.cmpi slt, %1049, %1050 : vector<1x128xi32>
    %1052 = arith.andi %1047, %1051 : vector<1x128xi1>
    %c-4_i32_368 = arith.constant -4 : i32
    %1053 = vector.broadcast %c-4_i32_368 : i32 to vector<1x128xi32>
    %1054 = arith.addi %2, %1053 : vector<1x128xi32>
    %c0_i32_369 = arith.constant 0 : i32
    %1055 = vector.broadcast %c0_i32_369 : i32 to vector<1x128xi32>
    %1056 = arith.cmpi sge, %1054, %1055 : vector<1x128xi32>
    %1057 = arith.andi %1052, %1056 : vector<1x128xi1>
    %c-4_i32_370 = arith.constant -4 : i32
    %1058 = vector.broadcast %c-4_i32_370 : i32 to vector<1x128xi32>
    %1059 = arith.addi %2, %1058 : vector<1x128xi32>
    %c8_i32_371 = arith.constant 8 : i32
    %1060 = vector.broadcast %c8_i32_371 : i32 to vector<1x128xi32>
    %1061 = arith.cmpi slt, %1059, %1060 : vector<1x128xi32>
    %1062 = arith.andi %1057, %1061 : vector<1x128xi1>
    %c100_i32 = arith.constant 100 : i32
    %1063 = tpu.dynamic_rotate %351 by %c100_i32 dim 1 : vector<8x128xf32>, i32 -> vector<8x128xf32>
    %cst_372 = arith.constant 0.000000e+00 : f32
    %1064 = vector.shape_cast %1062 : vector<1x128xi1> to vector<1x128xi1>
    %1065 = vector.broadcast %1064 : vector<1x128xi1> to vector<8x128xi1>
    %1066 = vector.broadcast %cst_372 : f32 to vector<8x128xf32>
    %1067 = arith.select %1065, %1063, %1066 : vector<8x128xi1>, vector<8x128xf32>
    %c4_i32_373 = arith.constant 4 : i32
    %1068 = vector.broadcast %c4_i32_373 : i32 to vector<1x128xi32>
    %1069 = arith.addi %6, %1068 : vector<1x128xi32>
    %c0_i32_374 = arith.constant 0 : i32
    %1070 = vector.broadcast %c0_i32_374 : i32 to vector<1x128xi32>
    %1071 = arith.cmpi sge, %1069, %1070 : vector<1x128xi32>
    %c4_i32_375 = arith.constant 4 : i32
    %1072 = vector.broadcast %c4_i32_375 : i32 to vector<1x128xi32>
    %1073 = arith.addi %6, %1072 : vector<1x128xi32>
    %c8_i32_376 = arith.constant 8 : i32
    %1074 = vector.broadcast %c8_i32_376 : i32 to vector<1x128xi32>
    %1075 = arith.cmpi slt, %1073, %1074 : vector<1x128xi32>
    %1076 = arith.andi %1071, %1075 : vector<1x128xi1>
    %c-2_i32_377 = arith.constant -2 : i32
    %1077 = vector.broadcast %c-2_i32_377 : i32 to vector<1x128xi32>
    %1078 = arith.addi %2, %1077 : vector<1x128xi32>
    %c0_i32_378 = arith.constant 0 : i32
    %1079 = vector.broadcast %c0_i32_378 : i32 to vector<1x128xi32>
    %1080 = arith.cmpi sge, %1078, %1079 : vector<1x128xi32>
    %1081 = arith.andi %1076, %1080 : vector<1x128xi1>
    %c-2_i32_379 = arith.constant -2 : i32
    %1082 = vector.broadcast %c-2_i32_379 : i32 to vector<1x128xi32>
    %1083 = arith.addi %2, %1082 : vector<1x128xi32>
    %c8_i32_380 = arith.constant 8 : i32
    %1084 = vector.broadcast %c8_i32_380 : i32 to vector<1x128xi32>
    %1085 = arith.cmpi slt, %1083, %1084 : vector<1x128xi32>
    %1086 = arith.andi %1081, %1085 : vector<1x128xi1>
    %c98_i32 = arith.constant 98 : i32
    %1087 = tpu.dynamic_rotate %351 by %c98_i32 dim 1 : vector<8x128xf32>, i32 -> vector<8x128xf32>
    %cst_381 = arith.constant 0.000000e+00 : f32
    %1088 = vector.shape_cast %1086 : vector<1x128xi1> to vector<1x128xi1>
    %1089 = vector.broadcast %1088 : vector<1x128xi1> to vector<8x128xi1>
    %1090 = vector.broadcast %cst_381 : f32 to vector<8x128xf32>
    %1091 = arith.select %1089, %1087, %1090 : vector<8x128xi1>, vector<8x128xf32>
    %c4_i32_382 = arith.constant 4 : i32
    %1092 = vector.broadcast %c4_i32_382 : i32 to vector<1x128xi32>
    %1093 = arith.addi %6, %1092 : vector<1x128xi32>
    %c0_i32_383 = arith.constant 0 : i32
    %1094 = vector.broadcast %c0_i32_383 : i32 to vector<1x128xi32>
    %1095 = arith.cmpi sge, %1093, %1094 : vector<1x128xi32>
    %c4_i32_384 = arith.constant 4 : i32
    %1096 = vector.broadcast %c4_i32_384 : i32 to vector<1x128xi32>
    %1097 = arith.addi %6, %1096 : vector<1x128xi32>
    %c8_i32_385 = arith.constant 8 : i32
    %1098 = vector.broadcast %c8_i32_385 : i32 to vector<1x128xi32>
    %1099 = arith.cmpi slt, %1097, %1098 : vector<1x128xi32>
    %1100 = arith.andi %1095, %1099 : vector<1x128xi1>
    %c0_i32_386 = arith.constant 0 : i32
    %1101 = vector.broadcast %c0_i32_386 : i32 to vector<1x128xi32>
    %1102 = arith.addi %2, %1101 : vector<1x128xi32>
    %c0_i32_387 = arith.constant 0 : i32
    %1103 = vector.broadcast %c0_i32_387 : i32 to vector<1x128xi32>
    %1104 = arith.cmpi sge, %1102, %1103 : vector<1x128xi32>
    %1105 = arith.andi %1100, %1104 : vector<1x128xi1>
    %c0_i32_388 = arith.constant 0 : i32
    %1106 = vector.broadcast %c0_i32_388 : i32 to vector<1x128xi32>
    %1107 = arith.addi %2, %1106 : vector<1x128xi32>
    %c8_i32_389 = arith.constant 8 : i32
    %1108 = vector.broadcast %c8_i32_389 : i32 to vector<1x128xi32>
    %1109 = arith.cmpi slt, %1107, %1108 : vector<1x128xi32>
    %1110 = arith.andi %1105, %1109 : vector<1x128xi1>
    %c96_i32 = arith.constant 96 : i32
    %1111 = tpu.dynamic_rotate %351 by %c96_i32 dim 1 : vector<8x128xf32>, i32 -> vector<8x128xf32>
    %cst_390 = arith.constant 0.000000e+00 : f32
    %1112 = vector.shape_cast %1110 : vector<1x128xi1> to vector<1x128xi1>
    %1113 = vector.broadcast %1112 : vector<1x128xi1> to vector<8x128xi1>
    %1114 = vector.broadcast %cst_390 : f32 to vector<8x128xf32>
    %1115 = arith.select %1113, %1111, %1114 : vector<8x128xi1>, vector<8x128xf32>
    %c4_i32_391 = arith.constant 4 : i32
    %1116 = vector.broadcast %c4_i32_391 : i32 to vector<1x128xi32>
    %1117 = arith.addi %6, %1116 : vector<1x128xi32>
    %c0_i32_392 = arith.constant 0 : i32
    %1118 = vector.broadcast %c0_i32_392 : i32 to vector<1x128xi32>
    %1119 = arith.cmpi sge, %1117, %1118 : vector<1x128xi32>
    %c4_i32_393 = arith.constant 4 : i32
    %1120 = vector.broadcast %c4_i32_393 : i32 to vector<1x128xi32>
    %1121 = arith.addi %6, %1120 : vector<1x128xi32>
    %c8_i32_394 = arith.constant 8 : i32
    %1122 = vector.broadcast %c8_i32_394 : i32 to vector<1x128xi32>
    %1123 = arith.cmpi slt, %1121, %1122 : vector<1x128xi32>
    %1124 = arith.andi %1119, %1123 : vector<1x128xi1>
    %c2_i32_395 = arith.constant 2 : i32
    %1125 = vector.broadcast %c2_i32_395 : i32 to vector<1x128xi32>
    %1126 = arith.addi %2, %1125 : vector<1x128xi32>
    %c0_i32_396 = arith.constant 0 : i32
    %1127 = vector.broadcast %c0_i32_396 : i32 to vector<1x128xi32>
    %1128 = arith.cmpi sge, %1126, %1127 : vector<1x128xi32>
    %1129 = arith.andi %1124, %1128 : vector<1x128xi1>
    %c2_i32_397 = arith.constant 2 : i32
    %1130 = vector.broadcast %c2_i32_397 : i32 to vector<1x128xi32>
    %1131 = arith.addi %2, %1130 : vector<1x128xi32>
    %c8_i32_398 = arith.constant 8 : i32
    %1132 = vector.broadcast %c8_i32_398 : i32 to vector<1x128xi32>
    %1133 = arith.cmpi slt, %1131, %1132 : vector<1x128xi32>
    %1134 = arith.andi %1129, %1133 : vector<1x128xi1>
    %c94_i32 = arith.constant 94 : i32
    %1135 = tpu.dynamic_rotate %351 by %c94_i32 dim 1 : vector<8x128xf32>, i32 -> vector<8x128xf32>
    %cst_399 = arith.constant 0.000000e+00 : f32
    %1136 = vector.shape_cast %1134 : vector<1x128xi1> to vector<1x128xi1>
    %1137 = vector.broadcast %1136 : vector<1x128xi1> to vector<8x128xi1>
    %1138 = vector.broadcast %cst_399 : f32 to vector<8x128xf32>
    %1139 = arith.select %1137, %1135, %1138 : vector<8x128xi1>, vector<8x128xf32>
    %c4_i32_400 = arith.constant 4 : i32
    %1140 = vector.broadcast %c4_i32_400 : i32 to vector<1x128xi32>
    %1141 = arith.addi %6, %1140 : vector<1x128xi32>
    %c0_i32_401 = arith.constant 0 : i32
    %1142 = vector.broadcast %c0_i32_401 : i32 to vector<1x128xi32>
    %1143 = arith.cmpi sge, %1141, %1142 : vector<1x128xi32>
    %c4_i32_402 = arith.constant 4 : i32
    %1144 = vector.broadcast %c4_i32_402 : i32 to vector<1x128xi32>
    %1145 = arith.addi %6, %1144 : vector<1x128xi32>
    %c8_i32_403 = arith.constant 8 : i32
    %1146 = vector.broadcast %c8_i32_403 : i32 to vector<1x128xi32>
    %1147 = arith.cmpi slt, %1145, %1146 : vector<1x128xi32>
    %1148 = arith.andi %1143, %1147 : vector<1x128xi1>
    %c4_i32_404 = arith.constant 4 : i32
    %1149 = vector.broadcast %c4_i32_404 : i32 to vector<1x128xi32>
    %1150 = arith.addi %2, %1149 : vector<1x128xi32>
    %c0_i32_405 = arith.constant 0 : i32
    %1151 = vector.broadcast %c0_i32_405 : i32 to vector<1x128xi32>
    %1152 = arith.cmpi sge, %1150, %1151 : vector<1x128xi32>
    %1153 = arith.andi %1148, %1152 : vector<1x128xi1>
    %c4_i32_406 = arith.constant 4 : i32
    %1154 = vector.broadcast %c4_i32_406 : i32 to vector<1x128xi32>
    %1155 = arith.addi %2, %1154 : vector<1x128xi32>
    %c8_i32_407 = arith.constant 8 : i32
    %1156 = vector.broadcast %c8_i32_407 : i32 to vector<1x128xi32>
    %1157 = arith.cmpi slt, %1155, %1156 : vector<1x128xi32>
    %1158 = arith.andi %1153, %1157 : vector<1x128xi1>
    %c92_i32 = arith.constant 92 : i32
    %1159 = tpu.dynamic_rotate %351 by %c92_i32 dim 1 : vector<8x128xf32>, i32 -> vector<8x128xf32>
    %cst_408 = arith.constant 0.000000e+00 : f32
    %1160 = vector.shape_cast %1158 : vector<1x128xi1> to vector<1x128xi1>
    %1161 = vector.broadcast %1160 : vector<1x128xi1> to vector<8x128xi1>
    %1162 = vector.broadcast %cst_408 : f32 to vector<8x128xf32>
    %1163 = arith.select %1161, %1159, %1162 : vector<8x128xi1>, vector<8x128xf32>
    %c0_409 = arith.constant 0 : index
    %c0_410 = arith.constant 0 : index
    %c0_411 = arith.constant 0 : index
    %1164 = vector.load %arg8[%c0_409, %c0_410, %c0_411] : memref<1x8x68xf32, #tpu.memory_space<vmem>>, vector<1x8x68xf32>
    %1165 = vector.shape_cast %1164 : vector<1x8x68xf32> to vector<8x68xf32>
    %cst_412 = arith.constant 0.000000e+00 : f32
    %1166 = vector.broadcast %cst_412 : f32 to vector<8x128xf32>
    %1167 = vector.extract_strided_slice %1165 {offsets = [0, 0], sizes = [8, 1], strides = [1, 1]} : vector<8x68xf32> to vector<8x1xf32>
    %1168 = vector.broadcast %1167 : vector<8x1xf32> to vector<8x128xf32>
    %1169 = arith.mulf %356, %1168 : vector<8x128xf32>
    %1170 = arith.addf %1166, %1169 : vector<8x128xf32>
    %1171 = vector.extract_strided_slice %1165 {offsets = [0, 1], sizes = [8, 1], strides = [1, 1]} : vector<8x68xf32> to vector<8x1xf32>
    %1172 = vector.broadcast %1171 : vector<8x1xf32> to vector<8x128xf32>
    %1173 = arith.mulf %361, %1172 : vector<8x128xf32>
    %1174 = arith.addf %1170, %1173 : vector<8x128xf32>
    %1175 = vector.extract_strided_slice %1165 {offsets = [0, 2], sizes = [8, 1], strides = [1, 1]} : vector<8x68xf32> to vector<8x1xf32>
    %1176 = vector.broadcast %1175 : vector<8x1xf32> to vector<8x128xf32>
    %1177 = arith.mulf %366, %1176 : vector<8x128xf32>
    %1178 = arith.addf %1174, %1177 : vector<8x128xf32>
    %1179 = vector.extract_strided_slice %1165 {offsets = [0, 3], sizes = [8, 1], strides = [1, 1]} : vector<8x68xf32> to vector<8x1xf32>
    %1180 = vector.broadcast %1179 : vector<8x1xf32> to vector<8x128xf32>
    %1181 = arith.mulf %371, %1180 : vector<8x128xf32>
    %1182 = arith.addf %1178, %1181 : vector<8x128xf32>
    %1183 = vector.extract_strided_slice %1165 {offsets = [0, 4], sizes = [8, 1], strides = [1, 1]} : vector<8x68xf32> to vector<8x1xf32>
    %1184 = vector.broadcast %1183 : vector<8x1xf32> to vector<8x128xf32>
    %1185 = arith.mulf %375, %1184 : vector<8x128xf32>
    %1186 = arith.addf %1182, %1185 : vector<8x128xf32>
    %1187 = vector.extract_strided_slice %1165 {offsets = [0, 5], sizes = [8, 1], strides = [1, 1]} : vector<8x68xf32> to vector<8x1xf32>
    %1188 = vector.broadcast %1187 : vector<8x1xf32> to vector<8x128xf32>
    %1189 = arith.mulf %380, %1188 : vector<8x128xf32>
    %1190 = arith.addf %1186, %1189 : vector<8x128xf32>
    %1191 = vector.extract_strided_slice %1165 {offsets = [0, 6], sizes = [8, 1], strides = [1, 1]} : vector<8x68xf32> to vector<8x1xf32>
    %1192 = vector.broadcast %1191 : vector<8x1xf32> to vector<8x128xf32>
    %1193 = arith.mulf %385, %1192 : vector<8x128xf32>
    %1194 = arith.addf %1190, %1193 : vector<8x128xf32>
    %1195 = vector.extract_strided_slice %1165 {offsets = [0, 7], sizes = [8, 1], strides = [1, 1]} : vector<8x68xf32> to vector<8x1xf32>
    %1196 = vector.broadcast %1195 : vector<8x1xf32> to vector<8x128xf32>
    %1197 = arith.mulf %390, %1196 : vector<8x128xf32>
    %1198 = arith.addf %1194, %1197 : vector<8x128xf32>
    %1199 = vector.extract_strided_slice %1165 {offsets = [0, 8], sizes = [8, 1], strides = [1, 1]} : vector<8x68xf32> to vector<8x1xf32>
    %1200 = vector.broadcast %1199 : vector<8x1xf32> to vector<8x128xf32>
    %1201 = arith.mulf %395, %1200 : vector<8x128xf32>
    %1202 = arith.addf %1198, %1201 : vector<8x128xf32>
    %cst_413 = arith.constant 0.000000e+00 : f32
    %1203 = vector.broadcast %cst_413 : f32 to vector<8x128xf32>
    %1204 = vector.extract_strided_slice %1165 {offsets = [0, 9], sizes = [8, 1], strides = [1, 1]} : vector<8x68xf32> to vector<8x1xf32>
    %1205 = vector.broadcast %1204 : vector<8x1xf32> to vector<8x128xf32>
    %1206 = arith.mulf %419, %1205 : vector<8x128xf32>
    %1207 = arith.addf %1203, %1206 : vector<8x128xf32>
    %1208 = vector.extract_strided_slice %1165 {offsets = [0, 10], sizes = [8, 1], strides = [1, 1]} : vector<8x68xf32> to vector<8x1xf32>
    %1209 = vector.broadcast %1208 : vector<8x1xf32> to vector<8x128xf32>
    %1210 = arith.mulf %443, %1209 : vector<8x128xf32>
    %1211 = arith.addf %1207, %1210 : vector<8x128xf32>
    %1212 = vector.extract_strided_slice %1165 {offsets = [0, 11], sizes = [8, 1], strides = [1, 1]} : vector<8x68xf32> to vector<8x1xf32>
    %1213 = vector.broadcast %1212 : vector<8x1xf32> to vector<8x128xf32>
    %1214 = arith.mulf %467, %1213 : vector<8x128xf32>
    %1215 = arith.addf %1211, %1214 : vector<8x128xf32>
    %1216 = vector.extract_strided_slice %1165 {offsets = [0, 12], sizes = [8, 1], strides = [1, 1]} : vector<8x68xf32> to vector<8x1xf32>
    %1217 = vector.broadcast %1216 : vector<8x1xf32> to vector<8x128xf32>
    %1218 = arith.mulf %491, %1217 : vector<8x128xf32>
    %1219 = arith.addf %1215, %1218 : vector<8x128xf32>
    %1220 = vector.extract_strided_slice %1165 {offsets = [0, 13], sizes = [8, 1], strides = [1, 1]} : vector<8x68xf32> to vector<8x1xf32>
    %1221 = vector.broadcast %1220 : vector<8x1xf32> to vector<8x128xf32>
    %1222 = arith.mulf %515, %1221 : vector<8x128xf32>
    %1223 = arith.addf %1219, %1222 : vector<8x128xf32>
    %1224 = vector.extract_strided_slice %1165 {offsets = [0, 14], sizes = [8, 1], strides = [1, 1]} : vector<8x68xf32> to vector<8x1xf32>
    %1225 = vector.broadcast %1224 : vector<8x1xf32> to vector<8x128xf32>
    %1226 = arith.mulf %539, %1225 : vector<8x128xf32>
    %1227 = arith.addf %1223, %1226 : vector<8x128xf32>
    %1228 = vector.extract_strided_slice %1165 {offsets = [0, 15], sizes = [8, 1], strides = [1, 1]} : vector<8x68xf32> to vector<8x1xf32>
    %1229 = vector.broadcast %1228 : vector<8x1xf32> to vector<8x128xf32>
    %1230 = arith.mulf %356, %1229 : vector<8x128xf32>
    %1231 = arith.addf %1227, %1230 : vector<8x128xf32>
    %1232 = vector.extract_strided_slice %1165 {offsets = [0, 16], sizes = [8, 1], strides = [1, 1]} : vector<8x68xf32> to vector<8x1xf32>
    %1233 = vector.broadcast %1232 : vector<8x1xf32> to vector<8x128xf32>
    %1234 = arith.mulf %361, %1233 : vector<8x128xf32>
    %1235 = arith.addf %1231, %1234 : vector<8x128xf32>
    %1236 = vector.extract_strided_slice %1165 {offsets = [0, 17], sizes = [8, 1], strides = [1, 1]} : vector<8x68xf32> to vector<8x1xf32>
    %1237 = vector.broadcast %1236 : vector<8x1xf32> to vector<8x128xf32>
    %1238 = arith.mulf %366, %1237 : vector<8x128xf32>
    %1239 = arith.addf %1235, %1238 : vector<8x128xf32>
    %1240 = vector.extract_strided_slice %1165 {offsets = [0, 18], sizes = [8, 1], strides = [1, 1]} : vector<8x68xf32> to vector<8x1xf32>
    %1241 = vector.broadcast %1240 : vector<8x1xf32> to vector<8x128xf32>
    %1242 = arith.mulf %563, %1241 : vector<8x128xf32>
    %1243 = arith.addf %1239, %1242 : vector<8x128xf32>
    %1244 = vector.extract_strided_slice %1165 {offsets = [0, 19], sizes = [8, 1], strides = [1, 1]} : vector<8x68xf32> to vector<8x1xf32>
    %1245 = vector.broadcast %1244 : vector<8x1xf32> to vector<8x128xf32>
    %1246 = arith.mulf %587, %1245 : vector<8x128xf32>
    %1247 = arith.addf %1243, %1246 : vector<8x128xf32>
    %1248 = vector.extract_strided_slice %1165 {offsets = [0, 20], sizes = [8, 1], strides = [1, 1]} : vector<8x68xf32> to vector<8x1xf32>
    %1249 = vector.broadcast %1248 : vector<8x1xf32> to vector<8x128xf32>
    %1250 = arith.mulf %371, %1249 : vector<8x128xf32>
    %1251 = arith.addf %1247, %1250 : vector<8x128xf32>
    %1252 = vector.extract_strided_slice %1165 {offsets = [0, 21], sizes = [8, 1], strides = [1, 1]} : vector<8x68xf32> to vector<8x1xf32>
    %1253 = vector.broadcast %1252 : vector<8x1xf32> to vector<8x128xf32>
    %1254 = arith.mulf %375, %1253 : vector<8x128xf32>
    %1255 = arith.addf %1251, %1254 : vector<8x128xf32>
    %1256 = vector.extract_strided_slice %1165 {offsets = [0, 22], sizes = [8, 1], strides = [1, 1]} : vector<8x68xf32> to vector<8x1xf32>
    %1257 = vector.broadcast %1256 : vector<8x1xf32> to vector<8x128xf32>
    %1258 = arith.mulf %380, %1257 : vector<8x128xf32>
    %1259 = arith.addf %1255, %1258 : vector<8x128xf32>
    %1260 = vector.extract_strided_slice %1165 {offsets = [0, 23], sizes = [8, 1], strides = [1, 1]} : vector<8x68xf32> to vector<8x1xf32>
    %1261 = vector.broadcast %1260 : vector<8x1xf32> to vector<8x128xf32>
    %1262 = arith.mulf %611, %1261 : vector<8x128xf32>
    %1263 = arith.addf %1259, %1262 : vector<8x128xf32>
    %1264 = vector.extract_strided_slice %1165 {offsets = [0, 24], sizes = [8, 1], strides = [1, 1]} : vector<8x68xf32> to vector<8x1xf32>
    %1265 = vector.broadcast %1264 : vector<8x1xf32> to vector<8x128xf32>
    %1266 = arith.mulf %635, %1265 : vector<8x128xf32>
    %1267 = arith.addf %1263, %1266 : vector<8x128xf32>
    %1268 = vector.extract_strided_slice %1165 {offsets = [0, 25], sizes = [8, 1], strides = [1, 1]} : vector<8x68xf32> to vector<8x1xf32>
    %1269 = vector.broadcast %1268 : vector<8x1xf32> to vector<8x128xf32>
    %1270 = arith.mulf %385, %1269 : vector<8x128xf32>
    %1271 = arith.addf %1267, %1270 : vector<8x128xf32>
    %1272 = vector.extract_strided_slice %1165 {offsets = [0, 26], sizes = [8, 1], strides = [1, 1]} : vector<8x68xf32> to vector<8x1xf32>
    %1273 = vector.broadcast %1272 : vector<8x1xf32> to vector<8x128xf32>
    %1274 = arith.mulf %390, %1273 : vector<8x128xf32>
    %1275 = arith.addf %1271, %1274 : vector<8x128xf32>
    %1276 = vector.extract_strided_slice %1165 {offsets = [0, 27], sizes = [8, 1], strides = [1, 1]} : vector<8x68xf32> to vector<8x1xf32>
    %1277 = vector.broadcast %1276 : vector<8x1xf32> to vector<8x128xf32>
    %1278 = arith.mulf %395, %1277 : vector<8x128xf32>
    %1279 = arith.addf %1275, %1278 : vector<8x128xf32>
    %1280 = vector.extract_strided_slice %1165 {offsets = [0, 28], sizes = [8, 1], strides = [1, 1]} : vector<8x68xf32> to vector<8x1xf32>
    %1281 = vector.broadcast %1280 : vector<8x1xf32> to vector<8x128xf32>
    %1282 = arith.mulf %659, %1281 : vector<8x128xf32>
    %1283 = arith.addf %1279, %1282 : vector<8x128xf32>
    %1284 = vector.extract_strided_slice %1165 {offsets = [0, 29], sizes = [8, 1], strides = [1, 1]} : vector<8x68xf32> to vector<8x1xf32>
    %1285 = vector.broadcast %1284 : vector<8x1xf32> to vector<8x128xf32>
    %1286 = arith.mulf %683, %1285 : vector<8x128xf32>
    %1287 = arith.addf %1283, %1286 : vector<8x128xf32>
    %1288 = vector.extract_strided_slice %1165 {offsets = [0, 30], sizes = [8, 1], strides = [1, 1]} : vector<8x68xf32> to vector<8x1xf32>
    %1289 = vector.broadcast %1288 : vector<8x1xf32> to vector<8x128xf32>
    %1290 = arith.mulf %707, %1289 : vector<8x128xf32>
    %1291 = arith.addf %1287, %1290 : vector<8x128xf32>
    %1292 = vector.extract_strided_slice %1165 {offsets = [0, 31], sizes = [8, 1], strides = [1, 1]} : vector<8x68xf32> to vector<8x1xf32>
    %1293 = vector.broadcast %1292 : vector<8x1xf32> to vector<8x128xf32>
    %1294 = arith.mulf %731, %1293 : vector<8x128xf32>
    %1295 = arith.addf %1291, %1294 : vector<8x128xf32>
    %1296 = vector.extract_strided_slice %1165 {offsets = [0, 32], sizes = [8, 1], strides = [1, 1]} : vector<8x68xf32> to vector<8x1xf32>
    %1297 = vector.broadcast %1296 : vector<8x1xf32> to vector<8x128xf32>
    %1298 = arith.mulf %755, %1297 : vector<8x128xf32>
    %1299 = arith.addf %1295, %1298 : vector<8x128xf32>
    %1300 = vector.extract_strided_slice %1165 {offsets = [0, 33], sizes = [8, 1], strides = [1, 1]} : vector<8x68xf32> to vector<8x1xf32>
    %1301 = vector.broadcast %1300 : vector<8x1xf32> to vector<8x128xf32>
    %1302 = arith.mulf %779, %1301 : vector<8x128xf32>
    %1303 = arith.addf %1299, %1302 : vector<8x128xf32>
    %cst_414 = arith.constant 0.000000e+00 : f32
    %1304 = vector.broadcast %cst_414 : f32 to vector<8x128xf32>
    %1305 = vector.extract_strided_slice %1165 {offsets = [0, 34], sizes = [8, 1], strides = [1, 1]} : vector<8x68xf32> to vector<8x1xf32>
    %1306 = vector.broadcast %1305 : vector<8x1xf32> to vector<8x128xf32>
    %1307 = arith.mulf %419, %1306 : vector<8x128xf32>
    %1308 = arith.addf %1304, %1307 : vector<8x128xf32>
    %1309 = vector.extract_strided_slice %1165 {offsets = [0, 35], sizes = [8, 1], strides = [1, 1]} : vector<8x68xf32> to vector<8x1xf32>
    %1310 = vector.broadcast %1309 : vector<8x1xf32> to vector<8x128xf32>
    %1311 = arith.mulf %467, %1310 : vector<8x128xf32>
    %1312 = arith.addf %1308, %1311 : vector<8x128xf32>
    %1313 = vector.extract_strided_slice %1165 {offsets = [0, 36], sizes = [8, 1], strides = [1, 1]} : vector<8x68xf32> to vector<8x1xf32>
    %1314 = vector.broadcast %1313 : vector<8x1xf32> to vector<8x128xf32>
    %1315 = arith.mulf %515, %1314 : vector<8x128xf32>
    %1316 = arith.addf %1312, %1315 : vector<8x128xf32>
    %1317 = vector.extract_strided_slice %1165 {offsets = [0, 37], sizes = [8, 1], strides = [1, 1]} : vector<8x68xf32> to vector<8x1xf32>
    %1318 = vector.broadcast %1317 : vector<8x1xf32> to vector<8x128xf32>
    %1319 = arith.mulf %587, %1318 : vector<8x128xf32>
    %1320 = arith.addf %1316, %1319 : vector<8x128xf32>
    %1321 = vector.extract_strided_slice %1165 {offsets = [0, 38], sizes = [8, 1], strides = [1, 1]} : vector<8x68xf32> to vector<8x1xf32>
    %1322 = vector.broadcast %1321 : vector<8x1xf32> to vector<8x128xf32>
    %1323 = arith.mulf %375, %1322 : vector<8x128xf32>
    %1324 = arith.addf %1320, %1323 : vector<8x128xf32>
    %1325 = vector.extract_strided_slice %1165 {offsets = [0, 39], sizes = [8, 1], strides = [1, 1]} : vector<8x68xf32> to vector<8x1xf32>
    %1326 = vector.broadcast %1325 : vector<8x1xf32> to vector<8x128xf32>
    %1327 = arith.mulf %611, %1326 : vector<8x128xf32>
    %1328 = arith.addf %1324, %1327 : vector<8x128xf32>
    %1329 = vector.extract_strided_slice %1165 {offsets = [0, 40], sizes = [8, 1], strides = [1, 1]} : vector<8x68xf32> to vector<8x1xf32>
    %1330 = vector.broadcast %1329 : vector<8x1xf32> to vector<8x128xf32>
    %1331 = arith.mulf %683, %1330 : vector<8x128xf32>
    %1332 = arith.addf %1328, %1331 : vector<8x128xf32>
    %1333 = vector.extract_strided_slice %1165 {offsets = [0, 41], sizes = [8, 1], strides = [1, 1]} : vector<8x68xf32> to vector<8x1xf32>
    %1334 = vector.broadcast %1333 : vector<8x1xf32> to vector<8x128xf32>
    %1335 = arith.mulf %731, %1334 : vector<8x128xf32>
    %1336 = arith.addf %1332, %1335 : vector<8x128xf32>
    %1337 = vector.extract_strided_slice %1165 {offsets = [0, 42], sizes = [8, 1], strides = [1, 1]} : vector<8x68xf32> to vector<8x1xf32>
    %1338 = vector.broadcast %1337 : vector<8x1xf32> to vector<8x128xf32>
    %1339 = arith.mulf %779, %1338 : vector<8x128xf32>
    %1340 = arith.addf %1336, %1339 : vector<8x128xf32>
    %cst_415 = arith.constant 0.000000e+00 : f32
    %1341 = vector.broadcast %cst_415 : f32 to vector<8x128xf32>
    %1342 = vector.extract_strided_slice %1165 {offsets = [0, 43], sizes = [8, 1], strides = [1, 1]} : vector<8x68xf32> to vector<8x1xf32>
    %1343 = vector.broadcast %1342 : vector<8x1xf32> to vector<8x128xf32>
    %1344 = arith.mulf %803, %1343 : vector<8x128xf32>
    %1345 = arith.addf %1341, %1344 : vector<8x128xf32>
    %1346 = vector.extract_strided_slice %1165 {offsets = [0, 44], sizes = [8, 1], strides = [1, 1]} : vector<8x68xf32> to vector<8x1xf32>
    %1347 = vector.broadcast %1346 : vector<8x1xf32> to vector<8x128xf32>
    %1348 = arith.mulf %827, %1347 : vector<8x128xf32>
    %1349 = arith.addf %1345, %1348 : vector<8x128xf32>
    %1350 = vector.extract_strided_slice %1165 {offsets = [0, 45], sizes = [8, 1], strides = [1, 1]} : vector<8x68xf32> to vector<8x1xf32>
    %1351 = vector.broadcast %1350 : vector<8x1xf32> to vector<8x128xf32>
    %1352 = arith.mulf %851, %1351 : vector<8x128xf32>
    %1353 = arith.addf %1349, %1352 : vector<8x128xf32>
    %1354 = vector.extract_strided_slice %1165 {offsets = [0, 46], sizes = [8, 1], strides = [1, 1]} : vector<8x68xf32> to vector<8x1xf32>
    %1355 = vector.broadcast %1354 : vector<8x1xf32> to vector<8x128xf32>
    %1356 = arith.mulf %875, %1355 : vector<8x128xf32>
    %1357 = arith.addf %1353, %1356 : vector<8x128xf32>
    %1358 = vector.extract_strided_slice %1165 {offsets = [0, 47], sizes = [8, 1], strides = [1, 1]} : vector<8x68xf32> to vector<8x1xf32>
    %1359 = vector.broadcast %1358 : vector<8x1xf32> to vector<8x128xf32>
    %1360 = arith.mulf %899, %1359 : vector<8x128xf32>
    %1361 = arith.addf %1357, %1360 : vector<8x128xf32>
    %1362 = vector.extract_strided_slice %1165 {offsets = [0, 48], sizes = [8, 1], strides = [1, 1]} : vector<8x68xf32> to vector<8x1xf32>
    %1363 = vector.broadcast %1362 : vector<8x1xf32> to vector<8x128xf32>
    %1364 = arith.mulf %923, %1363 : vector<8x128xf32>
    %1365 = arith.addf %1361, %1364 : vector<8x128xf32>
    %1366 = vector.extract_strided_slice %1165 {offsets = [0, 49], sizes = [8, 1], strides = [1, 1]} : vector<8x68xf32> to vector<8x1xf32>
    %1367 = vector.broadcast %1366 : vector<8x1xf32> to vector<8x128xf32>
    %1368 = arith.mulf %419, %1367 : vector<8x128xf32>
    %1369 = arith.addf %1365, %1368 : vector<8x128xf32>
    %1370 = vector.extract_strided_slice %1165 {offsets = [0, 50], sizes = [8, 1], strides = [1, 1]} : vector<8x68xf32> to vector<8x1xf32>
    %1371 = vector.broadcast %1370 : vector<8x1xf32> to vector<8x128xf32>
    %1372 = arith.mulf %467, %1371 : vector<8x128xf32>
    %1373 = arith.addf %1369, %1372 : vector<8x128xf32>
    %1374 = vector.extract_strided_slice %1165 {offsets = [0, 51], sizes = [8, 1], strides = [1, 1]} : vector<8x68xf32> to vector<8x1xf32>
    %1375 = vector.broadcast %1374 : vector<8x1xf32> to vector<8x128xf32>
    %1376 = arith.mulf %515, %1375 : vector<8x128xf32>
    %1377 = arith.addf %1373, %1376 : vector<8x128xf32>
    %1378 = vector.extract_strided_slice %1165 {offsets = [0, 52], sizes = [8, 1], strides = [1, 1]} : vector<8x68xf32> to vector<8x1xf32>
    %1379 = vector.broadcast %1378 : vector<8x1xf32> to vector<8x128xf32>
    %1380 = arith.mulf %947, %1379 : vector<8x128xf32>
    %1381 = arith.addf %1377, %1380 : vector<8x128xf32>
    %1382 = vector.extract_strided_slice %1165 {offsets = [0, 53], sizes = [8, 1], strides = [1, 1]} : vector<8x68xf32> to vector<8x1xf32>
    %1383 = vector.broadcast %1382 : vector<8x1xf32> to vector<8x128xf32>
    %1384 = arith.mulf %971, %1383 : vector<8x128xf32>
    %1385 = arith.addf %1381, %1384 : vector<8x128xf32>
    %1386 = vector.extract_strided_slice %1165 {offsets = [0, 54], sizes = [8, 1], strides = [1, 1]} : vector<8x68xf32> to vector<8x1xf32>
    %1387 = vector.broadcast %1386 : vector<8x1xf32> to vector<8x128xf32>
    %1388 = arith.mulf %587, %1387 : vector<8x128xf32>
    %1389 = arith.addf %1385, %1388 : vector<8x128xf32>
    %1390 = vector.extract_strided_slice %1165 {offsets = [0, 55], sizes = [8, 1], strides = [1, 1]} : vector<8x68xf32> to vector<8x1xf32>
    %1391 = vector.broadcast %1390 : vector<8x1xf32> to vector<8x128xf32>
    %1392 = arith.mulf %375, %1391 : vector<8x128xf32>
    %1393 = arith.addf %1389, %1392 : vector<8x128xf32>
    %1394 = vector.extract_strided_slice %1165 {offsets = [0, 56], sizes = [8, 1], strides = [1, 1]} : vector<8x68xf32> to vector<8x1xf32>
    %1395 = vector.broadcast %1394 : vector<8x1xf32> to vector<8x128xf32>
    %1396 = arith.mulf %611, %1395 : vector<8x128xf32>
    %1397 = arith.addf %1393, %1396 : vector<8x128xf32>
    %1398 = vector.extract_strided_slice %1165 {offsets = [0, 57], sizes = [8, 1], strides = [1, 1]} : vector<8x68xf32> to vector<8x1xf32>
    %1399 = vector.broadcast %1398 : vector<8x1xf32> to vector<8x128xf32>
    %1400 = arith.mulf %995, %1399 : vector<8x128xf32>
    %1401 = arith.addf %1397, %1400 : vector<8x128xf32>
    %1402 = vector.extract_strided_slice %1165 {offsets = [0, 58], sizes = [8, 1], strides = [1, 1]} : vector<8x68xf32> to vector<8x1xf32>
    %1403 = vector.broadcast %1402 : vector<8x1xf32> to vector<8x128xf32>
    %1404 = arith.mulf %1019, %1403 : vector<8x128xf32>
    %1405 = arith.addf %1401, %1404 : vector<8x128xf32>
    %1406 = vector.extract_strided_slice %1165 {offsets = [0, 59], sizes = [8, 1], strides = [1, 1]} : vector<8x68xf32> to vector<8x1xf32>
    %1407 = vector.broadcast %1406 : vector<8x1xf32> to vector<8x128xf32>
    %1408 = arith.mulf %683, %1407 : vector<8x128xf32>
    %1409 = arith.addf %1405, %1408 : vector<8x128xf32>
    %1410 = vector.extract_strided_slice %1165 {offsets = [0, 60], sizes = [8, 1], strides = [1, 1]} : vector<8x68xf32> to vector<8x1xf32>
    %1411 = vector.broadcast %1410 : vector<8x1xf32> to vector<8x128xf32>
    %1412 = arith.mulf %731, %1411 : vector<8x128xf32>
    %1413 = arith.addf %1409, %1412 : vector<8x128xf32>
    %1414 = vector.extract_strided_slice %1165 {offsets = [0, 61], sizes = [8, 1], strides = [1, 1]} : vector<8x68xf32> to vector<8x1xf32>
    %1415 = vector.broadcast %1414 : vector<8x1xf32> to vector<8x128xf32>
    %1416 = arith.mulf %779, %1415 : vector<8x128xf32>
    %1417 = arith.addf %1413, %1416 : vector<8x128xf32>
    %1418 = vector.extract_strided_slice %1165 {offsets = [0, 62], sizes = [8, 1], strides = [1, 1]} : vector<8x68xf32> to vector<8x1xf32>
    %1419 = vector.broadcast %1418 : vector<8x1xf32> to vector<8x128xf32>
    %1420 = arith.mulf %1043, %1419 : vector<8x128xf32>
    %1421 = arith.addf %1417, %1420 : vector<8x128xf32>
    %1422 = vector.extract_strided_slice %1165 {offsets = [0, 63], sizes = [8, 1], strides = [1, 1]} : vector<8x68xf32> to vector<8x1xf32>
    %1423 = vector.broadcast %1422 : vector<8x1xf32> to vector<8x128xf32>
    %1424 = arith.mulf %1067, %1423 : vector<8x128xf32>
    %1425 = arith.addf %1421, %1424 : vector<8x128xf32>
    %1426 = vector.extract_strided_slice %1165 {offsets = [0, 64], sizes = [8, 1], strides = [1, 1]} : vector<8x68xf32> to vector<8x1xf32>
    %1427 = vector.broadcast %1426 : vector<8x1xf32> to vector<8x128xf32>
    %1428 = arith.mulf %1091, %1427 : vector<8x128xf32>
    %1429 = arith.addf %1425, %1428 : vector<8x128xf32>
    %1430 = vector.extract_strided_slice %1165 {offsets = [0, 65], sizes = [8, 1], strides = [1, 1]} : vector<8x68xf32> to vector<8x1xf32>
    %1431 = vector.broadcast %1430 : vector<8x1xf32> to vector<8x128xf32>
    %1432 = arith.mulf %1115, %1431 : vector<8x128xf32>
    %1433 = arith.addf %1429, %1432 : vector<8x128xf32>
    %1434 = vector.extract_strided_slice %1165 {offsets = [0, 66], sizes = [8, 1], strides = [1, 1]} : vector<8x68xf32> to vector<8x1xf32>
    %1435 = vector.broadcast %1434 : vector<8x1xf32> to vector<8x128xf32>
    %1436 = arith.mulf %1139, %1435 : vector<8x128xf32>
    %1437 = arith.addf %1433, %1436 : vector<8x128xf32>
    %1438 = vector.extract_strided_slice %1165 {offsets = [0, 67], sizes = [8, 1], strides = [1, 1]} : vector<8x68xf32> to vector<8x1xf32>
    %1439 = vector.broadcast %1438 : vector<8x1xf32> to vector<8x128xf32>
    %1440 = arith.mulf %1163, %1439 : vector<8x128xf32>
    %1441 = arith.addf %1437, %1440 : vector<8x128xf32>
    %1442 = tpu.concatenate %1202, %1303, %1340, %1441 in 0 : vector<8x128xf32>, vector<8x128xf32>, vector<8x128xf32>, vector<8x128xf32> -> vector<32x128xf32>
    %c0_416 = arith.constant 0 : index
    %c0_417 = arith.constant 0 : index
    %c0_418 = arith.constant 0 : index
    %1443 = vector.load %arg9[%c0_416, %c0_417, %c0_418] : memref<1x32x32xf32, #tpu.memory_space<vmem>>, vector<1x32x32xf32>
    %1444 = vector.shape_cast %1443 : vector<1x32x32xf32> to vector<32x32xf32>
    %cst_419 = arith.constant dense<0.000000e+00> : vector<32x128xf32>
    %1445 = tpu.matmul %1444, %1442, %cst_419 {dimension_numbers = #tpu.dot_dimension_numbers<[1], [0], [0], [1], [0, 0, 1, 1], [], []>} : vector<32x32xf32>, vector<32x128xf32>, vector<32x128xf32> -> vector<32x128xf32>
    %cst_420 = arith.constant dense<0.000000e+00> : vector<32xf32>
    %1446 = vector.multi_reduction <add>, %1445, %cst_420 [1] : vector<32x128xf32> to vector<32xf32>
    %1447 = vector.shape_cast %1446 : vector<32xf32> to vector<32x1xf32>
    %cst_421 = arith.constant 7.812500e-03 : f32
    %1448 = vector.broadcast %cst_421 : f32 to vector<32x1xf32>
    %1449 = arith.mulf %1447, %1448 : vector<32x1xf32>
    %1450 = vector.broadcast %1449 : vector<32x1xf32> to vector<32x128xf32>
    %1451 = arith.subf %1445, %1450 : vector<32x128xf32>
    %1452 = arith.mulf %1451, %1451 : vector<32x128xf32>
    %cst_422 = arith.constant dense<0.000000e+00> : vector<32xf32>
    %1453 = vector.multi_reduction <add>, %1452, %cst_422 [1] : vector<32x128xf32> to vector<32xf32>
    %1454 = vector.shape_cast %1453 : vector<32xf32> to vector<32x1xf32>
    %cst_423 = arith.constant 7.812500e-03 : f32
    %1455 = vector.broadcast %cst_423 : f32 to vector<32x1xf32>
    %1456 = arith.mulf %1454, %1455 : vector<32x1xf32>
    %cst_424 = arith.constant 9.99999974E-6 : f32
    %1457 = vector.broadcast %cst_424 : f32 to vector<32x1xf32>
    %1458 = arith.addf %1456, %1457 : vector<32x1xf32>
    %1459 = math.rsqrt %1458 : vector<32x1xf32>
    %1460 = vector.broadcast %1459 : vector<32x1xf32> to vector<32x128xf32>
    %1461 = arith.mulf %1451, %1460 : vector<32x128xf32>
    %1462 = vector.extract_strided_slice %1461 {offsets = [16, 0], sizes = [8, 128], strides = [1, 1]} : vector<32x128xf32> to vector<8x128xf32>
    %1463 = vector.extract_strided_slice %1461 {offsets = [24, 0], sizes = [8, 128], strides = [1, 1]} : vector<32x128xf32> to vector<8x128xf32>
    %1464 = vector.extract_strided_slice %1461 {offsets = [0, 0], sizes = [16, 128], strides = [1, 1]} : vector<32x128xf32> to vector<16x128xf32>
    %cst_425 = arith.constant 0.000000e+00 : f32
    %1465 = vector.broadcast %cst_425 : f32 to vector<16x128xf32>
    %1466 = arith.maximumf %1464, %1465 : vector<16x128xf32>
    %c0_426 = arith.constant 0 : index
    %c0_427 = arith.constant 0 : index
    %c0_428 = arith.constant 0 : index
    %1467 = vector.load %arg10[%c0_426, %c0_427, %c0_428] : memref<1x8x34xf32, #tpu.memory_space<vmem>>, vector<1x8x34xf32>
    %1468 = vector.shape_cast %1467 : vector<1x8x34xf32> to vector<8x34xf32>
    %1469 = vector.extract_strided_slice %1466 {offsets = [0, 0], sizes = [8, 128], strides = [1, 1]} : vector<16x128xf32> to vector<8x128xf32>
    %cst_429 = arith.constant 0.000000e+00 : f32
    %1470 = vector.broadcast %cst_429 : f32 to vector<8x128xf32>
    %c9_i32_430 = arith.constant 9 : i32
    %1471 = tpu.dynamic_rotate %1469 by %c9_i32_430 dim 1 : vector<8x128xf32>, i32 -> vector<8x128xf32>
    %cst_431 = arith.constant 0.000000e+00 : f32
    %1472 = vector.shape_cast %38 : vector<1x128xi1> to vector<1x128xi1>
    %1473 = vector.broadcast %1472 : vector<1x128xi1> to vector<8x128xi1>
    %1474 = vector.broadcast %cst_431 : f32 to vector<8x128xf32>
    %1475 = arith.select %1473, %1471, %1474 : vector<8x128xi1>, vector<8x128xf32>
    %1476 = vector.extract_strided_slice %1468 {offsets = [0, 0], sizes = [8, 1], strides = [1, 1]} : vector<8x34xf32> to vector<8x1xf32>
    %1477 = vector.broadcast %1476 : vector<8x1xf32> to vector<8x128xf32>
    %1478 = arith.mulf %1475, %1477 : vector<8x128xf32>
    %1479 = arith.addf %1470, %1478 : vector<8x128xf32>
    %c8_i32_432 = arith.constant 8 : i32
    %1480 = tpu.dynamic_rotate %1469 by %c8_i32_432 dim 1 : vector<8x128xf32>, i32 -> vector<8x128xf32>
    %cst_433 = arith.constant 0.000000e+00 : f32
    %1481 = vector.shape_cast %71 : vector<1x128xi1> to vector<1x128xi1>
    %1482 = vector.broadcast %1481 : vector<1x128xi1> to vector<8x128xi1>
    %1483 = vector.broadcast %cst_433 : f32 to vector<8x128xf32>
    %1484 = arith.select %1482, %1480, %1483 : vector<8x128xi1>, vector<8x128xf32>
    %1485 = vector.extract_strided_slice %1468 {offsets = [0, 1], sizes = [8, 1], strides = [1, 1]} : vector<8x34xf32> to vector<8x1xf32>
    %1486 = vector.broadcast %1485 : vector<8x1xf32> to vector<8x128xf32>
    %1487 = arith.mulf %1484, %1486 : vector<8x128xf32>
    %1488 = arith.addf %1479, %1487 : vector<8x128xf32>
    %c7_i32_434 = arith.constant 7 : i32
    %1489 = tpu.dynamic_rotate %1469 by %c7_i32_434 dim 1 : vector<8x128xf32>, i32 -> vector<8x128xf32>
    %cst_435 = arith.constant 0.000000e+00 : f32
    %1490 = vector.shape_cast %104 : vector<1x128xi1> to vector<1x128xi1>
    %1491 = vector.broadcast %1490 : vector<1x128xi1> to vector<8x128xi1>
    %1492 = vector.broadcast %cst_435 : f32 to vector<8x128xf32>
    %1493 = arith.select %1491, %1489, %1492 : vector<8x128xi1>, vector<8x128xf32>
    %1494 = vector.extract_strided_slice %1468 {offsets = [0, 2], sizes = [8, 1], strides = [1, 1]} : vector<8x34xf32> to vector<8x1xf32>
    %1495 = vector.broadcast %1494 : vector<8x1xf32> to vector<8x128xf32>
    %1496 = arith.mulf %1493, %1495 : vector<8x128xf32>
    %1497 = arith.addf %1488, %1496 : vector<8x128xf32>
    %c1_i32_436 = arith.constant 1 : i32
    %1498 = tpu.dynamic_rotate %1469 by %c1_i32_436 dim 1 : vector<8x128xf32>, i32 -> vector<8x128xf32>
    %cst_437 = arith.constant 0.000000e+00 : f32
    %1499 = vector.shape_cast %137 : vector<1x128xi1> to vector<1x128xi1>
    %1500 = vector.broadcast %1499 : vector<1x128xi1> to vector<8x128xi1>
    %1501 = vector.broadcast %cst_437 : f32 to vector<8x128xf32>
    %1502 = arith.select %1500, %1498, %1501 : vector<8x128xi1>, vector<8x128xf32>
    %1503 = vector.extract_strided_slice %1468 {offsets = [0, 3], sizes = [8, 1], strides = [1, 1]} : vector<8x34xf32> to vector<8x1xf32>
    %1504 = vector.broadcast %1503 : vector<8x1xf32> to vector<8x128xf32>
    %1505 = arith.mulf %1502, %1504 : vector<8x128xf32>
    %1506 = arith.addf %1497, %1505 : vector<8x128xf32>
    %cst_438 = arith.constant 0.000000e+00 : f32
    %1507 = vector.shape_cast %170 : vector<1x128xi1> to vector<1x128xi1>
    %1508 = vector.broadcast %1507 : vector<1x128xi1> to vector<8x128xi1>
    %1509 = vector.broadcast %cst_438 : f32 to vector<8x128xf32>
    %1510 = arith.select %1508, %1469, %1509 : vector<8x128xi1>, vector<8x128xf32>
    %1511 = vector.extract_strided_slice %1468 {offsets = [0, 4], sizes = [8, 1], strides = [1, 1]} : vector<8x34xf32> to vector<8x1xf32>
    %1512 = vector.broadcast %1511 : vector<8x1xf32> to vector<8x128xf32>
    %1513 = arith.mulf %1510, %1512 : vector<8x128xf32>
    %1514 = arith.addf %1506, %1513 : vector<8x128xf32>
    %c127_i32_439 = arith.constant 127 : i32
    %1515 = tpu.dynamic_rotate %1469 by %c127_i32_439 dim 1 : vector<8x128xf32>, i32 -> vector<8x128xf32>
    %cst_440 = arith.constant 0.000000e+00 : f32
    %1516 = vector.shape_cast %202 : vector<1x128xi1> to vector<1x128xi1>
    %1517 = vector.broadcast %1516 : vector<1x128xi1> to vector<8x128xi1>
    %1518 = vector.broadcast %cst_440 : f32 to vector<8x128xf32>
    %1519 = arith.select %1517, %1515, %1518 : vector<8x128xi1>, vector<8x128xf32>
    %1520 = vector.extract_strided_slice %1468 {offsets = [0, 5], sizes = [8, 1], strides = [1, 1]} : vector<8x34xf32> to vector<8x1xf32>
    %1521 = vector.broadcast %1520 : vector<8x1xf32> to vector<8x128xf32>
    %1522 = arith.mulf %1519, %1521 : vector<8x128xf32>
    %1523 = arith.addf %1514, %1522 : vector<8x128xf32>
    %c121_i32_441 = arith.constant 121 : i32
    %1524 = tpu.dynamic_rotate %1469 by %c121_i32_441 dim 1 : vector<8x128xf32>, i32 -> vector<8x128xf32>
    %cst_442 = arith.constant 0.000000e+00 : f32
    %1525 = vector.shape_cast %235 : vector<1x128xi1> to vector<1x128xi1>
    %1526 = vector.broadcast %1525 : vector<1x128xi1> to vector<8x128xi1>
    %1527 = vector.broadcast %cst_442 : f32 to vector<8x128xf32>
    %1528 = arith.select %1526, %1524, %1527 : vector<8x128xi1>, vector<8x128xf32>
    %1529 = vector.extract_strided_slice %1468 {offsets = [0, 6], sizes = [8, 1], strides = [1, 1]} : vector<8x34xf32> to vector<8x1xf32>
    %1530 = vector.broadcast %1529 : vector<8x1xf32> to vector<8x128xf32>
    %1531 = arith.mulf %1528, %1530 : vector<8x128xf32>
    %1532 = arith.addf %1523, %1531 : vector<8x128xf32>
    %c120_i32_443 = arith.constant 120 : i32
    %1533 = tpu.dynamic_rotate %1469 by %c120_i32_443 dim 1 : vector<8x128xf32>, i32 -> vector<8x128xf32>
    %cst_444 = arith.constant 0.000000e+00 : f32
    %1534 = vector.shape_cast %268 : vector<1x128xi1> to vector<1x128xi1>
    %1535 = vector.broadcast %1534 : vector<1x128xi1> to vector<8x128xi1>
    %1536 = vector.broadcast %cst_444 : f32 to vector<8x128xf32>
    %1537 = arith.select %1535, %1533, %1536 : vector<8x128xi1>, vector<8x128xf32>
    %1538 = vector.extract_strided_slice %1468 {offsets = [0, 7], sizes = [8, 1], strides = [1, 1]} : vector<8x34xf32> to vector<8x1xf32>
    %1539 = vector.broadcast %1538 : vector<8x1xf32> to vector<8x128xf32>
    %1540 = arith.mulf %1537, %1539 : vector<8x128xf32>
    %1541 = arith.addf %1532, %1540 : vector<8x128xf32>
    %c119_i32_445 = arith.constant 119 : i32
    %1542 = tpu.dynamic_rotate %1469 by %c119_i32_445 dim 1 : vector<8x128xf32>, i32 -> vector<8x128xf32>
    %cst_446 = arith.constant 0.000000e+00 : f32
    %1543 = vector.shape_cast %301 : vector<1x128xi1> to vector<1x128xi1>
    %1544 = vector.broadcast %1543 : vector<1x128xi1> to vector<8x128xi1>
    %1545 = vector.broadcast %cst_446 : f32 to vector<8x128xf32>
    %1546 = arith.select %1544, %1542, %1545 : vector<8x128xi1>, vector<8x128xf32>
    %1547 = vector.extract_strided_slice %1468 {offsets = [0, 8], sizes = [8, 1], strides = [1, 1]} : vector<8x34xf32> to vector<8x1xf32>
    %1548 = vector.broadcast %1547 : vector<8x1xf32> to vector<8x128xf32>
    %1549 = arith.mulf %1546, %1548 : vector<8x128xf32>
    %1550 = arith.addf %1541, %1549 : vector<8x128xf32>
    %1551 = vector.extract_strided_slice %1466 {offsets = [8, 0], sizes = [8, 128], strides = [1, 1]} : vector<16x128xf32> to vector<8x128xf32>
    %cst_447 = arith.constant 0.000000e+00 : f32
    %1552 = vector.broadcast %cst_447 : f32 to vector<8x128xf32>
    %c18_i32_448 = arith.constant 18 : i32
    %1553 = tpu.dynamic_rotate %1551 by %c18_i32_448 dim 1 : vector<8x128xf32>, i32 -> vector<8x128xf32>
    %cst_449 = arith.constant 0.000000e+00 : f32
    %1554 = vector.shape_cast %414 : vector<1x128xi1> to vector<1x128xi1>
    %1555 = vector.broadcast %1554 : vector<1x128xi1> to vector<8x128xi1>
    %1556 = vector.broadcast %cst_449 : f32 to vector<8x128xf32>
    %1557 = arith.select %1555, %1553, %1556 : vector<8x128xi1>, vector<8x128xf32>
    %1558 = vector.extract_strided_slice %1468 {offsets = [0, 9], sizes = [8, 1], strides = [1, 1]} : vector<8x34xf32> to vector<8x1xf32>
    %1559 = vector.broadcast %1558 : vector<8x1xf32> to vector<8x128xf32>
    %1560 = arith.mulf %1557, %1559 : vector<8x128xf32>
    %1561 = arith.addf %1552, %1560 : vector<8x128xf32>
    %c17_i32_450 = arith.constant 17 : i32
    %1562 = tpu.dynamic_rotate %1551 by %c17_i32_450 dim 1 : vector<8x128xf32>, i32 -> vector<8x128xf32>
    %cst_451 = arith.constant 0.000000e+00 : f32
    %1563 = vector.shape_cast %438 : vector<1x128xi1> to vector<1x128xi1>
    %1564 = vector.broadcast %1563 : vector<1x128xi1> to vector<8x128xi1>
    %1565 = vector.broadcast %cst_451 : f32 to vector<8x128xf32>
    %1566 = arith.select %1564, %1562, %1565 : vector<8x128xi1>, vector<8x128xf32>
    %1567 = vector.extract_strided_slice %1468 {offsets = [0, 10], sizes = [8, 1], strides = [1, 1]} : vector<8x34xf32> to vector<8x1xf32>
    %1568 = vector.broadcast %1567 : vector<8x1xf32> to vector<8x128xf32>
    %1569 = arith.mulf %1566, %1568 : vector<8x128xf32>
    %1570 = arith.addf %1561, %1569 : vector<8x128xf32>
    %c16_i32_452 = arith.constant 16 : i32
    %1571 = tpu.dynamic_rotate %1551 by %c16_i32_452 dim 1 : vector<8x128xf32>, i32 -> vector<8x128xf32>
    %cst_453 = arith.constant 0.000000e+00 : f32
    %1572 = vector.shape_cast %462 : vector<1x128xi1> to vector<1x128xi1>
    %1573 = vector.broadcast %1572 : vector<1x128xi1> to vector<8x128xi1>
    %1574 = vector.broadcast %cst_453 : f32 to vector<8x128xf32>
    %1575 = arith.select %1573, %1571, %1574 : vector<8x128xi1>, vector<8x128xf32>
    %1576 = vector.extract_strided_slice %1468 {offsets = [0, 11], sizes = [8, 1], strides = [1, 1]} : vector<8x34xf32> to vector<8x1xf32>
    %1577 = vector.broadcast %1576 : vector<8x1xf32> to vector<8x128xf32>
    %1578 = arith.mulf %1575, %1577 : vector<8x128xf32>
    %1579 = arith.addf %1570, %1578 : vector<8x128xf32>
    %c15_i32_454 = arith.constant 15 : i32
    %1580 = tpu.dynamic_rotate %1551 by %c15_i32_454 dim 1 : vector<8x128xf32>, i32 -> vector<8x128xf32>
    %cst_455 = arith.constant 0.000000e+00 : f32
    %1581 = vector.shape_cast %486 : vector<1x128xi1> to vector<1x128xi1>
    %1582 = vector.broadcast %1581 : vector<1x128xi1> to vector<8x128xi1>
    %1583 = vector.broadcast %cst_455 : f32 to vector<8x128xf32>
    %1584 = arith.select %1582, %1580, %1583 : vector<8x128xi1>, vector<8x128xf32>
    %1585 = vector.extract_strided_slice %1468 {offsets = [0, 12], sizes = [8, 1], strides = [1, 1]} : vector<8x34xf32> to vector<8x1xf32>
    %1586 = vector.broadcast %1585 : vector<8x1xf32> to vector<8x128xf32>
    %1587 = arith.mulf %1584, %1586 : vector<8x128xf32>
    %1588 = arith.addf %1579, %1587 : vector<8x128xf32>
    %c14_i32_456 = arith.constant 14 : i32
    %1589 = tpu.dynamic_rotate %1551 by %c14_i32_456 dim 1 : vector<8x128xf32>, i32 -> vector<8x128xf32>
    %cst_457 = arith.constant 0.000000e+00 : f32
    %1590 = vector.shape_cast %510 : vector<1x128xi1> to vector<1x128xi1>
    %1591 = vector.broadcast %1590 : vector<1x128xi1> to vector<8x128xi1>
    %1592 = vector.broadcast %cst_457 : f32 to vector<8x128xf32>
    %1593 = arith.select %1591, %1589, %1592 : vector<8x128xi1>, vector<8x128xf32>
    %1594 = vector.extract_strided_slice %1468 {offsets = [0, 13], sizes = [8, 1], strides = [1, 1]} : vector<8x34xf32> to vector<8x1xf32>
    %1595 = vector.broadcast %1594 : vector<8x1xf32> to vector<8x128xf32>
    %1596 = arith.mulf %1593, %1595 : vector<8x128xf32>
    %1597 = arith.addf %1588, %1596 : vector<8x128xf32>
    %c10_i32_458 = arith.constant 10 : i32
    %1598 = tpu.dynamic_rotate %1551 by %c10_i32_458 dim 1 : vector<8x128xf32>, i32 -> vector<8x128xf32>
    %cst_459 = arith.constant 0.000000e+00 : f32
    %1599 = vector.shape_cast %534 : vector<1x128xi1> to vector<1x128xi1>
    %1600 = vector.broadcast %1599 : vector<1x128xi1> to vector<8x128xi1>
    %1601 = vector.broadcast %cst_459 : f32 to vector<8x128xf32>
    %1602 = arith.select %1600, %1598, %1601 : vector<8x128xi1>, vector<8x128xf32>
    %1603 = vector.extract_strided_slice %1468 {offsets = [0, 14], sizes = [8, 1], strides = [1, 1]} : vector<8x34xf32> to vector<8x1xf32>
    %1604 = vector.broadcast %1603 : vector<8x1xf32> to vector<8x128xf32>
    %1605 = arith.mulf %1602, %1604 : vector<8x128xf32>
    %1606 = arith.addf %1597, %1605 : vector<8x128xf32>
    %c9_i32_460 = arith.constant 9 : i32
    %1607 = tpu.dynamic_rotate %1551 by %c9_i32_460 dim 1 : vector<8x128xf32>, i32 -> vector<8x128xf32>
    %cst_461 = arith.constant 0.000000e+00 : f32
    %1608 = vector.shape_cast %38 : vector<1x128xi1> to vector<1x128xi1>
    %1609 = vector.broadcast %1608 : vector<1x128xi1> to vector<8x128xi1>
    %1610 = vector.broadcast %cst_461 : f32 to vector<8x128xf32>
    %1611 = arith.select %1609, %1607, %1610 : vector<8x128xi1>, vector<8x128xf32>
    %1612 = vector.extract_strided_slice %1468 {offsets = [0, 15], sizes = [8, 1], strides = [1, 1]} : vector<8x34xf32> to vector<8x1xf32>
    %1613 = vector.broadcast %1612 : vector<8x1xf32> to vector<8x128xf32>
    %1614 = arith.mulf %1611, %1613 : vector<8x128xf32>
    %1615 = arith.addf %1606, %1614 : vector<8x128xf32>
    %c8_i32_462 = arith.constant 8 : i32
    %1616 = tpu.dynamic_rotate %1551 by %c8_i32_462 dim 1 : vector<8x128xf32>, i32 -> vector<8x128xf32>
    %cst_463 = arith.constant 0.000000e+00 : f32
    %1617 = vector.shape_cast %71 : vector<1x128xi1> to vector<1x128xi1>
    %1618 = vector.broadcast %1617 : vector<1x128xi1> to vector<8x128xi1>
    %1619 = vector.broadcast %cst_463 : f32 to vector<8x128xf32>
    %1620 = arith.select %1618, %1616, %1619 : vector<8x128xi1>, vector<8x128xf32>
    %1621 = vector.extract_strided_slice %1468 {offsets = [0, 16], sizes = [8, 1], strides = [1, 1]} : vector<8x34xf32> to vector<8x1xf32>
    %1622 = vector.broadcast %1621 : vector<8x1xf32> to vector<8x128xf32>
    %1623 = arith.mulf %1620, %1622 : vector<8x128xf32>
    %1624 = arith.addf %1615, %1623 : vector<8x128xf32>
    %c7_i32_464 = arith.constant 7 : i32
    %1625 = tpu.dynamic_rotate %1551 by %c7_i32_464 dim 1 : vector<8x128xf32>, i32 -> vector<8x128xf32>
    %cst_465 = arith.constant 0.000000e+00 : f32
    %1626 = vector.shape_cast %104 : vector<1x128xi1> to vector<1x128xi1>
    %1627 = vector.broadcast %1626 : vector<1x128xi1> to vector<8x128xi1>
    %1628 = vector.broadcast %cst_465 : f32 to vector<8x128xf32>
    %1629 = arith.select %1627, %1625, %1628 : vector<8x128xi1>, vector<8x128xf32>
    %1630 = vector.extract_strided_slice %1468 {offsets = [0, 17], sizes = [8, 1], strides = [1, 1]} : vector<8x34xf32> to vector<8x1xf32>
    %1631 = vector.broadcast %1630 : vector<8x1xf32> to vector<8x128xf32>
    %1632 = arith.mulf %1629, %1631 : vector<8x128xf32>
    %1633 = arith.addf %1624, %1632 : vector<8x128xf32>
    %c6_i32_466 = arith.constant 6 : i32
    %1634 = tpu.dynamic_rotate %1551 by %c6_i32_466 dim 1 : vector<8x128xf32>, i32 -> vector<8x128xf32>
    %cst_467 = arith.constant 0.000000e+00 : f32
    %1635 = vector.shape_cast %558 : vector<1x128xi1> to vector<1x128xi1>
    %1636 = vector.broadcast %1635 : vector<1x128xi1> to vector<8x128xi1>
    %1637 = vector.broadcast %cst_467 : f32 to vector<8x128xf32>
    %1638 = arith.select %1636, %1634, %1637 : vector<8x128xi1>, vector<8x128xf32>
    %1639 = vector.extract_strided_slice %1468 {offsets = [0, 18], sizes = [8, 1], strides = [1, 1]} : vector<8x34xf32> to vector<8x1xf32>
    %1640 = vector.broadcast %1639 : vector<8x1xf32> to vector<8x128xf32>
    %1641 = arith.mulf %1638, %1640 : vector<8x128xf32>
    %1642 = arith.addf %1633, %1641 : vector<8x128xf32>
    %c2_i32_468 = arith.constant 2 : i32
    %1643 = tpu.dynamic_rotate %1551 by %c2_i32_468 dim 1 : vector<8x128xf32>, i32 -> vector<8x128xf32>
    %cst_469 = arith.constant 0.000000e+00 : f32
    %1644 = vector.shape_cast %582 : vector<1x128xi1> to vector<1x128xi1>
    %1645 = vector.broadcast %1644 : vector<1x128xi1> to vector<8x128xi1>
    %1646 = vector.broadcast %cst_469 : f32 to vector<8x128xf32>
    %1647 = arith.select %1645, %1643, %1646 : vector<8x128xi1>, vector<8x128xf32>
    %1648 = vector.extract_strided_slice %1468 {offsets = [0, 19], sizes = [8, 1], strides = [1, 1]} : vector<8x34xf32> to vector<8x1xf32>
    %1649 = vector.broadcast %1648 : vector<8x1xf32> to vector<8x128xf32>
    %1650 = arith.mulf %1647, %1649 : vector<8x128xf32>
    %1651 = arith.addf %1642, %1650 : vector<8x128xf32>
    %c1_i32_470 = arith.constant 1 : i32
    %1652 = tpu.dynamic_rotate %1551 by %c1_i32_470 dim 1 : vector<8x128xf32>, i32 -> vector<8x128xf32>
    %cst_471 = arith.constant 0.000000e+00 : f32
    %1653 = vector.shape_cast %137 : vector<1x128xi1> to vector<1x128xi1>
    %1654 = vector.broadcast %1653 : vector<1x128xi1> to vector<8x128xi1>
    %1655 = vector.broadcast %cst_471 : f32 to vector<8x128xf32>
    %1656 = arith.select %1654, %1652, %1655 : vector<8x128xi1>, vector<8x128xf32>
    %1657 = vector.extract_strided_slice %1468 {offsets = [0, 20], sizes = [8, 1], strides = [1, 1]} : vector<8x34xf32> to vector<8x1xf32>
    %1658 = vector.broadcast %1657 : vector<8x1xf32> to vector<8x128xf32>
    %1659 = arith.mulf %1656, %1658 : vector<8x128xf32>
    %1660 = arith.addf %1651, %1659 : vector<8x128xf32>
    %cst_472 = arith.constant 0.000000e+00 : f32
    %1661 = vector.shape_cast %170 : vector<1x128xi1> to vector<1x128xi1>
    %1662 = vector.broadcast %1661 : vector<1x128xi1> to vector<8x128xi1>
    %1663 = vector.broadcast %cst_472 : f32 to vector<8x128xf32>
    %1664 = arith.select %1662, %1551, %1663 : vector<8x128xi1>, vector<8x128xf32>
    %1665 = vector.extract_strided_slice %1468 {offsets = [0, 21], sizes = [8, 1], strides = [1, 1]} : vector<8x34xf32> to vector<8x1xf32>
    %1666 = vector.broadcast %1665 : vector<8x1xf32> to vector<8x128xf32>
    %1667 = arith.mulf %1664, %1666 : vector<8x128xf32>
    %1668 = arith.addf %1660, %1667 : vector<8x128xf32>
    %c127_i32_473 = arith.constant 127 : i32
    %1669 = tpu.dynamic_rotate %1551 by %c127_i32_473 dim 1 : vector<8x128xf32>, i32 -> vector<8x128xf32>
    %cst_474 = arith.constant 0.000000e+00 : f32
    %1670 = vector.shape_cast %202 : vector<1x128xi1> to vector<1x128xi1>
    %1671 = vector.broadcast %1670 : vector<1x128xi1> to vector<8x128xi1>
    %1672 = vector.broadcast %cst_474 : f32 to vector<8x128xf32>
    %1673 = arith.select %1671, %1669, %1672 : vector<8x128xi1>, vector<8x128xf32>
    %1674 = vector.extract_strided_slice %1468 {offsets = [0, 22], sizes = [8, 1], strides = [1, 1]} : vector<8x34xf32> to vector<8x1xf32>
    %1675 = vector.broadcast %1674 : vector<8x1xf32> to vector<8x128xf32>
    %1676 = arith.mulf %1673, %1675 : vector<8x128xf32>
    %1677 = arith.addf %1668, %1676 : vector<8x128xf32>
    %c126_i32_475 = arith.constant 126 : i32
    %1678 = tpu.dynamic_rotate %1551 by %c126_i32_475 dim 1 : vector<8x128xf32>, i32 -> vector<8x128xf32>
    %cst_476 = arith.constant 0.000000e+00 : f32
    %1679 = vector.shape_cast %606 : vector<1x128xi1> to vector<1x128xi1>
    %1680 = vector.broadcast %1679 : vector<1x128xi1> to vector<8x128xi1>
    %1681 = vector.broadcast %cst_476 : f32 to vector<8x128xf32>
    %1682 = arith.select %1680, %1678, %1681 : vector<8x128xi1>, vector<8x128xf32>
    %1683 = vector.extract_strided_slice %1468 {offsets = [0, 23], sizes = [8, 1], strides = [1, 1]} : vector<8x34xf32> to vector<8x1xf32>
    %1684 = vector.broadcast %1683 : vector<8x1xf32> to vector<8x128xf32>
    %1685 = arith.mulf %1682, %1684 : vector<8x128xf32>
    %1686 = arith.addf %1677, %1685 : vector<8x128xf32>
    %c122_i32_477 = arith.constant 122 : i32
    %1687 = tpu.dynamic_rotate %1551 by %c122_i32_477 dim 1 : vector<8x128xf32>, i32 -> vector<8x128xf32>
    %cst_478 = arith.constant 0.000000e+00 : f32
    %1688 = vector.shape_cast %630 : vector<1x128xi1> to vector<1x128xi1>
    %1689 = vector.broadcast %1688 : vector<1x128xi1> to vector<8x128xi1>
    %1690 = vector.broadcast %cst_478 : f32 to vector<8x128xf32>
    %1691 = arith.select %1689, %1687, %1690 : vector<8x128xi1>, vector<8x128xf32>
    %1692 = vector.extract_strided_slice %1468 {offsets = [0, 24], sizes = [8, 1], strides = [1, 1]} : vector<8x34xf32> to vector<8x1xf32>
    %1693 = vector.broadcast %1692 : vector<8x1xf32> to vector<8x128xf32>
    %1694 = arith.mulf %1691, %1693 : vector<8x128xf32>
    %1695 = arith.addf %1686, %1694 : vector<8x128xf32>
    %c121_i32_479 = arith.constant 121 : i32
    %1696 = tpu.dynamic_rotate %1551 by %c121_i32_479 dim 1 : vector<8x128xf32>, i32 -> vector<8x128xf32>
    %cst_480 = arith.constant 0.000000e+00 : f32
    %1697 = vector.shape_cast %235 : vector<1x128xi1> to vector<1x128xi1>
    %1698 = vector.broadcast %1697 : vector<1x128xi1> to vector<8x128xi1>
    %1699 = vector.broadcast %cst_480 : f32 to vector<8x128xf32>
    %1700 = arith.select %1698, %1696, %1699 : vector<8x128xi1>, vector<8x128xf32>
    %1701 = vector.extract_strided_slice %1468 {offsets = [0, 25], sizes = [8, 1], strides = [1, 1]} : vector<8x34xf32> to vector<8x1xf32>
    %1702 = vector.broadcast %1701 : vector<8x1xf32> to vector<8x128xf32>
    %1703 = arith.mulf %1700, %1702 : vector<8x128xf32>
    %1704 = arith.addf %1695, %1703 : vector<8x128xf32>
    %c120_i32_481 = arith.constant 120 : i32
    %1705 = tpu.dynamic_rotate %1551 by %c120_i32_481 dim 1 : vector<8x128xf32>, i32 -> vector<8x128xf32>
    %cst_482 = arith.constant 0.000000e+00 : f32
    %1706 = vector.shape_cast %268 : vector<1x128xi1> to vector<1x128xi1>
    %1707 = vector.broadcast %1706 : vector<1x128xi1> to vector<8x128xi1>
    %1708 = vector.broadcast %cst_482 : f32 to vector<8x128xf32>
    %1709 = arith.select %1707, %1705, %1708 : vector<8x128xi1>, vector<8x128xf32>
    %1710 = vector.extract_strided_slice %1468 {offsets = [0, 26], sizes = [8, 1], strides = [1, 1]} : vector<8x34xf32> to vector<8x1xf32>
    %1711 = vector.broadcast %1710 : vector<8x1xf32> to vector<8x128xf32>
    %1712 = arith.mulf %1709, %1711 : vector<8x128xf32>
    %1713 = arith.addf %1704, %1712 : vector<8x128xf32>
    %c119_i32_483 = arith.constant 119 : i32
    %1714 = tpu.dynamic_rotate %1551 by %c119_i32_483 dim 1 : vector<8x128xf32>, i32 -> vector<8x128xf32>
    %cst_484 = arith.constant 0.000000e+00 : f32
    %1715 = vector.shape_cast %301 : vector<1x128xi1> to vector<1x128xi1>
    %1716 = vector.broadcast %1715 : vector<1x128xi1> to vector<8x128xi1>
    %1717 = vector.broadcast %cst_484 : f32 to vector<8x128xf32>
    %1718 = arith.select %1716, %1714, %1717 : vector<8x128xi1>, vector<8x128xf32>
    %1719 = vector.extract_strided_slice %1468 {offsets = [0, 27], sizes = [8, 1], strides = [1, 1]} : vector<8x34xf32> to vector<8x1xf32>
    %1720 = vector.broadcast %1719 : vector<8x1xf32> to vector<8x128xf32>
    %1721 = arith.mulf %1718, %1720 : vector<8x128xf32>
    %1722 = arith.addf %1713, %1721 : vector<8x128xf32>
    %c118_i32_485 = arith.constant 118 : i32
    %1723 = tpu.dynamic_rotate %1551 by %c118_i32_485 dim 1 : vector<8x128xf32>, i32 -> vector<8x128xf32>
    %cst_486 = arith.constant 0.000000e+00 : f32
    %1724 = vector.shape_cast %654 : vector<1x128xi1> to vector<1x128xi1>
    %1725 = vector.broadcast %1724 : vector<1x128xi1> to vector<8x128xi1>
    %1726 = vector.broadcast %cst_486 : f32 to vector<8x128xf32>
    %1727 = arith.select %1725, %1723, %1726 : vector<8x128xi1>, vector<8x128xf32>
    %1728 = vector.extract_strided_slice %1468 {offsets = [0, 28], sizes = [8, 1], strides = [1, 1]} : vector<8x34xf32> to vector<8x1xf32>
    %1729 = vector.broadcast %1728 : vector<8x1xf32> to vector<8x128xf32>
    %1730 = arith.mulf %1727, %1729 : vector<8x128xf32>
    %1731 = arith.addf %1722, %1730 : vector<8x128xf32>
    %c114_i32_487 = arith.constant 114 : i32
    %1732 = tpu.dynamic_rotate %1551 by %c114_i32_487 dim 1 : vector<8x128xf32>, i32 -> vector<8x128xf32>
    %cst_488 = arith.constant 0.000000e+00 : f32
    %1733 = vector.shape_cast %678 : vector<1x128xi1> to vector<1x128xi1>
    %1734 = vector.broadcast %1733 : vector<1x128xi1> to vector<8x128xi1>
    %1735 = vector.broadcast %cst_488 : f32 to vector<8x128xf32>
    %1736 = arith.select %1734, %1732, %1735 : vector<8x128xi1>, vector<8x128xf32>
    %1737 = vector.extract_strided_slice %1468 {offsets = [0, 29], sizes = [8, 1], strides = [1, 1]} : vector<8x34xf32> to vector<8x1xf32>
    %1738 = vector.broadcast %1737 : vector<8x1xf32> to vector<8x128xf32>
    %1739 = arith.mulf %1736, %1738 : vector<8x128xf32>
    %1740 = arith.addf %1731, %1739 : vector<8x128xf32>
    %c113_i32_489 = arith.constant 113 : i32
    %1741 = tpu.dynamic_rotate %1551 by %c113_i32_489 dim 1 : vector<8x128xf32>, i32 -> vector<8x128xf32>
    %cst_490 = arith.constant 0.000000e+00 : f32
    %1742 = vector.shape_cast %702 : vector<1x128xi1> to vector<1x128xi1>
    %1743 = vector.broadcast %1742 : vector<1x128xi1> to vector<8x128xi1>
    %1744 = vector.broadcast %cst_490 : f32 to vector<8x128xf32>
    %1745 = arith.select %1743, %1741, %1744 : vector<8x128xi1>, vector<8x128xf32>
    %1746 = vector.extract_strided_slice %1468 {offsets = [0, 30], sizes = [8, 1], strides = [1, 1]} : vector<8x34xf32> to vector<8x1xf32>
    %1747 = vector.broadcast %1746 : vector<8x1xf32> to vector<8x128xf32>
    %1748 = arith.mulf %1745, %1747 : vector<8x128xf32>
    %1749 = arith.addf %1740, %1748 : vector<8x128xf32>
    %c112_i32_491 = arith.constant 112 : i32
    %1750 = tpu.dynamic_rotate %1551 by %c112_i32_491 dim 1 : vector<8x128xf32>, i32 -> vector<8x128xf32>
    %cst_492 = arith.constant 0.000000e+00 : f32
    %1751 = vector.shape_cast %726 : vector<1x128xi1> to vector<1x128xi1>
    %1752 = vector.broadcast %1751 : vector<1x128xi1> to vector<8x128xi1>
    %1753 = vector.broadcast %cst_492 : f32 to vector<8x128xf32>
    %1754 = arith.select %1752, %1750, %1753 : vector<8x128xi1>, vector<8x128xf32>
    %1755 = vector.extract_strided_slice %1468 {offsets = [0, 31], sizes = [8, 1], strides = [1, 1]} : vector<8x34xf32> to vector<8x1xf32>
    %1756 = vector.broadcast %1755 : vector<8x1xf32> to vector<8x128xf32>
    %1757 = arith.mulf %1754, %1756 : vector<8x128xf32>
    %1758 = arith.addf %1749, %1757 : vector<8x128xf32>
    %c111_i32_493 = arith.constant 111 : i32
    %1759 = tpu.dynamic_rotate %1551 by %c111_i32_493 dim 1 : vector<8x128xf32>, i32 -> vector<8x128xf32>
    %cst_494 = arith.constant 0.000000e+00 : f32
    %1760 = vector.shape_cast %750 : vector<1x128xi1> to vector<1x128xi1>
    %1761 = vector.broadcast %1760 : vector<1x128xi1> to vector<8x128xi1>
    %1762 = vector.broadcast %cst_494 : f32 to vector<8x128xf32>
    %1763 = arith.select %1761, %1759, %1762 : vector<8x128xi1>, vector<8x128xf32>
    %1764 = vector.extract_strided_slice %1468 {offsets = [0, 32], sizes = [8, 1], strides = [1, 1]} : vector<8x34xf32> to vector<8x1xf32>
    %1765 = vector.broadcast %1764 : vector<8x1xf32> to vector<8x128xf32>
    %1766 = arith.mulf %1763, %1765 : vector<8x128xf32>
    %1767 = arith.addf %1758, %1766 : vector<8x128xf32>
    %c110_i32_495 = arith.constant 110 : i32
    %1768 = tpu.dynamic_rotate %1551 by %c110_i32_495 dim 1 : vector<8x128xf32>, i32 -> vector<8x128xf32>
    %cst_496 = arith.constant 0.000000e+00 : f32
    %1769 = vector.shape_cast %774 : vector<1x128xi1> to vector<1x128xi1>
    %1770 = vector.broadcast %1769 : vector<1x128xi1> to vector<8x128xi1>
    %1771 = vector.broadcast %cst_496 : f32 to vector<8x128xf32>
    %1772 = arith.select %1770, %1768, %1771 : vector<8x128xi1>, vector<8x128xf32>
    %1773 = vector.extract_strided_slice %1468 {offsets = [0, 33], sizes = [8, 1], strides = [1, 1]} : vector<8x34xf32> to vector<8x1xf32>
    %1774 = vector.broadcast %1773 : vector<8x1xf32> to vector<8x128xf32>
    %1775 = arith.mulf %1772, %1774 : vector<8x128xf32>
    %1776 = arith.addf %1767, %1775 : vector<8x128xf32>
    %1777 = tpu.concatenate %1550, %1776 in 0 : vector<8x128xf32>, vector<8x128xf32> -> vector<16x128xf32>
    %c0_497 = arith.constant 0 : index
    %c0_498 = arith.constant 0 : index
    %c0_499 = arith.constant 0 : index
    %1778 = vector.load %arg11[%c0_497, %c0_498, %c0_499] : memref<1x16x16xf32, #tpu.memory_space<vmem>>, vector<1x16x16xf32>
    %1779 = vector.shape_cast %1778 : vector<1x16x16xf32> to vector<16x16xf32>
    %cst_500 = arith.constant dense<0.000000e+00> : vector<16x128xf32>
    %1780 = tpu.matmul %1779, %1777, %cst_500 {dimension_numbers = #tpu.dot_dimension_numbers<[1], [0], [0], [1], [0, 0, 1, 1], [], []>} : vector<16x16xf32>, vector<16x128xf32>, vector<16x128xf32> -> vector<16x128xf32>
    %cst_501 = arith.constant dense<0.000000e+00> : vector<16xf32>
    %1781 = vector.multi_reduction <add>, %1780, %cst_501 [1] : vector<16x128xf32> to vector<16xf32>
    %1782 = vector.shape_cast %1781 : vector<16xf32> to vector<16x1xf32>
    %cst_502 = arith.constant 7.812500e-03 : f32
    %1783 = vector.broadcast %cst_502 : f32 to vector<16x1xf32>
    %1784 = arith.mulf %1782, %1783 : vector<16x1xf32>
    %1785 = vector.broadcast %1784 : vector<16x1xf32> to vector<16x128xf32>
    %1786 = arith.subf %1780, %1785 : vector<16x128xf32>
    %1787 = arith.mulf %1786, %1786 : vector<16x128xf32>
    %cst_503 = arith.constant dense<0.000000e+00> : vector<16xf32>
    %1788 = vector.multi_reduction <add>, %1787, %cst_503 [1] : vector<16x128xf32> to vector<16xf32>
    %1789 = vector.shape_cast %1788 : vector<16xf32> to vector<16x1xf32>
    %cst_504 = arith.constant 7.812500e-03 : f32
    %1790 = vector.broadcast %cst_504 : f32 to vector<16x1xf32>
    %1791 = arith.mulf %1789, %1790 : vector<16x1xf32>
    %cst_505 = arith.constant 9.99999974E-6 : f32
    %1792 = vector.broadcast %cst_505 : f32 to vector<16x1xf32>
    %1793 = arith.addf %1791, %1792 : vector<16x1xf32>
    %1794 = math.rsqrt %1793 : vector<16x1xf32>
    %1795 = vector.broadcast %1794 : vector<16x1xf32> to vector<16x128xf32>
    %1796 = arith.mulf %1786, %1795 : vector<16x128xf32>
    %1797 = vector.extract_strided_slice %1796 {offsets = [0, 0], sizes = [8, 128], strides = [1, 1]} : vector<16x128xf32> to vector<8x128xf32>
    %1798 = vector.extract_strided_slice %1796 {offsets = [8, 0], sizes = [8, 128], strides = [1, 1]} : vector<16x128xf32> to vector<8x128xf32>
    %1799 = arith.index_cast %arg0 : i32 to index
    %c1 = arith.constant 1 : index
    %1800 = memref.load %arg7[%1799, %c1] : memref<14x8xf32, #tpu.memory_space<smem>>
    %1801 = vector.broadcast %1800 : f32 to vector<8x128xf32>
    %1802 = arith.mulf %1801, %331 : vector<8x128xf32>
    %1803 = arith.index_cast %arg0 : i32 to index
    %c2 = arith.constant 2 : index
    %1804 = memref.load %arg7[%1803, %c2] : memref<14x8xf32, #tpu.memory_space<smem>>
    %1805 = vector.broadcast %1804 : f32 to vector<8x128xf32>
    %1806 = arith.mulf %1805, %349 : vector<8x128xf32>
    %1807 = arith.addf %1802, %1806 : vector<8x128xf32>
    %1808 = arith.index_cast %arg0 : i32 to index
    %c3 = arith.constant 3 : index
    %1809 = memref.load %arg7[%1808, %c3] : memref<14x8xf32, #tpu.memory_space<smem>>
    %1810 = vector.broadcast %1809 : f32 to vector<8x128xf32>
    %1811 = arith.mulf %1810, %16 : vector<8x128xf32>
    %1812 = arith.addf %1807, %1811 : vector<8x128xf32>
    %1813 = arith.index_cast %arg0 : i32 to index
    %c4 = arith.constant 4 : index
    %1814 = memref.load %arg7[%1813, %c4] : memref<14x8xf32, #tpu.memory_space<smem>>
    %1815 = vector.broadcast %1814 : f32 to vector<8x128xf32>
    %1816 = arith.mulf %1815, %1797 : vector<8x128xf32>
    %1817 = arith.addf %1812, %1816 : vector<8x128xf32>
    %1818 = arith.index_cast %arg0 : i32 to index
    %c5 = arith.constant 5 : index
    %1819 = memref.load %arg7[%1818, %c5] : memref<14x8xf32, #tpu.memory_space<smem>>
    %1820 = vector.broadcast %1819 : f32 to vector<8x128xf32>
    %1821 = arith.mulf %1820, %1798 : vector<8x128xf32>
    %1822 = arith.addf %1817, %1821 : vector<8x128xf32>
    %1823 = arith.index_cast %arg0 : i32 to index
    %c6 = arith.constant 6 : index
    %1824 = memref.load %arg7[%1823, %c6] : memref<14x8xf32, #tpu.memory_space<smem>>
    %1825 = vector.broadcast %1824 : f32 to vector<8x128xf32>
    %1826 = arith.mulf %1825, %1462 : vector<8x128xf32>
    %1827 = arith.addf %1822, %1826 : vector<8x128xf32>
    %1828 = arith.index_cast %arg0 : i32 to index
    %c7 = arith.constant 7 : index
    %1829 = memref.load %arg7[%1828, %c7] : memref<14x8xf32, #tpu.memory_space<smem>>
    %1830 = vector.broadcast %1829 : f32 to vector<8x128xf32>
    %1831 = arith.mulf %1830, %1463 : vector<8x128xf32>
    %1832 = arith.addf %1827, %1831 : vector<8x128xf32>
    %1833 = arith.index_cast %13 : i32 to index
    %c0_506 = arith.constant 0 : index
    %c0_507 = arith.constant 0 : index
    %1834 = vector.load %arg13[%1833, %c0_506, %c0_507] : memref<6x8x128xf32, #tpu.memory_space<vmem>>, vector<1x8x128xf32>
    %1835 = vector.shape_cast %1834 : vector<1x8x128xf32> to vector<8x128xf32>
    %1836 = arith.addf %1835, %1832 : vector<8x128xf32>
    %1837 = arith.index_cast %13 : i32 to index
    %c0_508 = arith.constant 0 : index
    %c0_509 = arith.constant 0 : index
    %1838 = vector.load %arg13[%1837, %c0_508, %c0_509] : memref<6x8x128xf32, #tpu.memory_space<vmem>>, vector<1x8x128xf32>
    %1839 = vector.shape_cast %1838 : vector<1x8x128xf32> to vector<8x128xf32>
    %1840 = vector.shape_cast %1836 : vector<8x128xf32> to vector<1x8x128xf32>
    tpu.vector_store %arg13[%1837, %c0_508, %c0_509], %1840 {strides = array<i32>} : memref<6x8x128xf32, #tpu.memory_space<vmem>>, vector<1x8x128xf32>,
    %c13_i32 = arith.constant 13 : i32
    %1841 = arith.cmpi eq, %arg0, %c13_i32 : i32
    %1842 = arith.extui %1841 : i1 to i32
    %c0_i32_510 = arith.constant 0 : i32
    %1843 = arith.cmpi ne, %1842, %c0_i32_510 : i32
    scf.if %1843 {
      %c2_511 = arith.constant 2 : index
      %c0_512 = arith.constant 0 : index
      %c0_513 = arith.constant 0 : index
      %1844 = vector.load %arg13[%c2_511, %c0_512, %c0_513] : memref<6x8x128xf32, #tpu.memory_space<vmem>>, vector<1x8x128xf32>
      %1845 = vector.shape_cast %1844 : vector<1x8x128xf32> to vector<8x128xf32>
      %c0_514 = arith.constant 0 : index
      %c0_515 = arith.constant 0 : index
      %1846 = vector.load %arg12[%c0_514, %c0_515] : memref<32x128xf32, #tpu.memory_space<vmem>>, vector<8x128xf32>
      tpu.vector_store %arg12[%c0_514, %c0_515], %1845 {strides = array<i32>} : memref<32x128xf32, #tpu.memory_space<vmem>>, vector<8x128xf32>,
      %c3_516 = arith.constant 3 : index
      %c0_517 = arith.constant 0 : index
      %c0_518 = arith.constant 0 : index
      %1847 = vector.load %arg13[%c3_516, %c0_517, %c0_518] : memref<6x8x128xf32, #tpu.memory_space<vmem>>, vector<1x8x128xf32>
      %1848 = vector.shape_cast %1847 : vector<1x8x128xf32> to vector<8x128xf32>
      %c8 = arith.constant 8 : index
      %c0_519 = arith.constant 0 : index
      %1849 = vector.load %arg12[%c8, %c0_519] : memref<32x128xf32, #tpu.memory_space<vmem>>, vector<8x128xf32>
      tpu.vector_store %arg12[%c8, %c0_519], %1848 {strides = array<i32>} : memref<32x128xf32, #tpu.memory_space<vmem>>, vector<8x128xf32>,
      %c4_520 = arith.constant 4 : index
      %c0_521 = arith.constant 0 : index
      %c0_522 = arith.constant 0 : index
      %1850 = vector.load %arg13[%c4_520, %c0_521, %c0_522] : memref<6x8x128xf32, #tpu.memory_space<vmem>>, vector<1x8x128xf32>
      %1851 = vector.shape_cast %1850 : vector<1x8x128xf32> to vector<8x128xf32>
      %c16 = arith.constant 16 : index
      %c0_523 = arith.constant 0 : index
      %1852 = vector.load %arg12[%c16, %c0_523] : memref<32x128xf32, #tpu.memory_space<vmem>>, vector<8x128xf32>
      tpu.vector_store %arg12[%c16, %c0_523], %1851 {strides = array<i32>} : memref<32x128xf32, #tpu.memory_space<vmem>>, vector<8x128xf32>,
      %c5_524 = arith.constant 5 : index
      %c0_525 = arith.constant 0 : index
      %c0_526 = arith.constant 0 : index
      %1853 = vector.load %arg13[%c5_524, %c0_525, %c0_526] : memref<6x8x128xf32, #tpu.memory_space<vmem>>, vector<1x8x128xf32>
      %1854 = vector.shape_cast %1853 : vector<1x8x128xf32> to vector<8x128xf32>
      %c24 = arith.constant 24 : index
      %c0_527 = arith.constant 0 : index
      %1855 = vector.load %arg12[%c24, %c0_527] : memref<32x128xf32, #tpu.memory_space<vmem>>, vector<8x128xf32>
      tpu.vector_store %arg12[%c24, %c0_527], %1854 {strides = array<i32>} : memref<32x128xf32, #tpu.memory_space<vmem>>, vector<8x128xf32>,
    } else {
    }
    return
  }
  func.func @transform_0(%arg0: i32, %arg1: memref<14xi32, #tpu.memory_space<smem>>, %arg2: memref<14xi32, #tpu.memory_space<smem>>) -> (i32, i32) {
    %c0_i32 = arith.constant 0 : i32
    %c0_i32_0 = arith.constant 0 : i32
    %c0_i32_1 = arith.constant 0 : i32
    return %c0_i32, %c0_i32_0 : i32, i32
  }
  func.func @transform_1(%arg0: i32, %arg1: memref<14xi32, #tpu.memory_space<smem>>, %arg2: memref<14xi32, #tpu.memory_space<smem>>) -> (i32, i32) {
    %c0_i32 = arith.constant 0 : i32
    %c0_i32_0 = arith.constant 0 : i32
    %c0_i32_1 = arith.constant 0 : i32
    return %c0_i32, %c0_i32_0 : i32, i32
  }
  func.func @transform_2(%arg0: i32, %arg1: memref<14xi32, #tpu.memory_space<smem>>, %arg2: memref<14xi32, #tpu.memory_space<smem>>) -> (i32, i32) {
    %c0_i32 = arith.constant 0 : i32
    %c0_i32_0 = arith.constant 0 : i32
    %c0_i32_1 = arith.constant 0 : i32
    return %c0_i32, %c0_i32_0 : i32, i32
  }
  func.func @transform_3(%arg0: i32, %arg1: memref<14xi32, #tpu.memory_space<smem>>, %arg2: memref<14xi32, #tpu.memory_space<smem>>) -> (i32, i32) {
    %c0_i32 = arith.constant 0 : i32
    %c0_i32_0 = arith.constant 0 : i32
    %c0_i32_1 = arith.constant 0 : i32
    return %c0_i32, %c0_i32_0 : i32, i32
  }
  func.func @transform_4(%arg0: i32, %arg1: memref<14xi32, #tpu.memory_space<smem>>, %arg2: memref<14xi32, #tpu.memory_space<smem>>) -> (i32, i32) {
    %c0_i32 = arith.constant 0 : i32
    %c0_i32_0 = arith.constant 0 : i32
    %c0_i32_1 = arith.constant 0 : i32
    return %c0_i32, %c0_i32_0 : i32, i32
  }
  func.func @transform_5(%arg0: i32, %arg1: memref<14xi32, #tpu.memory_space<smem>>, %arg2: memref<14xi32, #tpu.memory_space<smem>>) -> (i32, i32, i32) {
    %c0_i32 = arith.constant 0 : i32
    %c0_i32_0 = arith.constant 0 : i32
    %c0_i32_1 = arith.constant 0 : i32
    return %arg0, %c0_i32, %c0_i32_0 : i32, i32, i32
  }
  func.func @transform_6(%arg0: i32, %arg1: memref<14xi32, #tpu.memory_space<smem>>, %arg2: memref<14xi32, #tpu.memory_space<smem>>) -> (i32, i32, i32) {
    %c0_i32 = arith.constant 0 : i32
    %c0_i32_0 = arith.constant 0 : i32
    %c0_i32_1 = arith.constant 0 : i32
    return %arg0, %c0_i32, %c0_i32_0 : i32, i32, i32
  }
  func.func @transform_7(%arg0: i32, %arg1: memref<14xi32, #tpu.memory_space<smem>>, %arg2: memref<14xi32, #tpu.memory_space<smem>>) -> (i32, i32, i32) {
    %c0_i32 = arith.constant 0 : i32
    %c0_i32_0 = arith.constant 0 : i32
    %c0_i32_1 = arith.constant 0 : i32
    return %arg0, %c0_i32, %c0_i32_0 : i32, i32, i32
  }
  func.func @transform_8(%arg0: i32, %arg1: memref<14xi32, #tpu.memory_space<smem>>, %arg2: memref<14xi32, #tpu.memory_space<smem>>) -> (i32, i32, i32) {
    %c0_i32 = arith.constant 0 : i32
    %c0_i32_0 = arith.constant 0 : i32
    %c0_i32_1 = arith.constant 0 : i32
    return %arg0, %c0_i32, %c0_i32_0 : i32, i32, i32
  }
  func.func @transform_9(%arg0: i32, %arg1: memref<14xi32, #tpu.memory_space<smem>>, %arg2: memref<14xi32, #tpu.memory_space<smem>>) -> (i32, i32) {
    %c0_i32 = arith.constant 0 : i32
    %c0_i32_0 = arith.constant 0 : i32
    %c0_i32_1 = arith.constant 0 : i32
    return %c0_i32, %c0_i32_0 : i32, i32
  }
}

</mosaic_0001>

<bundles_post_ra>
// kernel: cell_forward.1
= control target key start
LH: loop header
LB: loop body
LE: loop exit
PB: predicated region body
PF: predicated region fallthrough
CT: control target
= control target key end

     0   :  { %s2386_s23 = smov [#allocation4]   ;;  %s2387_s24 = smov [#allocation5]   ;;  %s3803_s0 = inlined_call_operand.vmem [shape: s32[14], index: 0, kind: input, shape index: {}]   ;;  %s3804_s2 = inlined_call_operand.vmem [shape: f32[8,128], index: 2, kind: input, shape index: {}]   ;;  %s3805_s3 = inlined_call_operand.vmem [shape: f32[8,128], index: 3, kind: input, shape index: {}]   ;;  %s3806_s4 = inlined_call_operand.vmem [shape: f32[8,8], index: 4, kind: input, shape index: {}]   ;;  %s3807_s5 = inlined_call_operand.vmem [shape: f32[8,8], index: 5, kind: input, shape index: {}]   ;;  %s3808_s6 = inlined_call_operand.vmem [shape: f32[14,8], index: 6, kind: input, shape index: {}]   ;;  %s3809_s7 = inlined_call_operand.vmem [shape: f32[14,8,68], index: 7, kind: input, shape index: {}]   ;;  %s3810_s8 = inlined_call_operand.vmem [shape: f32[14,32,32], index: 8, kind: input, shape index: {}]   ;;  %s3811_s9 = inlined_call_operand.vmem [shape: f32[14,8,34], index: 9, kind: input, shape index: {}]   ;;  %s3812_s10 = inlined_call_operand.vmem [shape: f32[14,16,16], index: 10, kind: input, shape index: {}]   ;;  %s3813_s11 = inlined_call_operand.vmem [shape: f32[32,128], index: 11, kind: output, shape index: {}]   ;;  %s3814_s1 = inlined_call_operand.vmem [shape: s32[14], index: 1, kind: input, shape index: {}]  }
   0x1   :  { %s17_s19 = sshll.u32 %s3803_s0, 4  ;;  %s22_s22 = sshll.u32 %s3814_s1, 4  ;;  %s18_s19 = int_to_ptr.vmem [resolvable:$true] %s17_s19  ;;  %s23_s22 = int_to_ptr.vmem [resolvable:$true] %s22_s22 }
   0x2   :  { %20 = dma.vmem_to_smem %s18_s19, 16, %s2386_s23, [#allocation3] }
   0x3   :  { %25 = dma.vmem_to_smem %s23_s22, 16, %s2387_s24, [#allocation3] }
   0x4   :  { %2376 = dma.done.wait [#allocation3], 32 }
   0x5   :  { %2377 = vsyncadd [#allocation3], 4294967264 }
   0x6   :  { %28 = sfence }
   0x7   :  { %29 = vsyncpa [#allocation7], 0  ;;  %s2567_s25 = smov 0  }
   0x8 LB: > { %s2573_s0 = sadd.s32 4294967295, %s2384_s25   ;;  %p2029_p0 = scmp.ge.s32.totalorder %s2384_s25, 1  ;;  %s2384_s25 = sphi %s2567_s25, %s35_s25  }
   0x9   : > { %p270_p1 = scmp.lt.s32.totalorder %s2384_s25, 15  ;;  %p2030_p2 = scmp.ne.s32.totalorder %s2573_s0, 0 }
   0xa   : > { %s293_s27 = sshll.u32 %s3808_s6, 4  ;;  %p2082_p4 = scmp.eq.s32.totalorder %s2573_s0, 0  ;;  %s294_s27 = int_to_ptr.vmem [resolvable:$true] %s293_s27 }
   0xb   : > { %p271_p3 = pnand %p2029_p0, %p270_p1  ;;  %s2388_s28 = smov [#allocation6]  }
   0xc   : > { %s2389_s29 = smov 128   ;;  %s2390_s30 = smov 8  }
   0xd   : > { %p2078_p5 = pneg %p271_p3  ;;  %339 = sbr.rel (%p271_p3) target bundleno = 2092 (0x82c), region = 56 }
   0xf   : > { %p2079_p6 = pnand %p2082_p4, %p2078_p5 }
  0x11   : > { %2081 = dma.vmem_to_smem (!%p2079_p6), %s294_s27, 256, %s2388_s28, [#allocation7], %s2389_s29, %s2389_s29, %s2390_s30  }
  0x12   : > { %2379 = dma.done.wait (%p2082_p4), [#allocation7], 256  }
  0x13   : > { %2381 = vsyncadd (%p2082_p4), [#allocation7], 4294967040 }
  0x14   : > { %346 = sfence }
  0x15   : > { %p385_p7 = scmp.lt.s32.totalorder %s2573_s0, 13  ;;  %v403_v0 = vlaneseq }
  0x17   : > { %s386_s12 = scalar_select %p385_p7, %s2573_s0, 13  ;;  %v404_v1 = vand.u32 127, %v403_v0 }
  0x18   : > { %411 = sbr.rel (%p2030_p2) target bundleno = 430 (0x1ae), region = 64 }
  0x19   : > { %s2034_s13 = sshll.u32 %s386_s12, 3  ;;  %s2064_s14 = sshll.u32 %s386_s12, 5  ;;  %v2584_v2 = vand.u32 7, %v404_v1  ;;  %v406_v3 = vshra.s32 %v404_v1, 3 }
  0x1a   : > { %s2589_s17 = scalar_lea.vmem %s3809_s7, %s2034_s13  ;;  %s2594_s20 = scalar_lea.vmem %s3810_s8, %s2064_s14 }
  0x1b   : > { %s2599_s23 = scalar_lea.vmem %s3811_s9, %s2034_s13  ;;  %s2065_s24 = sshll.u32 %s386_s12, 4  ;;  %v2601_v4 = vand.u32 7, %v406_v3 }
  0x1c   : > { %s2606_s27 = scalar_lea.vmem %s3812_s10, %s2065_s24 }
  0x1d   : > { %v412_v5 = vld [vmem:[%s3804_s2] sm:$0xff]  ;;  %vm415_vm0 = vcmask 64512   ;;  %v2391_v23 = vmov 0.0  }
  0x1e   : > { %v460_v6 = vld [vmem:[%s3805_s3] sm:$0xff]  ;;  %v413_v7 = vmax.f32 %v412_v5, 0.0  ;;  %509 = vst [vmem:[#allocation2 + $0x10] sm:$0xff] %v2391_v23 }
  0x1f   : > { %v414_v8 = vld [vmem:[%s3806_s4] sm:$0xff]  ;;  %v461_v9 = vmax.f32 %v460_v6, 0.0  ;;  %511 = vst [vmem:[#allocation2 + $0x18] sm:$0xff] %v2391_v23 }
  0x20   : > { %v462_v10 = vld [vmem:[%s3807_s5] sm:$0xff]  ;;  %434 = vmatpush.msra.mxu0 %v413_v7  ;;  %513 = vst [vmem:[#allocation2 + $0x20] sm:$0xff] %v2391_v23 }
  0x21   : > { %481 = vmatpush.msra.mxu1 %v461_v9  ;;  %2041 = vmatmul.msk.f32.vlgmr.msra.gmra.mxu0 %vm415_vm0, %v414_v8  ;;  %515 = vst [vmem:[#allocation2 + $0x28] sm:$0xff] %v2391_v23 }
  0x22   : > { %2042 = vmatmul.msk.f32.vlgmr.msra.gmra.mxu1 %vm415_vm0, %v462_v10 }
  0x9e   : > { %v436_v11 = vpop.f32.mrf.mxu0 }
  0x9f   : > { %439 = vadd.xlane.f32.xlu0 %v436_v11  ;;  %v483_v12 = vpop.f32.mrf.mxu1 }
  0xa7   : > { %486 = vadd.xlane.f32.xlu0 %v483_v12 }
 0x112   : > { %v440_v13 = vpop.xlane.xlu0 %439 }
 0x113   : > { %v441_v14 = vmul.f32 0.0078125, %v440_v13 }
 0x115   : > { %v442_v15 = vsub.f32 %v436_v11, %v441_v14 }
 0x117   : > { %v443_v16 = vmul.f32 %v442_v15, %v442_v15 }
 0x119   : > { %444 = vadd.xlane.f32.xlu1 %v443_v16 }
 0x11a   : > { %v487_v17 = vpop.xlane.xlu0 %486 }
 0x11b   : > { %v488_v18 = vmul.f32 0.0078125, %v487_v17 }
 0x11d   : > { %v489_v19 = vsub.f32 %v483_v12, %v488_v18 }
 0x11f   : > { %v490_v20 = vmul.f32 %v489_v19, %v489_v19 }
 0x121   : > { %491 = vadd.xlane.f32.xlu1 %v490_v20 }
 0x18c   : > { %v445_v21 = vpop.xlane.xlu1 %444 }
 0x18d   : > { %v446_v22 = vmul.f32 0.0078125, %v445_v21 }
 0x18f   : > { %v447_v24 = vadd.f32 1e-05, %v446_v22 }
 0x191   : > { %2207 = vrsqrt.f32 %v447_v24  ;;  %vm454_vm2 = vweird.f32 %v447_v24 }
 0x194   : > { %v492_v25 = vpop.xlane.xlu1 %491 }
 0x195   : > { %v493_v26 = vmul.f32 0.0078125, %v492_v25 }
 0x197   : > { %v2208_v27 = vpop.eup %2207  ;;  %v494_v28 = vadd.f32 1e-05, %v493_v26 }
 0x198   : > { %v449_v29 = vmul.f32 %v2208_v27, %v447_v24  ;;  %vm455_vm1 = vweird.f32 %v2208_v27 }
 0x199   : > { %2209 = vrsqrt.f32 %v494_v28  ;;  %vm456_vm3 = vmor %vm454_vm2, %vm455_vm1  ;;  %vm501_vm5 = vweird.f32 %v494_v28 }
 0x19a   : > { %v450_v30 = vmul.f32 %v2208_v27, %v449_v29 }
 0x19c   : > { %v451_v31 = vmul.f32 0.5, %v450_v30 }
 0x19e   : > { %v452_v32 = vsub.f32 1.5, %v451_v31 }
 0x19f   : > { %v2210_v33 = vpop.eup %2209 }
 0x1a0   : > { %v453_v34 = vmul.f32 %v2208_v27, %v452_v32  ;;  %v496_v35 = vmul.f32 %v2210_v33, %v494_v28  ;;  %vm502_vm4 = vweird.f32 %v2210_v33 }
 0x1a1   : > { %vm503_vm6 = vmor %vm501_vm5, %vm502_vm4 }
 0x1a2   : > { %v457_v36 = vsel %vm456_vm3, %v2208_v27, %v453_v34  ;;  %v497_v37 = vmul.f32 %v2210_v33, %v496_v35 }
 0x1a3   : > { %v458_v38 = vmul.f32 %v457_v36, %v442_v15 }
 0x1a4   : > { %v498_v39 = vmul.f32 0.5, %v497_v37 }
 0x1a5   : > { %459 = vst [vmem:[#allocation2] sm:$0xff] %v458_v38 }
 0x1a6   : > { %v499_v40 = vsub.f32 1.5, %v498_v39 }
 0x1a8   : > { %v500_v41 = vmul.f32 %v2210_v33, %v499_v40 }
 0x1aa   : > { %v504_v42 = vsel %vm503_vm6, %v2210_v33, %v500_v41 }
 0x1ab   : > { %v505_v43 = vmul.f32 %v504_v42, %v489_v19 }
 0x1ad   : > { %507 = vst [vmem:[#allocation2 + $0x8] sm:$0xff] %v505_v43 }
 0x1ae PF: > { %s516_s18 = sld [smem:[#allocation4 + %s2573_s0]]  ;;  %s2392_s22 = smov 9   ;;  %v521_v46 = vadd.s32 4294967295, %v2601_v4  ;;  %v2687_v47 = vadd.s32 4294967295, %v2584_v2  ;;  %v2694_v48 = vadd.s32 1, %v2584_v2  ;;  %vm568_vm9 = vcmp.ge.s32.totalorder %v2601_v4, 0 }
 0x1af   : > { %s3819_s24 = smov 7   ;;  %s3823_s1 = smov 127   ;;  %vm569_vm10 = vcmp.lt.s32.totalorder %v2601_v4, 8  ;;  %v3912_v49 = vmov 0  ;;  %v3914_v50 = vmov 0  ;;  %v2414_v51 = vmov 0.0  }
 0x1b0   : > { %s2395_s26 = smov 8   ;;  %s3817_s28 = smov 1   ;;  %vm522_vm7 = vcmp.ge.s32.totalorder %v521_v46, 0  ;;  %vm523_vm8 = vcmp.lt.s32.totalorder %v521_v46, 8  ;;  %3911 = vst [vmem:[#allocation10_spill] sm:$0xff] %v2694_v48  ;;  %vm3866_vm12 = vcmp.ge.s32.totalorder %v2687_v47, 0  ;;  %vm2716_vm15 = vmand %vm568_vm9, %vm569_vm10 }
 0x1b1   : > { %s2397_s29 = smov 121   ;;  %s3821_s30 = smov 120   ;;  %vm2698_vm11 = vmand %vm522_vm7, %vm523_vm8  ;;  %vm3875_vm13 = vcmp.lt.s32.totalorder %v2694_v48, 8  ;;  %v3919_v55 = vmov 0  ;;  %v3922_v58 = vmov 0  ;;  %v605_v59 = vadd.s32 1, %v2601_v4 }
 0x1b2   : > { %s3815_s14 = smov 119   ;;  %s2400_s12 = smov 18   ;;  %v3913_v49 = vsel %vm2698_vm11, 4294967295, %v3912_v49  ;;  %vm2710_vm14 = vmand %vm2698_vm11, %vm3866_vm12  ;;  %v2045_v52 = vsel %vm2698_vm11, 1.0, %v2414_v51  ;;  %v2048_v63 = vsel %vm2716_vm15, 1.0, %v2414_v51  ;;  %v3925_v0 = vmov 0 }
 0x1b3   : > { %s2401_s13 = smov 16   ;;  %s2402_s15 = smov 17   ;;  %v3915_v50 = vsel %vm2710_vm14, 4294967295, %v3914_v50  ;;  %v2044_v54 = vsel %vm2710_vm14, 1.0, %v2414_v51  ;;  %vm2726_vm0 = vmand %vm2698_vm11, %vm3875_vm13  ;;  %vm606_vm2 = vcmp.ge.s32.totalorder %v605_v59, 0  ;;  %vm607_vm3 = vcmp.lt.s32.totalorder %v605_v59, 8 }
 0x1b4   : > { %s2043_s19 = sshll.u32 %s516_s18, 3  ;;  %s3834_s16 = smov 15   ;;  %3916 = vst [vmem:[#allocation11_spill] sm:$0xff] %v3915_v50  ;;  %v3920_v55 = vsel %vm2726_vm0, 4294967295, %v3919_v55  ;;  %v552_v56 = vadd.f32 %v2045_v52, %v2044_v54  ;;  %v2046_v57 = vsel %vm2726_vm0, 1.0, %v2414_v51  ;;  %vm2736_vm1 = vmand %vm2716_vm15, %vm3866_vm12  ;;  %v3927_v1 = vmov 0 }
 0x1b5   : > { %s2623_s21 = scalar_lea.vmem [#allocation2], %s2043_s19  ;;  %s2404_s18 = smov 10   ;;  %3921 = vst [vmem:[#allocation12_spill] sm:$0xff] %v3920_v55  ;;  %v3923_v58 = vsel %vm2736_vm1, 4294967295, %v3922_v58  ;;  %v2047_v61 = vsel %vm2736_vm1, 1.0, %v2414_v51  ;;  %vm2751_vm4 = vmand %vm606_vm2, %vm607_vm3  ;;  %v3930_v6 = vmov 0 }
 0x1b6   : > { %v2626_v44 = vld [vmem:[%s2623_s21] sm:$0xff]  ;;  %s3826_s19 = smov 14   ;;  %3924 = vst [vmem:[#allocation13_spill] sm:$0xff] %v3923_v58  ;;  %v567_v60 = vadd.f32 %v2046_v57, %v552_v56  ;;  %v3926_v0 = vsel %vm2751_vm4, 4294967295, %v3925_v0  ;;  %vm2759_vm5 = vmand %vm2716_vm15, %vm3875_vm13  ;;  %v2051_v10 = vsel %vm2751_vm4, 1.0, %v2414_v51  ;;  %v3933_v11 = vmov 0 }
 0x1b7   : > { %530 = vrot.lane.b32.xlu0 %v2626_v44, %s2392_s22  ;;  %558 = vrot.lane.b32.xlu1 %v2626_v44, %s3819_s24  ;;  %v2641_v45 = vmax.f32 %v2626_v44, 0.0  ;;  %v3928_v1 = vsel %vm2759_vm5, 4294967295, %v3927_v1  ;;  %v2049_v5 = vsel %vm2759_vm5, 1.0, %v2414_v51  ;;  %vm2769_vm6 = vmand %vm2751_vm4, %vm3866_vm12  ;;  %v3841_v14 = vmov 2   ;;  %p2061_p8 = scmp.ne.s32.totalorder %s2573_s0, 13 }
 0x1b8   : > { %595 = vrot.lane.b32.xlu2 %v2626_v44, %s3823_s1  ;;  %v582_v62 = vadd.f32 %v2047_v61, %v567_v60  ;;  %3929 = vst [vmem:[#allocation14_spill] sm:$0xff] %v3928_v1  ;;  %v3931_v6 = vsel %vm2769_vm6, 4294967295, %v3930_v6  ;;  %v2050_v8 = vsel %vm2769_vm6, 1.0, %v2414_v51  ;;  %vm2782_vm7 = vmand %vm2751_vm4, %vm3875_vm13  ;;  %2213 = vset.pattern.permute.xlu0 %v3841_v14  ;;  %v587_v37 = vsel %vm2716_vm15, %v2626_v44, -inf }
 0x1b9   : > { %3932 = vst [vmem:[#allocation15_spill] sm:$0xff] %v3931_v6  ;;  %v3934_v11 = vsel %vm2782_vm7, 4294967295, %v3933_v11  ;;  %v2052_v13 = vsel %vm2782_vm7, 1.0, %v2414_v51  ;;  %v589_v38 = vsel %vm2716_vm15, %v2626_v44, 0.0  ;;  %v2453_v14 = vmov 45  }
 0x1ba   : > { %v592_v3 = vadd.f32 %v2048_v63, %v582_v62  ;;  %v2469_v58 = vmov 63   ;;  %v2471_v50 = vmov 39   ;;  %v2481_v48 = vmov 21  }
 0x1bc   : > { %v604_v7 = vadd.f32 %v2049_v5, %v592_v3 }
 0x1be   : > { %v620_v9 = vadd.f32 %v2050_v8, %v604_v7  ;;  %v2832_v7 = vld [vmem:[%s2589_s17] sm:$0xff] }
 0x1bf   : > { %543 = vrot.lane.b32.xlu0 %v2626_v44, %s2395_s26  ;;  %573 = vrot.lane.b32.xlu1 %v2626_v44, %s3817_s28 }
 0x1c0   : > { %611 = vrot.lane.b32.xlu2 %v2626_v44, %s2397_s29  ;;  %v632_v12 = vadd.f32 %v2051_v10, %v620_v9 }
 0x1c2   : > { %v644_v15 = vadd.f32 %v2052_v13, %v632_v12 }
 0x1c4   : > { %2313 = vrcp.f32 %v644_v15  ;;  %vm670_vm8 = vweird.f32 %v644_v15  ;;  %v676_v42 = vand.u32 2147483648, %v644_v15  ;;  %v674_v54 = vand.u32 2147483647, %v644_v15 }
 0x1c6   : > { %v677_v8 = vor.u32 1.1754944e-38, %v676_v42  ;;  %vm675_vm2 = vcmp.eq.f32.partialorder %v674_v54, 8.507059e+37  ;;  %v3839_v42 = vmov 3  }
 0x1c7   : > { %623 = vrot.lane.b32.xlu0 %v2626_v44, %s3821_s30  ;;  %635 = vrot.lane.b32.xlu1 %v2626_v44, %s3815_s14 }
 0x1c8   : > { %701 = vrot.lane.b32.xlu2 %v2641_v45, %s2392_s22 }
 0x1ca   : > { %v2314_v18 = vpop.eup %2313 }
 0x1cb   : > { %v666_v19 = vmul.f32 %v2314_v18, %v644_v15  ;;  %vm671_vm9 = vweird.f32 %v2314_v18 }
 0x1cc   : > { %vm2819_vm10 = vmor %vm670_vm8, %vm671_vm9 }
 0x1cd   : > { %v667_v23 = vsub.f32 1.0, %v666_v19 }
 0x1cf   : > { %704 = vrot.lane.b32.xlu0 %v2641_v45, %s2395_s26  ;;  %707 = vrot.lane.b32.xlu1 %v2641_v45, %s3819_s24  ;;  %s2408_s24 = smov 2   ;;  %v668_v36 = vmul.f32 %v2314_v18, %v667_v23  ;;  %v3837_v23 = vmov 7  }
 0x1d0   : > { %714 = vrot.lane.b32.xlu2 %v2641_v45, %s3823_s1  ;;  %s3830_s1 = smov 114  }
 0x1d1   : > { %v669_v52 = vadd.f32 %v2314_v18, %v668_v36 }
 0x1d3   : > { %v673_v12 = vsel %vm2819_vm10, %v2314_v18, %v669_v52  ;;  %v3840_v52 = vmov 5  }
 0x1d4   : > { %v678_v19 = vsel %vm675_vm2, %v677_v8, %v673_v12  ;;  %v3846_v12 = vmov 13  }
 0x1d7   : > { %710 = vrot.lane.b32.xlu0 %v2641_v45, %s3817_s28  ;;  %717 = vrot.lane.b32.xlu1 %v2641_v45, %s2397_s29  ;;  %s3825_s28 = smov 126  }
 0x1d8   : > { %723 = vrot.lane.b32.xlu2 %v2641_v45, %s3815_s14  ;;  %s2406_s14 = smov 6  }
 0x1df   : > { %720 = vrot.lane.b32.xlu0 %v2641_v45, %s3821_s30  ;;  %735 = vrot.lane.b32.xlu1 %v2641_v45, %s2400_s12  ;;  %s3827_s30 = smov 122  }
 0x1e0   : > { %749 = vrot.lane.b32.xlu2 %v2641_v45, %s2401_s13 }
 0x1e7   : > { %742 = vrot.lane.b32.xlu0 %v2641_v45, %s2402_s15  ;;  %756 = vrot.lane.b32.xlu1 %v2641_v45, %s3834_s16  ;;  %s2438_s16 = smov 100  }
 0x1e8   : > { %773 = vrot.lane.b32.xlu2 %v2641_v45, %s2404_s18 }
 0x1ef   : > { %766 = vrot.lane.b32.xlu0 %v2641_v45, %s3826_s19  ;;  %780 = vrot.lane.b32.xlu1 %v2641_v45, %s2406_s14  ;;  %s3833_s19 = smov 113  }
 0x1f0   : > { %794 = vrot.lane.b32.xlu2 %v2641_v45, %s3825_s28  ;;  %s3829_s28 = smov 118  }
 0x1f7   : > { %787 = vrot.lane.b32.xlu0 %v2641_v45, %s2408_s24  ;;  %801 = vrot.lane.b32.xlu1 %v2641_v45, %s3827_s30  ;;  %s3828_s30 = smov 111  }
 0x1f8   : > { %819 = vrot.lane.b32.xlu2 %v2641_v45, %s3830_s1  ;;  %s2417_s1 = smov 34  }
 0x1ff   : > { %808 = vrot.lane.b32.xlu0 %v2641_v45, %s3829_s28  ;;  %826 = vrot.lane.b32.xlu1 %v2641_v45, %s3833_s19  ;;  %s3832_s28 = smov 110   ;;  %s2434_s19 = smov 20  }
 0x200   : > { %840 = vrot.lane.b32.xlu2 %v2641_v45, %s3828_s30  ;;  %s3831_s30 = smov 112  }
 0x207   : > { %833 = vrot.lane.b32.xlu0 %v2641_v45, %s3831_s30  ;;  %847 = vrot.lane.b32.xlu1 %v2641_v45, %s3832_s28  ;;  %s2418_s30 = smov 36   ;;  %s2423_s28 = smov 98  }
 0x208   : > { %868 = vrot.lane.b32.xlu2 %v2641_v45, %s2417_s1  ;;  %s2419_s1 = smov 30  }
 0x20f   : > { %861 = vrot.lane.b32.xlu0 %v2641_v45, %s2418_s30  ;;  %s2421_s30 = smov 12  }
 0x212   : > { %v596_v20 = vpop.permute.xlu2 %595 }
 0x213   : > { %v599_v56 = vsel %vm2759_vm5, %v596_v20, -inf  ;;  %v601_v44 = vsel %vm2759_vm5, %v596_v20, 0.0 }
 0x217   : > { %882 = vrot.lane.b32.xlu0 %v2641_v45, %s2419_s1  ;;  %s2422_s1 = smov 116  }
 0x21a   : > { %v612_v41 = vpop.permute.xlu2 %611 }
 0x21b   : > { %v615_v59 = vsel %vm2769_vm6, %v612_v41, -inf  ;;  %v617_v63 = vsel %vm2769_vm6, %v612_v41, 0.0 }
 0x21f   : > { %906 = vrot.lane.b32.xlu0 %v2641_v45, %s2421_s30  ;;  %s2429_s30 = smov 28  }
 0x227   : > { %927 = vrot.lane.b32.xlu0 %v2641_v45, %s2422_s1  ;;  %s2430_s1 = smov 32  }
 0x229   : > { %v531_v16 = vpop.permute.xlu0 %530  ;;  %v559_v17 = vpop.permute.xlu1 %558 }
 0x22a   : > { %v534_v24 = vsel %vm2710_vm14, %v531_v16, -inf  ;;  %v535_v25 = vsel %vm2710_vm14, %v531_v16, 0.0  ;;  %v562_v30 = vsel %vm2726_vm0, %v559_v17, -inf  ;;  %v564_v31 = vsel %vm2726_vm0, %v559_v17, 0.0 }
 0x22f   : > { %952 = vrot.lane.b32.xlu0 %v2641_v45, %s2423_s28  ;;  %s2424_s28 = smov 92  }
 0x231   : > { %v544_v21 = vpop.permute.xlu0 %543  ;;  %v574_v22 = vpop.permute.xlu1 %573 }
 0x232   : > { %v547_v26 = vsel %vm2698_vm11, %v544_v21, -inf  ;;  %v549_v27 = vsel %vm2698_vm11, %v544_v21, 0.0  ;;  %v577_v32 = vsel %vm2736_vm1, %v574_v22, -inf  ;;  %v579_v33 = vsel %vm2736_vm1, %v574_v22, 0.0 }
 0x233   : > { %v548_v28 = vmax.f32 %v534_v24, %v547_v26  ;;  %v550_v29 = vadd.f32 %v549_v27, %v535_v25  ;;  %v3847_v25 = vmov 12   ;;  %v2427_v27 = vmov 46  }
 0x235   : > { %v563_v34 = vmax.f32 %v548_v28, %v562_v30  ;;  %v565_v35 = vadd.f32 %v564_v31, %v550_v29  ;;  %v3843_v29 = vmov 0   ;;  %v2862_v30 = vpop.permute.xlu2 %701 }
 0x236   : > { %2211 = vset.pattern.permute.xlu2 %v3843_v29 }
 0x237   : > { %v578_v39 = vmax.f32 %v563_v34, %v577_v32  ;;  %v580_v40 = vadd.f32 %v579_v33, %v565_v35  ;;  %973 = vrot.lane.b32.xlu0 %v2641_v45, %s2424_s28  ;;  %v2431_v32 = vmov 50   ;;  %s2432_s28 = smov 4   ;;  %v3842_v33 = vmov 1  }
 0x238   : > { %2212 = vset.pattern.permute.xlu1 %v3842_v33  ;;  %v3845_v33 = vmov 15  }
 0x239   : > { %v588_v43 = vmax.f32 %v578_v39, %v587_v37  ;;  %v590_v46 = vadd.f32 %v589_v38, %v580_v40  ;;  %v624_v51 = vpop.permute.xlu0 %623  ;;  %v636_v62 = vpop.permute.xlu1 %635 }
 0x23a   : > { %v627_v3 = vsel %vm2751_vm4, %v624_v51, -inf  ;;  %v629_v5 = vsel %vm2751_vm4, %v624_v51, 0.0  ;;  %v641_v13 = vsel %vm2782_vm7, %v636_v62, 0.0  ;;  %v639_v15 = vsel %vm2782_vm7, %v636_v62, -inf }
 0x23b   : > { %v600_v60 = vmax.f32 %v588_v43, %v599_v56  ;;  %v602_v61 = vadd.f32 %v601_v44, %v590_v46  ;;  %v3838_v56 = vmov 4  }
 0x23d   : > { %v616_v9 = vmax.f32 %v600_v60, %v615_v59  ;;  %v618_v10 = vadd.f32 %v617_v63, %v602_v61  ;;  %v2871_v34 = vpop.permute.xlu2 %714  ;;  %v3836_v59 = vmov 8   ;;  %v3835_v60 = vmov 6  }
 0x23f   : > { %v628_v16 = vmax.f32 %v616_v9, %v627_v3  ;;  %v630_v17 = vadd.f32 %v629_v5, %v618_v10  ;;  %993 = vperm.xlu0 %2213, %v2832_v7   ;;  %v3851_v3 = vmov 10   ;;  %v3852_v5 = vmov 9  }
 0x241   : > { %v2841_v20 = vpop.permute.xlu0 %704  ;;  %v2843_v21 = vmax.f32 %v628_v16, %v639_v15  ;;  %v642_v22 = vadd.f32 %v641_v13, %v630_v17  ;;  %v2885_v39 = vpop.permute.xlu1 %707  ;;  %v3848_v15 = vmov 11  }
 0x243   : > { %645 = vadd.xlane.f32.xlu2 %v2843_v21  ;;  %v2846_v18 = vmul.f32 %v678_v19, %v642_v22  ;;  %v3844_v19 = vmov 17   ;;  %v2450_v22 = vmov 44  }
 0x245   : > { %680 = vadd.xlane.f32.xlu1 %v2846_v18  ;;  %v2879_v37 = vpop.permute.xlu2 %723 }
 0x247   : > { %2218 = vset.pattern.permute.xlu0 %v3837_v23 }
 0x248   : > { %1023 = vperm.xlu0 %2218, %v2832_v7  }
 0x249   : > { %v2851_v24 = vpop.permute.xlu0 %710  ;;  %v2894_v43 = vpop.permute.xlu1 %717 }
 0x24d   : > { %v2888_v40 = vpop.permute.xlu2 %749 }
 0x250   : > { %2223 = vset.pattern.permute.xlu0 %v3847_v25  ;;  %v2460_v25 = vmov 55  }
 0x251   : > { %1053 = vperm.xlu0 %2223, %v2832_v7   ;;  %v2855_v26 = vpop.permute.xlu0 %720  ;;  %v2904_v54 = vpop.permute.xlu1 %735 }
 0x255   : > { %v2897_v46 = vpop.permute.xlu2 %773 }
 0x259   : > { %2228 = vset.pattern.permute.xlu0 %v2427_v27  ;;  %v2857_v28 = vpop.permute.xlu0 %742  ;;  %v2915_v61 = vpop.permute.xlu1 %756 }
 0x25a   : > { %1257 = vperm.xlu0 %2228, %v2832_v7  }
 0x25b   : > { %892 = vrot.lane.b32.xlu2 %v2641_v45, %s2429_s30  ;;  %s2435_s30 = smov 108  }
 0x25d   : > { %v2908_v44 = vpop.permute.xlu2 %794 }
 0x25e   : > { %875 = vrot.lane.b32.xlu1 %v2641_v45, %s2430_s1  ;;  %s2436_s1 = smov 124  }
 0x261   : > { %v2865_v31 = vpop.permute.xlu0 %766  ;;  %v2928_v9 = vpop.permute.xlu1 %780 }
 0x262   : > { %2233 = vset.pattern.permute.xlu0 %v2431_v32  ;;  %v2451_v32 = vmov 43  }
 0x263   : > { %1281 = vperm.xlu0 %2233, %v2832_v7   ;;  %913 = vrot.lane.b32.xlu2 %v2641_v45, %s2432_s28  ;;  %s2437_s28 = smov 96  }
 0x265   : > { %v2920_v63 = vpop.permute.xlu2 %819 }
 0x266   : > { %899 = vrot.lane.b32.xlu1 %v2641_v45, %s2434_s19  ;;  %s2439_s19 = smov 94  }
 0x269   : > { %v2873_v35 = vpop.permute.xlu0 %787  ;;  %v2938_v16 = vpop.permute.xlu1 %801 }
 0x26b   : > { %934 = vrot.lane.b32.xlu2 %v2641_v45, %s2435_s30  ;;  %2238 = vset.pattern.permute.xlu0 %v3844_v19  ;;  %v2459_v19 = vmov 51  }
 0x26d   : > { %v2930_v10 = vpop.permute.xlu2 %840 }
 0x26e   : > { %920 = vrot.lane.b32.xlu1 %v2641_v45, %s2436_s1  ;;  %3938 = vst [vmem:[#allocation17_spill] sm:$0xff] %v2930_v10 }
 0x271   : > { %v2877_v36 = vpop.permute.xlu0 %808 }
 0x273   : > { %959 = vrot.lane.b32.xlu2 %v2641_v45, %s2437_s28 }
 0x275   : > { %v2940_v17 = vpop.permute.xlu2 %868 }
 0x276   : > { %945 = vrot.lane.b32.xlu1 %v2641_v45, %s2438_s16  ;;  %s3263_s16 = sshll.u32 %s2573_s0, 7 }
 0x277   : > { %s1893_s30 = sadd.s32 1, %s3263_s16  ;;  %s1897_s1 = sadd.s32 2, %s3263_s16 }
 0x278   : > { %s3270_s28 = sld [smem:[#allocation6 + %s1893_s30]]  ;;  %s4048_s30 = smov 119  }
 0x279   : > { %v2883_v38 = vpop.permute.xlu0 %833 }
 0x27b   : > { %981 = vperm.xlu2 %2211, %v2832_v7  }
 0x27e   : > { %966 = vrot.lane.b32.xlu1 %v2641_v45, %s2439_s19  ;;  %s3272_s19 = sld [smem:[#allocation6 + %s1897_s1]]  ;;  %s4050_s1 = smov 118  }
 0x281   : > { %v2891_v41 = vpop.permute.xlu0 %861 }
 0x283   : > { %2214 = vset.pattern.permute.xlu2 %v3839_v42  ;;  %v2452_v42 = vmov 47  }
 0x284   : > { %999 = vperm.xlu2 %2214, %v2832_v7  }
 0x286   : > { %987 = vperm.xlu1 %2212, %v2832_v7  }
 0x289   : > { %v2900_v51 = vpop.permute.xlu0 %882 }
 0x28c   : > { %2216 = vset.pattern.permute.xlu2 %v3840_v52 }
 0x28d   : > { %1011 = vperm.xlu2 %2216, %v2832_v7  }
 0x28e   : > { %2215 = vset.pattern.permute.xlu1 %v3838_v56  ;;  %v2952_v56 = vsel %vm2751_vm4, %v2855_v26, 0.0 }
 0x28f   : > { %1005 = vperm.xlu1 %2215, %v2832_v7  }
 0x291   : > { %v2910_v57 = vpop.permute.xlu0 %906 }
 0x295   : > { %2219 = vset.pattern.permute.xlu2 %v3836_v59 }
 0x296   : > { %1029 = vperm.xlu2 %2219, %v2832_v7  }
 0x297   : > { %2217 = vset.pattern.permute.xlu1 %v3835_v60  ;;  %v2947_v60 = vpop.permute.xlu1 %826 }
 0x298   : > { %1017 = vperm.xlu1 %2217, %v2832_v7  }
 0x299   : > { %v2918_v62 = vpop.permute.xlu0 %927 }
 0x29e   : > { %2221 = vset.pattern.permute.xlu2 %v3851_v3  ;;  %v3853_v3 = vmov 22  }
 0x29f   : > { %1041 = vperm.xlu2 %2221, %v2832_v7  }
 0x2a0   : > { %2220 = vset.pattern.permute.xlu1 %v3852_v5  ;;  %v3854_v5 = vmov 18  }
 0x2a1   : > { %v2925_v8 = vpop.permute.xlu0 %952  ;;  %1035 = vperm.xlu1 %2220, %v2832_v7  }
 0x2a2   : > { %3937 = vst [vmem:[#allocation16_spill] sm:$0xff] %v2925_v8  ;;  %v3855_v8 = vmov 26  }
 0x2a7   : > { %2224 = vset.pattern.permute.xlu2 %v3846_v12 }
 0x2a8   : > { %1059 = vperm.xlu2 %2224, %v2832_v7  }
 0x2a9   : > { %v2934_v13 = vpop.permute.xlu0 %973  ;;  %2222 = vset.pattern.permute.xlu1 %v3848_v15 }
 0x2aa   : > { %3939 = vst [vmem:[#allocation18_spill] sm:$0xff] %v2934_v13  ;;  %1047 = vperm.xlu1 %2222, %v2832_v7   ;;  %v3856_v13 = vmov 19  }
 0x2b0   : > { %2226 = vset.pattern.permute.xlu2 %v2450_v22 }
 0x2b1   : > { %1245 = vperm.xlu2 %2226, %v2832_v7   ;;  %v2944_v27 = vpop.permute.xlu0 %993 }
 0x2b2   : > { %2225 = vset.pattern.permute.xlu1 %v2451_v32 }
 0x2b3   : > { %1239 = vperm.xlu1 %2225, %v2832_v7  }
 0x2b6   : > { %v646_v59 = vpop.xlane.xlu2 %645 }
 0x2b7   : > { %v647_v23 = vmul.f32 0.0078125, %v646_v59 }
 0x2b9   : > { %2229 = vset.pattern.permute.xlu2 %v2452_v42  ;;  %v2955_v22 = vsub.f32 %v2843_v21, %v647_v23  ;;  %v2966_v42 = vpop.permute.xlu1 %847  ;;  %v2454_v21 = vmov 49   ;;  %v2455_v23 = vmov 48  }
 0x2ba   : > { %1263 = vperm.xlu2 %2229, %v2832_v7   ;;  %v1024_v52 = vpop.permute.xlu0 %1023 }
 0x2bb   : > { %v2959_v32 = vmul.f32 %v1024_v52, %v2952_v56  ;;  %2227 = vset.pattern.permute.xlu1 %v2453_v14  ;;  %v649_v59 = vmul.f32 %v2955_v22, %v2955_v22 }
 0x2bc   : > { %1251 = vperm.xlu1 %2227, %v2832_v7  }
 0x2bd   : > { %650 = vadd.xlane.f32.xlu0 %v649_v59  ;;  %v3849_v59 = vmov 14  }
 0x2be   : > { %v2964_v26 = vpop.permute.xlu2 %892 }
 0x2c1   : > { %v681_v14 = vpop.xlane.xlu1 %680 }
 0x2c2   : > { %2231 = vset.pattern.permute.xlu2 %v2454_v21 }
 0x2c3   : > { %1275 = vperm.xlu2 %2231, %v2832_v7  }
 0x2c4   : > { %2230 = vset.pattern.permute.xlu1 %v2455_v23  ;;  %v3850_v23 = vmov 16  }
 0x2c5   : > { %1269 = vperm.xlu1 %2230, %v2832_v7  }
 0x2c6   : > { %v2970_v52 = vpop.permute.xlu2 %913 }
 0x2cb   : > { %2234 = vset.pattern.permute.xlu2 %v3845_v33 }
 0x2cc   : > { %1071 = vperm.xlu2 %2234, %v2832_v7  }
 0x2cd   : > { %2232 = vset.pattern.permute.xlu1 %v3849_v59  ;;  %v2461_v59 = vmov 52  }
 0x2ce   : > { %1065 = vperm.xlu1 %2232, %v2832_v7   ;;  %v2976_v21 = vpop.permute.xlu2 %934 }
 0x2d0   : > { %v2978_v29 = vpop.permute.xlu1 %875 }
 0x2d1   : > { %1083 = vperm.xlu0 %2238, %v2832_v7  }
 0x2d4   : > { %2236 = vset.pattern.permute.xlu2 %v3850_v23 }
 0x2d5   : > { %1077 = vperm.xlu2 %2236, %v2832_v7  }
 0x2d6   : > { %2235 = vset.pattern.permute.xlu1 %v2459_v19  ;;  %v2983_v33 = vpop.permute.xlu2 %959 }
 0x2d7   : > { %3940 = vst [vmem:[#allocation19_spill] sm:$0xff] %v2983_v33  ;;  %1287 = vperm.xlu1 %2235, %v2832_v7   ;;  %v682_v33 = vmul.f32 0.0078125, %v681_v14  ;;  %v3016_v14 = vsel %vm2710_vm14, %v2862_v30, 0.0 }
 0x2d8   : > { %v2986_v12 = vpop.permute.xlu1 %899 }
 0x2d9   : > { %2243 = vset.pattern.permute.xlu0 %v2460_v25  ;;  %v2464_v25 = vmov 60  }
 0x2da   : > { %1311 = vperm.xlu0 %2243, %v2832_v7  }
 0x2de   : > { %v982_v15 = vpop.permute.xlu2 %981 }
 0x2df   : > { %2237 = vset.pattern.permute.xlu1 %v2461_v59 }
 0x2e0   : > { %1293 = vperm.xlu1 %2237, %v2832_v7   ;;  %v2990_v23 = vpop.permute.xlu1 %920 }
 0x2e2   : > { %2248 = vset.pattern.permute.xlu0 %v3853_v3 }
 0x2e3   : > { %1113 = vperm.xlu0 %2248, %v2832_v7  }
 0x2e6   : > { %v1000_v19 = vpop.permute.xlu2 %999 }
 0x2e8   : > { %2240 = vset.pattern.permute.xlu1 %v3854_v5  ;;  %v2995_v10 = vpop.permute.xlu1 %945  ;;  %v2467_v5 = vmov 53  }
 0x2e9   : > { %3941 = vst [vmem:[#allocation20_spill] sm:$0xff] %v2995_v10  ;;  %1089 = vperm.xlu1 %2240, %v2832_v7   ;;  %2239 = vset.pattern.permute.xlu2 %v2467_v5  ;;  %v3011_v10 = vsub.f32 %v2846_v18, %v682_v33  ;;  %v3023_v5 = vsel %vm2736_vm1, %v2851_v24, 0.0  ;;  %v2468_v18 = vmov 56  }
 0x2ea   : > { %v1002_v24 = vmul.f32 %v1000_v19, %v3023_v5 }
 0x2eb   : > { %2253 = vset.pattern.permute.xlu0 %v2464_v25  ;;  %v3008_v25 = vsel %vm2698_vm11, %v2841_v20, 0.0  ;;  %v3028_v20 = vsel %vm2726_vm0, %v2885_v39, 0.0 }
 0x2ec   : > { %1341 = vperm.xlu0 %2253, %v2832_v7   ;;  %v996_v30 = vmul.f32 %v2944_v27, %v3028_v20  ;;  %v3042_v27 = vsel %vm2716_vm15, %v2641_v45, 0.0 }
 0x2ee   : > { %v1012_v3 = vpop.permute.xlu2 %1011 }
 0x2f0   : > { %v2999_v59 = vpop.permute.xlu1 %966 }
 0x2f1   : > { %3942 = vst [vmem:[#allocation21_spill] sm:$0xff] %v2999_v59  ;;  %2242 = vset.pattern.permute.xlu1 %v3856_v13  ;;  %v984_v13 = vmul.f32 %v982_v15, %v3016_v14  ;;  %v684_v15 = vmul.f32 %v3011_v10, %v3011_v10 }
 0x2f2   : > { %1095 = vperm.xlu1 %2242, %v2832_v7  }
 0x2f4   : > { %2258 = vset.pattern.permute.xlu0 %v3855_v8 }
 0x2f5   : > { %1137 = vperm.xlu0 %2258, %v2832_v7  }
 0x2f8   : > { %v988_v59 = vpop.permute.xlu1 %987 }
 0x2f9   : > { %v990_v8 = vmul.f32 %v988_v59, %v3008_v25  ;;  %v3033_v59 = vpop.permute.xlu2 %1029 }
 0x2fa   : > { %2245 = vset.pattern.permute.xlu1 %v2468_v18  ;;  %3943 = vst [vmem:[#allocation22_spill] sm:$0xff] %v3033_v59  ;;  %v2470_v18 = vmov 57  }
 0x2fb   : > { %1317 = vperm.xlu1 %2245, %v2832_v7   ;;  %v991_v33 = vadd.f32 %v990_v8, %v984_v13 }
 0x2fd   : > { %2263 = vset.pattern.permute.xlu0 %v2469_v58  ;;  %v997_v55 = vadd.f32 %v996_v30, %v991_v33  ;;  %v3056_v33 = vsel %vm2769_vm6, %v2894_v43, 0.0  ;;  %v3067_v43 = vadd.s32 4294967294, %v2584_v2 }
 0x2fe   : > { %685 = vadd.xlane.f32.xlu2 %v684_v15  ;;  %1359 = vperm.xlu0 %2263, %v2832_v7  }
 0x2ff   : > { %v1003_v39 = vadd.f32 %v1002_v24, %v997_v55  ;;  %v3050_v55 = vsel %vm2759_vm5, %v2871_v34, 0.0  ;;  %vm3870_vm10 = vcmp.ge.s32.totalorder %v3067_v43, 0 }
 0x300   : > { %v1014_v45 = vmul.f32 %v1012_v3, %v3050_v55 }
 0x301   : > { %v1006_v8 = vpop.permute.xlu1 %1005  ;;  %v1042_v19 = vpop.permute.xlu2 %1041 }
 0x302   : > { %v1008_v13 = vmul.f32 %v1006_v8, %v3042_v27  ;;  %v3863_v8 = vmov 31  }
 0x303   : > { %2247 = vset.pattern.permute.xlu1 %v2470_v18 }
 0x304   : > { %1323 = vperm.xlu1 %2247, %v2832_v7   ;;  %v1009_v58 = vadd.f32 %v1008_v13, %v1003_v39  ;;  %v726_v39 = vadd.s32 4294967294, %v2601_v4 }
 0x306   : > { %2268 = vset.pattern.permute.xlu0 %v2471_v50  ;;  %v1015_v15 = vadd.f32 %v1014_v45, %v1009_v58  ;;  %v3865_v50 = vmov 23   ;;  %vm727_vm3 = vcmp.ge.s32.totalorder %v726_v39, 0  ;;  %vm728_vm8 = vcmp.lt.s32.totalorder %v726_v39, 8 }
 0x307   : > { %1215 = vperm.xlu0 %2268, %v2832_v7   ;;  %vm3070_vm9 = vmand %vm727_vm3, %vm728_vm8  ;;  %v3864_v45 = vmov 24   ;;  %v3867_v39 = vmov 33  }
 0x308   : > { %vm3079_vm2 = vmand %vm3070_vm9, %vm3870_vm10 }
 0x309   : > { %v1060_v13 = vpop.permute.xlu2 %1059  ;;  %vm3090_vm3 = vmand %vm3070_vm9, %vm3866_vm12 }
 0x30a   : > { %v1018_v30 = vpop.permute.xlu1 %1017  ;;  %vm3112_vm8 = vmand %vm3070_vm9, %vm3875_vm13 }
 0x30b   : > { %v1020_v24 = vmul.f32 %v1018_v30, %v3056_v33  ;;  %v3950_v30 = vmov 0 }
 0x30c   : > { %2250 = vset.pattern.permute.xlu1 %v3865_v50  ;;  %v3951_v30 = vsel %vm3090_vm3, 4294967295, %v3950_v30  ;;  %v3953_v50 = vmov 0 }
 0x30d   : > { %1119 = vperm.xlu1 %2250, %v2832_v7   ;;  %v1021_v34 = vadd.f32 %v1020_v24, %v1015_v15  ;;  %3952 = vst [vmem:[#allocation25_spill] sm:$0xff] %v3951_v30  ;;  %v3095_v15 = vadd.s32 2, %v2584_v2  ;;  %v3100_v24 = vsel %vm3079_vm2, %v2904_v54, 0.0  ;;  %v3954_v50 = vsel %vm3112_vm8, 4294967295, %v3953_v50 }
 0x30e   : > { %3955 = vst [vmem:[#allocation26_spill] sm:$0xff] %v3954_v50  ;;  %v852_v30 = vadd.s32 4294967292, %v2601_v4  ;;  %v2480_v50 = vmov 62  }
 0x30f   : > { %2273 = vset.pattern.permute.xlu0 %v3863_v8  ;;  %v3064_v3 = vadd.f32 %v2959_v32, %v1021_v34  ;;  %v3947_v32 = vmov 0  ;;  %v746_v8 = vsel %vm3090_vm3, %v2857_v28, 0.0  ;;  %vm3876_vm12 = vcmp.lt.s32.totalorder %v3095_v15, 8 }
 0x310   : > { %1167 = vperm.xlu0 %2273, %v2832_v7   ;;  %v3948_v32 = vsel %vm3079_vm2, 4294967295, %v3947_v32  ;;  %v1044_v54 = vmul.f32 %v1042_v19, %v746_v8  ;;  %vm3126_vm10 = vmand %vm3070_vm9, %vm3876_vm12  ;;  %v3956_v28 = vmov 0  ;;  %v2476_v8 = vmov 34  }
 0x311   : > { %3944 = vst [vmem:[#allocation23_spill] sm:$0xff] %v3064_v3  ;;  %v3957_v28 = vsel %vm3126_vm10, 4294967295, %v3956_v28  ;;  %vm853_vm13 = vcmp.ge.s32.totalorder %v852_v30, 0  ;;  %vm854_vm12 = vcmp.lt.s32.totalorder %v852_v30, 8  ;;  %vm3963_vm0 = vcmp.lt.s32.totalorder %v3095_v15, 8 }
 0x312   : > { %3949 = vst [vmem:[#allocation24_spill] sm:$0xff] %v3948_v32  ;;  %v2477_v32 = vmov 54   ;;  %vm3147_vm6 = vmand %vm853_vm13, %vm854_vm12  ;;  %vm3962_vm12 = vcmp.ge.s32.totalorder %v3067_v43, 0 }
 0x313   : > { %v1036_v18 = vpop.permute.xlu1 %1035  ;;  %3958 = vst [vmem:[#allocation27_spill] sm:$0xff] %v3957_v28  ;;  %vm866_vm13 = vmand %vm3147_vm6, %vm3962_vm12 }
 0x314   : > { %v1038_v34 = vmul.f32 %v1036_v18, %v3100_v24  ;;  %v3119_v18 = vsel %vm3070_vm9, %v2888_v40, 0.0  ;;  %v760_v40 = vsel %vm3112_vm8, %v2915_v61, 0.0  ;;  %v872_v30 = vsel %vm866_vm13, %v2940_v17, 0.0 }
 0x315   : > { %2252 = vset.pattern.permute.xlu1 %v3864_v45  ;;  %v1246_v45 = vpop.permute.xlu2 %1245  ;;  %vm3965_vm13 = vcmp.ge.s32.totalorder %v3067_v43, 0 }
 0x316   : > { %1125 = vperm.xlu1 %2252, %v2832_v7   ;;  %1299 = vperm.xlu2 %2239, %v2832_v7   ;;  %v1045_v1 = vadd.f32 %v1044_v54, %v1038_v34  ;;  %v3959_v54 = vmov 9  }
 0x318   : > { %2278 = vset.pattern.permute.xlu0 %v3867_v39  ;;  %v1054_v39 = vpop.permute.xlu0 %1053 }
 0x319   : > { %1179 = vperm.xlu0 %2278, %v2832_v7   ;;  %v1056_v3 = vmul.f32 %v1054_v39, %v760_v40 }
 0x31c   : > { %v1048_v6 = vpop.permute.xlu1 %1047 }
 0x31d   : > { %v1050_v19 = vmul.f32 %v1048_v6, %v3119_v18  ;;  %v3140_v6 = vsel %vm3126_vm10, %v2865_v31, 0.0  ;;  %v1264_v39 = vpop.permute.xlu2 %1263  ;;  %v2478_v31 = vmov 61  }
 0x31e   : > { %2255 = vset.pattern.permute.xlu1 %v2476_v8  ;;  %2241 = vset.pattern.permute.xlu2 %v2477_v32  ;;  %v1062_v34 = vmul.f32 %v1060_v13, %v3140_v6  ;;  %v3145_v32 = vadd.s32 4294967292, %v2584_v2  ;;  %v1248_v8 = vmul.f32 %v1246_v45, %v872_v30 }
 0x31f   : > { %v1051_v59 = vadd.f32 %v1050_v19, %v1045_v1  ;;  %1185 = vperm.xlu1 %2255, %v2832_v7   ;;  %1305 = vperm.xlu2 %2241, %v2832_v7  }
 0x320   : > { %vm3885_vm1 = vcmp.ge.s32.totalorder %v3145_v32, 0 }
 0x321   : > { %v1057_v61 = vadd.f32 %v1056_v3, %v1051_v59  ;;  %2279 = vset.pattern.permute.xlu0 %v3959_v54  ;;  %vm858_vm5 = vmand %vm3147_vm6, %vm3885_vm1  ;;  %v3886_v59 = vmov 20  }
 0x322   : > { %v865_v3 = vsel %vm858_vm5, %v2891_v41, 0.0  ;;  %vm881_vm1 = vmand %vm3147_vm6, %vm3963_vm0  ;;  %v1258_v41 = vpop.permute.xlu0 %1257  ;;  %vm3964_vm5 = vcmp.ge.s32.totalorder %v3145_v32, 0 }
 0x323   : > { %v1063_v1 = vadd.f32 %v1062_v34, %v1057_v61  ;;  %v886_v34 = vsel %vm881_vm1, %v2900_v51, 0.0  ;;  %v879_v61 = vsel %vm3147_vm6, %v2978_v29, 0.0  ;;  %v3177_v51 = vadd.s32 4, %v2584_v2  ;;  %vm897_vm12 = vmand %vm3070_vm9, %vm3964_vm5 }
 0x324   : > { %vm3968_vm5 = vcmp.lt.s32.totalorder %v3095_v15, 8 }
 0x325   : > { %v1240_v19 = vpop.permute.xlu1 %1239  ;;  %v1276_v54 = vpop.permute.xlu2 %1275  ;;  %vm3890_vm0 = vcmp.lt.s32.totalorder %v3177_v51, 8 }
 0x326   : > { %v1242_v13 = vmul.f32 %v1240_v19, %v865_v3  ;;  %v1260_v19 = vmul.f32 %v1258_v41, %v886_v34  ;;  %vm891_vm1 = vmand %vm3147_vm6, %vm3890_vm0 }
 0x327   : > { %2257 = vset.pattern.permute.xlu1 %v2478_v31  ;;  %2244 = vset.pattern.permute.xlu2 %v3886_v59  ;;  %v896_v2 = vsel %vm891_vm1, %v2964_v26, 0.0  ;;  %vm3196_vm6 = vmand %vm2698_vm11, %vm3965_vm13 }
 0x328   : > { %1347 = vperm.xlu1 %2257, %v2832_v7   ;;  %1101 = vperm.xlu2 %2244, %v2832_v7   ;;  %v1249_v59 = vadd.f32 %v1248_v8, %v1242_v13  ;;  %v1266_v13 = vmul.f32 %v1264_v39, %v896_v2  ;;  %v777_v34 = vsel %vm3196_vm6, %v2897_v46, 0.0  ;;  %v1278_v39 = vmul.f32 %v1276_v54, %v3100_v24  ;;  %vm905_vm1 = vmand %vm3070_vm9, %vm3890_vm0 }
 0x329   : > { %v910_v54 = vsel %vm905_vm1, %v2910_v57, 0.0  ;;  %vm3240_vm1 = vmand %vm2716_vm15, %vm3965_vm13  ;;  %vm3975_vm0 = vcmp.lt.s32.totalorder %v3095_v15, 8 }
 0x32d   : > { %v1072_v45 = vpop.permute.xlu2 %1071 }
 0x32e   : > { %v1252_v31 = vpop.permute.xlu1 %1251 }
 0x32f   : > { %v1254_v28 = vmul.f32 %v1252_v31, %v879_v61 }
 0x330   : > { %2260 = vset.pattern.permute.xlu1 %v2480_v50  ;;  %2246 = vset.pattern.permute.xlu2 %v2481_v48  ;;  %v2482_v50 = vmov 37  }
 0x331   : > { %v1255_v3 = vadd.f32 %v1254_v28, %v1249_v59  ;;  %1353 = vperm.xlu1 %2260, %v2832_v7   ;;  %1107 = vperm.xlu2 %2246, %v2832_v7   ;;  %v2483_v28 = vmov 58   ;;  %v903_v59 = vsel %vm897_vm12, %v2986_v12, 0.0  ;;  %v2484_v12 = vmov 38   ;;  %vm3226_vm12 = vmand %vm2698_vm11, %vm3968_vm5 }
 0x332   : > { %vm3973_vm5 = vcmp.ge.s32.totalorder %v3145_v32, 0  ;;  %vm3978_vm11 = vcmp.lt.s32.totalorder %v3177_v51, 8 }
 0x333   : > { %v1261_v29 = vadd.f32 %v1260_v19, %v1255_v3  ;;  %v2485_v19 = vmov 59   ;;  %v1074_v3 = vmul.f32 %v1072_v45, %v3016_v14  ;;  %v3898_v14 = vmov 29   ;;  %vm911_vm13 = vmand %vm2716_vm15, %vm3973_vm5 }
 0x334   : > { %vm919_vm14 = vmand %vm2716_vm15, %vm3978_vm11 }
 0x335   : > { %v1267_v8 = vadd.f32 %v1266_v13, %v1261_v29  ;;  %v1078_v26 = vpop.permute.xlu2 %1077  ;;  %v1282_v29 = vpop.permute.xlu0 %1281 }
 0x336   : > { %v1080_v46 = vmul.f32 %v1078_v26, %v3008_v25  ;;  %v2489_v26 = vmov 35  }
 0x337   : > { %v1270_v17 = vpop.permute.xlu1 %1269 }
 0x338   : > { %v1272_v30 = vmul.f32 %v1270_v17, %v903_v59  ;;  %v1284_v59 = vmul.f32 %v1282_v29, %v3119_v18 }
 0x339   : > { %2262 = vset.pattern.permute.xlu1 %v2482_v50  ;;  %2249 = vset.pattern.permute.xlu2 %v2483_v28 }
 0x33a   : > { %1203 = vperm.xlu1 %2262, %v2832_v7   ;;  %1329 = vperm.xlu2 %2249, %v2832_v7   ;;  %v1273_v41 = vadd.f32 %v1272_v30, %v1267_v8 }
 0x33c   : > { %v1279_v28 = vadd.f32 %v1278_v39, %v1273_v41 }
 0x33d   : > { %v651_v25 = vpop.xlane.xlu0 %650 }
 0x33e   : > { %v1285_v30 = vadd.f32 %v1284_v59, %v1279_v28  ;;  %v652_v28 = vmul.f32 0.0078125, %v651_v25 }
 0x340   : > { %v1066_v61 = vpop.permute.xlu1 %1065 }
 0x341   : > { %v1068_v31 = vmul.f32 %v1066_v61, %v777_v34 }
 0x342   : > { %2265 = vset.pattern.permute.xlu1 %v2484_v12  ;;  %2251 = vset.pattern.permute.xlu2 %v2485_v19  ;;  %v3969_v19 = vmov 0 }
 0x343   : > { %v1069_v50 = vadd.f32 %v1068_v31, %v1063_v1  ;;  %1209 = vperm.xlu1 %2265, %v2832_v7   ;;  %1335 = vperm.xlu2 %2251, %v2832_v7   ;;  %v2487_v1 = vmov 25   ;;  %v3897_v31 = vmov 30   ;;  %v3970_v19 = vsel %vm3226_vm12, 4294967295, %v3969_v19 }
 0x345   : > { %v1075_v17 = vadd.f32 %v1074_v3, %v1069_v50  ;;  %v1084_v12 = vpop.permute.xlu0 %1083  ;;  %v784_v3 = vsel %vm3226_vm12, %v2928_v9, 0.0  ;;  %v653_v9 = vadd.f32 1e-05, %v652_v28  ;;  %v917_v28 = vsel %vm911_vm13, %v2970_v52, 0.0  ;;  %vm3278_vm13 = vmand %vm2716_vm15, %vm3975_vm0 }
 0x346   : > { %v1086_v57 = vmul.f32 %v1084_v12, %v3028_v20  ;;  %v3971_v20 = vmov 0  ;;  %v3976_v52 = vmov 0 }
 0x347   : > { %v1081_v2 = vadd.f32 %v1080_v46, %v1075_v17  ;;  %v2490_v46 = vmov 66   ;;  %v2491_v17 = vmov 36   ;;  %v3972_v20 = vsel %vm3240_vm1, 4294967295, %v3971_v20 }
 0x348   : > { %2315 = vrsqrt.f32 %v653_v9  ;;  %v3977_v52 = vsel %vm3278_vm13, 4294967295, %v3976_v52  ;;  %vm660_vm12 = vweird.f32 %v653_v9 }
 0x349   : > { %v1288_v13 = vpop.permute.xlu1 %1287  ;;  %v1087_v39 = vadd.f32 %v1086_v57, %v1081_v2  ;;  %v3247_v2 = vsel %vm3240_vm1, %v2873_v35, 0.0 }
 0x34a   : > { %v1290_v8 = vmul.f32 %v1288_v13, %v3140_v6 }
 0x34b   : > { %2267 = vset.pattern.permute.xlu1 %v3898_v14  ;;  %2254 = vset.pattern.permute.xlu2 %v2487_v1 }
 0x34c   : > { %v1291_v45 = vadd.f32 %v1290_v8, %v1285_v30  ;;  %1155 = vperm.xlu1 %2267, %v2832_v7   ;;  %1131 = vperm.xlu2 %2254, %v2832_v7   ;;  %v2492_v8 = vmov 67  }
 0x352   : > { %v1294_v34 = vpop.permute.xlu1 %1293 }
 0x353   : > { %v1296_v61 = vmul.f32 %v1294_v34, %v910_v54  ;;  %v2316_v54 = vpop.eup %2315 }
 0x354   : > { %2270 = vset.pattern.permute.xlu1 %v3897_v31  ;;  %2256 = vset.pattern.permute.xlu2 %v2489_v26  ;;  %v655_v35 = vmul.f32 %v2316_v54, %v653_v9  ;;  %v3899_v26 = vmov 28   ;;  %vm661_vm5 = vweird.f32 %v2316_v54 }
 0x355   : > { %v1297_v41 = vadd.f32 %v1296_v61, %v1291_v45  ;;  %1161 = vperm.xlu1 %2270, %v2832_v7   ;;  %1191 = vperm.xlu2 %2256, %v2832_v7   ;;  %v3900_v45 = vmov 27   ;;  %v2494_v61 = vmov 42   ;;  %vm662_vm1 = vmor %vm660_vm12, %vm661_vm5  ;;  %vm3979_vm5 = vcmp.ge.s32.totalorder %v3067_v43, 0 }
 0x35b   : > { %v1090_v50 = vpop.permute.xlu1 %1089 }
 0x35c   : > { %v1092_v29 = vmul.f32 %v1090_v50, %v784_v3  ;;  %v656_v3 = vmul.f32 %v2316_v54, %v655_v35 }
 0x35d   : > { %2272 = vset.pattern.permute.xlu1 %v2490_v46  ;;  %2259 = vset.pattern.permute.xlu2 %v2491_v17  ;;  %v2496_v46 = vmov 64   ;;  %v3974_v17 = vmov 10  }
 0x35e   : > { %v1093_v59 = vadd.f32 %v1092_v29, %v1087_v39  ;;  %1377 = vperm.xlu1 %2272, %v2832_v7   ;;  %1197 = vperm.xlu2 %2259, %v2832_v7   ;;  %v657_v29 = vmul.f32 0.5, %v656_v3 }
 0x364   : > { %v1096_v13 = vpop.permute.xlu1 %1095 }
 0x365   : > { %v1098_v30 = vmul.f32 %v1096_v13, %v3247_v2 }
 0x366   : > { %2275 = vset.pattern.permute.xlu1 %v2492_v8  ;;  %2261 = vset.pattern.permute.xlu2 %v3900_v45 }
 0x367   : > { %v3251_v25 = vadd.f32 %v1098_v30, %v1093_v59  ;;  %1383 = vperm.xlu1 %2275, %v2832_v7   ;;  %1143 = vperm.xlu2 %2261, %v2832_v7   ;;  %v658_v30 = vsub.f32 1.5, %v657_v29  ;;  %v1312_v29 = vpop.permute.xlu0 %1311 }
 0x36d   : > { %v1318_v34 = vpop.permute.xlu1 %1317 }
 0x36f   : > { %2277 = vset.pattern.permute.xlu1 %v2494_v61  ;;  %2264 = vset.pattern.permute.xlu2 %v3899_v26 }
 0x370   : > { %1233 = vperm.xlu1 %2277, %v2832_v7   ;;  %1149 = vperm.xlu2 %2264, %v2832_v7  }
 0x371   : > { %v686_v12 = vpop.xlane.xlu2 %685 }
 0x372   : > { %v687_v57 = vmul.f32 0.0078125, %v686_v12  ;;  %v659_v12 = vmul.f32 %v2316_v54, %v658_v30 }
 0x374   : > { %v688_v50 = vadd.f32 1e-05, %v687_v57 }
 0x376   : > { %2317 = vrsqrt.f32 %v688_v50  ;;  %v1324_v39 = vpop.permute.xlu1 %1323  ;;  %vm695_vm12 = vweird.f32 %v688_v50 }
 0x378   : > { %2266 = vset.pattern.permute.xlu2 %v2496_v46  ;;  %2280 = vset.pattern.permute.xlu1 %v3974_v17  ;;  %v2497_v46 = vmov 65  }
 0x379   : > { %1365 = vperm.xlu2 %2266, %v2832_v7   ;;  %v1300_v59 = vpop.permute.xlu2 %1299 }
 0x37a   : > { %v1302_v13 = vmul.f32 %v1300_v59, %v917_v28  ;;  %v1314_v28 = vmul.f32 %v1312_v29, %v3042_v27 }
 0x37c   : > { %v2318_v8 = vpop.eup %2317  ;;  %v1303_v35 = vadd.f32 %v1302_v13, %v1297_v41  ;;  %v663_v13 = vsel %vm662_vm1, %v2316_v54, %v659_v12  ;;  %v924_v54 = vsel %vm919_vm14, %v2990_v23, 0.0 }
 0x37d   : > { %v690_v61 = vmul.f32 %v2318_v8, %v688_v50  ;;  %vm696_vm0 = vweird.f32 %v2318_v8  ;;  %v664_v29 = vmul.f32 %v663_v13, %v2955_v22  ;;  %v2498_v22 = vmov 40  }
 0x37e   : > { %vm697_vm1 = vmor %vm695_vm12, %vm696_vm0 }
 0x37f   : > { %v691_v57 = vmul.f32 %v2318_v8, %v690_v61  ;;  %v1120_v3 = vpop.permute.xlu1 %1119  ;;  %v3292_v61 = vsel %vm3278_vm13, %v2908_v44, 0.0  ;;  %vm3312_vm0 = vmand %vm2751_vm4, %vm3979_vm5 }
 0x381   : > { %v692_v41 = vmul.f32 0.5, %v691_v57  ;;  %2269 = vset.pattern.permute.xlu2 %v2497_v46  ;;  %v1306_v17 = vpop.permute.xlu2 %1305  ;;  %v1320_v46 = vmul.f32 %v1318_v34, %v3292_v61 }
 0x382   : > { %v1308_v59 = vmul.f32 %v1306_v17, %v3247_v2  ;;  %1371 = vperm.xlu2 %2269, %v2832_v7   ;;  %v1899_v17 = vstv %s3272_s19  ;;  %s4061_s19 = smov 112  }
 0x383   : > { %v693_v30 = vsub.f32 1.5, %v692_v41  ;;  %v1895_v41 = vstv %s3270_s28  ;;  %s4053_s28 = smov 111  }
 0x384   : > { %v1309_v9 = vadd.f32 %v1308_v59, %v1303_v35  ;;  %v1326_v59 = vmul.f32 %v1324_v39, %v924_v54  ;;  %v1896_v45 = vmul.f32 %v1895_v41, %v664_v29  ;;  %v805_v29 = vsel %vm3312_vm0, %v2938_v16, 0.0 }
 0x385   : > { %v694_v57 = vmul.f32 %v2318_v8, %v693_v30  ;;  %v3986_v16 = vmov 0 }
 0x386   : > { %v1315_v12 = vadd.f32 %v1314_v28, %v1309_v9  ;;  %v2499_v9 = vmov 41  }
 0x387   : > { %v698_v31 = vsel %vm697_vm1, %v2318_v8, %v694_v57  ;;  %v813_v8 = vadd.s32 2, %v2601_v4  ;;  %vm3984_vm1 = vcmp.ge.s32.totalorder %v3145_v32, 0 }
 0x388   : > { %v699_v35 = vmul.f32 %v698_v31, %v3011_v10  ;;  %v1126_v14 = vpop.permute.xlu1 %1125  ;;  %v1321_v26 = vadd.f32 %v1320_v46, %v1315_v12  ;;  %v1114_v10 = vpop.permute.xlu0 %1113 }
 0x389   : > { %v1102_v44 = vpop.permute.xlu2 %1101  ;;  %vm814_vm11 = vcmp.ge.s32.totalorder %v813_v8, 0  ;;  %vm815_vm14 = vcmp.lt.s32.totalorder %v813_v8, 8  ;;  %v1128_v46 = vmul.f32 %v1126_v14, %v805_v29 }
 0x38a   : > { %v1900_v30 = vmul.f32 %v1899_v17, %v699_v35  ;;  %v1104_v50 = vmul.f32 %v1102_v44, %v3023_v5  ;;  %2271 = vset.pattern.permute.xlu2 %v2498_v22  ;;  %v1327_v34 = vadd.f32 %v1326_v59, %v1321_v26  ;;  %v1116_v5 = vmul.f32 %v1114_v10, %v3050_v55  ;;  %vm3317_vm12 = vmand %vm814_vm11, %vm815_vm14 }
 0x38b   : > { %1221 = vperm.xlu2 %2271, %v2832_v7   ;;  %vm925_vm13 = vmand %vm3317_vm12, %vm3984_vm1  ;;  %v1122_v55 = vmul.f32 %v1120_v3, %v3292_v61  ;;  %v2500_v44 = vmov 32   ;;  %v3349_v22 = vsel %vm3317_vm12, %v2883_v38, 0.0  ;;  %v3988_v10 = vmov 14  }
 0x38c   : > { %v3302_v23 = vadd.f32 %v1900_v30, %v1896_v45  ;;  %v1105_v28 = vadd.f32 %v1104_v50, %v3251_v25  ;;  %v3980_v45 = vmov 0  ;;  %v2331_v30 = vld [vmem:[%s2589_s17] sm:$0xff]  ;;  %vm3985_vm11 = vmmov %vm3979_vm5  ;;  %s4033_s17 = smov 15  }
 0x38d   : > { %v3981_v45 = vsel %vm3312_vm0, 4294967295, %v3980_v45  ;;  %vm3336_vm14 = vmand %vm3317_vm12, %vm3985_vm11  ;;  %vm3996_vm0 = vcmp.ge.s32.totalorder %v2687_v47, 0 }
 0x38e   : > { %v3987_v16 = vsel %vm3336_vm14, 4294967295, %v3986_v16 }
 0x390   : > { %v1342_v14 = vpop.permute.xlu0 %1341 }
 0x391   : > { %v1186_v31 = vpop.permute.xlu1 %1185  ;;  %v1108_v39 = vpop.permute.xlu2 %1107 }
 0x392   : > { %v1110_v13 = vmul.f32 %v1108_v39, %v3042_v27 }
 0x393   : > { %2274 = vset.pattern.permute.xlu2 %v2499_v9 }
 0x394   : > { %v1111_v25 = vadd.f32 %v1110_v13, %v1105_v28  ;;  %1227 = vperm.xlu2 %2274, %v2832_v7   ;;  %v931_v7 = vsel %vm925_vm13, %v2918_v62, 0.0  ;;  %v3343_v62 = vsel %vm3336_vm14, %v2920_v63, 0.0  ;;  %vm3989_vm13 = vcmp.lt.s32.totalorder %v3095_v15, 8 }
 0x395   : > { %vm3366_vm5 = vmand %vm3317_vm12, %vm3989_vm13 }
 0x396   : > { %v1117_v57 = vadd.f32 %v1116_v5, %v1111_v25  ;;  %vm3992_vm1 = vmmov %vm3989_vm13 }
 0x397   : > { %vm3379_vm11 = vmand %vm2751_vm4, %vm3992_vm1  ;;  %vm3995_vm1 = vcmp.lt.s32.totalorder %v3177_v51, 8 }
 0x398   : > { %v1123_v54 = vadd.f32 %v1122_v55, %v1117_v57  ;;  %v1138_v13 = vpop.permute.xlu0 %1137 }
 0x399   : > { %v1330_v12 = vpop.permute.xlu2 %1329  ;;  %v1140_v5 = vmul.f32 %v1138_v13, %v2952_v56 }
 0x39a   : > { %v1332_v41 = vmul.f32 %v1330_v12, %v931_v7  ;;  %v1348_v17 = vpop.permute.xlu1 %1347  ;;  %v1129_v35 = vadd.f32 %v1128_v46, %v1123_v54  ;;  %v1188_v54 = vmul.f32 %v1186_v31, %v3100_v24  ;;  %v3990_v24 = vmov 0 }
 0x39b   : > { %v3991_v24 = vsel %vm3366_vm5, 4294967295, %v3990_v24 }
 0x39c   : > { %v1333_v59 = vadd.f32 %v1332_v41, %v1327_v34  ;;  %2276 = vset.pattern.permute.xlu2 %v2500_v44  ;;  %v1344_v34 = vmul.f32 %v1342_v14, %v3349_v22 }
 0x39d   : > { %1173 = vperm.xlu2 %2276, %v2331_v30  }
 0x3a0   : > { %v1360_v12 = vpop.permute.xlu0 %1359 }
 0x3a1   : > { %v1336_v3 = vpop.permute.xlu2 %1335 }
 0x3a2   : > { %v1338_v50 = vmul.f32 %v1336_v3, %v3343_v62 }
 0x3a3   : > { %v1354_v8 = vpop.permute.xlu1 %1353 }
 0x3a4   : > { %v1339_v28 = vadd.f32 %v1338_v50, %v1333_v59  ;;  %v939_v50 = vadd.s32 4, %v2601_v4 }
 0x3a5   : > { %2284 = vset.pattern.permute.xlu2 %v3988_v10 }
 0x3a6   : > { %v1345_v39 = vadd.f32 %v1344_v34, %v1339_v28  ;;  %vm940_vm13 = vcmp.ge.s32.totalorder %v939_v50, 0  ;;  %vm941_vm14 = vcmp.lt.s32.totalorder %v939_v50, 8 }
 0x3a8   : > { %v1216_v3 = vpop.permute.xlu0 %1215 }
 0x3a9   : > { %v1132_v9 = vpop.permute.xlu2 %1131 }
 0x3aa   : > { %v1134_v63 = vmul.f32 %v1132_v9, %v3056_v33 }
 0x3ac   : > { %v1135_v25 = vadd.f32 %v1134_v63, %v1129_v35  ;;  %v1204_v55 = vpop.permute.xlu1 %1203 }
 0x3ad   : > { %v1206_v30 = vmul.f32 %v1204_v55, %v3247_v2  ;;  %v3387_v2 = vsel %vm3366_vm5, %v2966_v42, 0.0  ;;  %vm3401_vm5 = vmand %vm3317_vm12, %vm3996_vm0  ;;  %vm4002_vm0 = vcmp.ge.s32.totalorder %v3067_v43, 0  ;;  %v4006_v43 = vld [vmem:[#allocation19_spill] sm:$0xff] }
 0x3ae   : > { %v1141_v57 = vadd.f32 %v1140_v5, %v1135_v25  ;;  %v1350_v31 = vmul.f32 %v1348_v17, %v3387_v2 }
 0x3b0   : > { %v1351_v13 = vadd.f32 %v1350_v31, %v1345_v39  ;;  %v1168_v47 = vpop.permute.xlu0 %1167  ;;  %v830_v39 = vsel %vm3401_vm5, %v2947_v60, 0.0 }
 0x3b1   : > { %v1192_v29 = vpop.permute.xlu2 %1191 }
 0x3b2   : > { %v1194_v38 = vmul.f32 %v1192_v29, %v3119_v18  ;;  %v3373_v18 = vsel %vm2782_vm7, %v2879_v37, 0.0  ;;  %v812_v37 = vsel %vm3379_vm11, %v2877_v36, 0.0  ;;  %vm933_vm7 = vmand %vm3317_vm12, %vm3995_vm1  ;;  %vm4001_vm1 = vcmp.ge.s32.totalorder %v3145_v32, 0  ;;  %v4003_v29 = vld [vmem:[#allocation20_spill] sm:$0xff] }
 0x3b3   : > { %v938_v9 = vsel %vm933_vm7, %v2976_v21, 0.0  ;;  %v1170_v32 = vmul.f32 %v1168_v47, %v3349_v22  ;;  %v1218_v47 = vmul.f32 %v1216_v3, %v3292_v61 }
 0x3b4   : > { %v1195_v41 = vadd.f32 %v1194_v38, %v1188_v54  ;;  %v1356_v25 = vmul.f32 %v1354_v8, %v938_v9 }
 0x3b5   : > { %v3356_v46 = vpop.permute.xlu1 %1209 }
 0x3b6   : > { %v1357_v21 = vadd.f32 %v1356_v25, %v1351_v13 }
 0x3b8   : > { %v1180_v61 = vpop.permute.xlu0 %1179 }
 0x3b9   : > { %v1198_v7 = vpop.permute.xlu2 %1197 }
 0x3ba   : > { %v1200_v59 = vmul.f32 %v1198_v7, %v3140_v6  ;;  %v3993_v6 = vmov 0 }
 0x3bb   : > { %v3994_v6 = vsel %vm3379_vm11, 4294967295, %v3993_v6  ;;  %vm3405_vm11 = vmand %vm940_vm13, %vm941_vm14  ;;  %vm4005_vm14 = vcmp.lt.s32.totalorder %v3095_v15, 8  ;;  %v4009_v15 = vld [vmem:[#allocation18_spill] sm:$0xff] }
 0x3bc   : > { %v1201_v33 = vadd.f32 %v1200_v59, %v1195_v41  ;;  %vm943_vm4 = vmand %vm3405_vm11, %vm4001_vm1  ;;  %v4004_v41 = vld [vmem:[#allocation16_spill] sm:$0xff]  ;;  %v963_v50 = vsel %vm3405_vm11, %v4006_v43, 0.0  ;;  %v1389_v43 = vld [vmem:[%s2594_s20 + $0x8] sm:$0xff] }
 0x3bd   : > { %vm950_vm7 = vmand %vm3405_vm11, %vm4002_vm0  ;;  %v949_v38 = vsel %vm943_vm4, %v4003_v29, 0.0  ;;  %vm4007_vm4 = vcmp.lt.s32.totalorder %v3177_v51, 8 }
 0x3be   : > { %v1207_v14 = vadd.f32 %v1206_v30, %v1201_v33  ;;  %v1156_v56 = vpop.permute.xlu1 %1155  ;;  %v1362_v7 = vmul.f32 %v1360_v12, %v949_v38  ;;  %v956_v8 = vsel %vm950_vm7, %v4004_v41, 0.0  ;;  %vm965_vm13 = vmand %vm3405_vm11, %vm4005_vm14  ;;  %vm3910_vm7 = vcmask 261120  }
 0x3bf   : > { %v1158_v63 = vmul.f32 %v1156_v56, %v3343_v62  ;;  %vm972_vm1 = vmand %vm3405_vm11, %vm4007_vm4 }
 0x3c0   : > { %v1363_v60 = vadd.f32 %v1362_v7, %v1357_v21  ;;  %v1182_v7 = vmul.f32 %v1180_v61, %v3387_v2 }
 0x3c1   : > { %v1144_v35 = vpop.permute.xlu2 %1143 }
 0x3c2   : > { %v1146_v4 = vmul.f32 %v1144_v35, %v3373_v18 }
 0x3c4   : > { %v1147_v10 = vadd.f32 %v1146_v4, %v1141_v57 }
 0x3c7   : > { %v1162_v34 = vpop.permute.xlu1 %1161 }
 0x3c8   : > { %v1164_v55 = vmul.f32 %v1162_v34, %v830_v39 }
 0x3ca   : > { %v1150_v28 = vpop.permute.xlu2 %1149 }
 0x3cb   : > { %v1152_v36 = vmul.f32 %v1150_v28, %v812_v37  ;;  %v4008_v37 = vld [vmem:[#allocation21_spill] sm:$0xff] }
 0x3cc   : > { %v970_v31 = vsel %vm965_vm13, %v4008_v37, 0.0 }
 0x3cd   : > { %v1153_v5 = vadd.f32 %v1152_v36, %v1147_v10  ;;  %v977_v36 = vsel %vm972_vm1, %v4009_v15, 0.0  ;;  %v4019_v15 = vmov 13  }
 0x3cf   : > { %v1159_v57 = vadd.f32 %v1158_v63, %v1153_v5  ;;  %v1212_v5 = vmul.f32 %v3356_v46, %v3042_v27  ;;  %v4010_v27 = vld [vmem:[#allocation10_spill] sm:$0xff] }
 0x3d0   : > { %v1378_v33 = vpop.permute.xlu1 %1377  ;;  %vm4011_vm11 = vcmp.lt.s32.totalorder %v4010_v27, 8 }
 0x3d1   : > { %v1165_v54 = vadd.f32 %v1164_v55, %v1159_v57  ;;  %v1380_v28 = vmul.f32 %v1378_v33, %v970_v31  ;;  %v1213_v17 = vadd.f32 %v1212_v5, %v1207_v14  ;;  %vm3448_vm0 = vmand %vm3317_vm12, %vm4011_vm11  ;;  %v4022_v5 = vmov 20  }
 0x3d3   : > { %v1366_v59 = vpop.permute.xlu2 %1365  ;;  %v1171_v30 = vadd.f32 %v1170_v32, %v1165_v54  ;;  %v1219_v39 = vadd.f32 %v1218_v47, %v1213_v17  ;;  %v4024_v17 = vmov 15   ;;  %v4025_v47 = vmov 23  }
 0x3d4   : > { %v1368_v56 = vmul.f32 %v1366_v59, %v956_v8  ;;  %v4015_v8 = vld [vmem:[#allocation22_spill] sm:$0xff] }
 0x3d5   : > { %v1032_v59 = vmul.f32 %v4015_v8, %v3373_v18 }
 0x3d6   : > { %v1369_v35 = vadd.f32 %v1368_v56, %v1363_v60  ;;  %v4016_v60 = vld [vmem:[#allocation23_spill] sm:$0xff] }
 0x3d7   : > { %v1033_v56 = vadd.f32 %v1032_v59, %v4016_v60 }
 0x3d9   : > { %v1384_v34 = vpop.permute.xlu1 %1383 }
 0x3da   : > { %v1386_v13 = vmul.f32 %v1384_v34, %v977_v36 }
 0x3dc   : > { %v1372_v4 = vpop.permute.xlu2 %1371 }
 0x3dd   : > { %v1374_v12 = vmul.f32 %v1372_v4, %v963_v50  ;;  %v4017_v50 = vmov 11  }
 0x3df   : > { %v1375_v10 = vadd.f32 %v1374_v12, %v1369_v35  ;;  %v1388_v35 = vld [vmem:[%s2594_s20] sm:$0xff]  ;;  %v4018_v12 = vmov 12  }
 0x3e1   : > { %v1381_v9 = vadd.f32 %v1380_v28, %v1375_v10 }
 0x3e2   : > { %v1234_v55 = vpop.permute.xlu1 %1233 }
 0x3e3   : > { %v1387_v63 = vadd.f32 %v1386_v13, %v1381_v9  ;;  %v1236_v38 = vmul.f32 %v1234_v55, %v3387_v2  ;;  %v4020_v9 = vmov 16   ;;  %v4028_v55 = vmov 22  }
 0x3e5   : > { %1417 = vmatpush.msra.mxu0 %v1387_v63  ;;  %2066 = vmatpush.msra.mxu2 %v1387_v63  ;;  %v1222_v51 = vpop.permute.xlu2 %1221 }
 0x3e6   : > { %2067 = vmatpush.msra.mxu3 %v1387_v63  ;;  %v1224_v25 = vmul.f32 %v1222_v51, %v3343_v62  ;;  %v4014_v62 = vld [vmem:[#allocation17_spill] sm:$0xff]  ;;  %v4021_v63 = vmov 17   ;;  %v4023_v51 = vmov 18  }
 0x3e8   : > { %v1225_v21 = vadd.f32 %v1224_v25, %v1219_v39  ;;  %v4026_v25 = vmov 19   ;;  %v4027_v39 = vmov 24  }
 0x3ee   : > { %v1228_v57 = vpop.permute.xlu2 %1227 }
 0x3ef   : > { %v1230_v29 = vmul.f32 %v1228_v57, %v3349_v22  ;;  %v844_v22 = vsel %vm3448_vm0, %v4014_v62, 0.0  ;;  %v4029_v57 = vmov 0  }
 0x3f1   : > { %v1231_v32 = vadd.f32 %v1230_v29, %v1225_v21  ;;  %v4031_v21 = vmov 26   ;;  %v4032_v29 = vmov 1  }
 0x3f3   : > { %v1237_v54 = vadd.f32 %v1236_v38, %v1231_v32 }
 0x3f5   : > { %1418 = vmatpush.msra.mxu0 %v1237_v54  ;;  %2068 = vmatpush.msra.mxu2 %v1237_v54 }
 0x3f6   : > { %2069 = vmatpush.msra.mxu3 %v1237_v54 }
 0x3f7   : > { %v1174_v14 = vpop.permute.xlu2 %1173 }
 0x3f8   : > { %v1176_v3 = vmul.f32 %v1174_v14, %v844_v22 }
 0x3fa   : > { %v1177_v41 = vadd.f32 %v1176_v3, %v1171_v30  ;;  %v3464_v30 = vld [vmem:[%s2599_s23] sm:$0xff]  ;;  %s4034_s23 = smov 127  }
 0x3fc   : > { %v1183_v33 = vadd.f32 %v1182_v7, %v1177_v41 }
 0x3fe   : > { %1419 = vmatpush.msra.mxu0 %v1183_v33  ;;  %2070 = vmatpush.msra.mxu2 %v1183_v33 }
 0x3ff   : > { %2071 = vmatpush.msra.mxu3 %v1183_v33 }
 0x400   : > { %1420 = vmatpush.msra.mxu0 %v1033_v56  ;;  %2072 = vmatpush.msra.mxu2 %v1033_v56 }
 0x401   : > { %2073 = vmatpush.msra.mxu3 %v1033_v56  ;;  %2053 = vmatmul.msk.f32.vlgmr.msra.gmra.mxu0 %vm3910_vm7, %v1388_v35 }
 0x402   : > { %2054 = vmatmul.msk.f32.vlgmr.msra.gmra.mxu2 %vm3910_vm7, %v1389_v43 }
 0x47e   : > { %v1422_v2 = vpop.f32.mrf.mxu0 }
 0x47f   : > { %1434 = vadd.xlane.f32.xlu1 %v1422_v2 }
 0x485   : > { %v1425_v18 = vpop.f32.mrf.mxu2 }
 0x486   : > { %1436 = vadd.xlane.f32.xlu2 %v1425_v18 }
 0x498   : > { %1610 = vperm.xlu1 %2280, %v3464_v30  }
 0x4a0   : > { %2281 = vset.pattern.permute.xlu1 %v4017_v50 }
 0x4a1   : > { %1619 = vperm.xlu1 %2281, %v3464_v30  }
 0x4a9   : > { %2282 = vset.pattern.permute.xlu1 %v4018_v12 }
 0x4aa   : > { %1628 = vperm.xlu1 %2282, %v3464_v30  }
 0x4b2   : > { %2283 = vset.pattern.permute.xlu1 %v4019_v15 }
 0x4b3   : > { %1637 = vperm.xlu1 %2283, %v3464_v30  }
 0x4bb   : > { %2286 = vset.pattern.permute.xlu1 %v4020_v9 }
 0x4bc   : > { %1664 = vperm.xlu1 %2286, %v3464_v30  }
 0x4c4   : > { %2287 = vset.pattern.permute.xlu1 %v4021_v63 }
 0x4c5   : > { %1673 = vperm.xlu1 %2287, %v3464_v30  }
 0x4cd   : > { %2290 = vset.pattern.permute.xlu1 %v4022_v5 }
 0x4ce   : > { %1700 = vperm.xlu1 %2290, %v3464_v30  }
 0x4d6   : > { %2293 = vset.pattern.permute.xlu1 %v4025_v47  ;;  %v4047_v47 = vmov 33  }
 0x4d7   : > { %1725 = vperm.xlu1 %2293, %v3464_v30  }
 0x4df   : > { %2294 = vset.pattern.permute.xlu1 %v4027_v39 }
 0x4e0   : > { %1734 = vperm.xlu1 %2294, %v3464_v30  }
 0x4e8   : > { %2297 = vset.pattern.permute.xlu1 %v4029_v57 }
 0x4f2   : > { %v1435_v4 = vpop.xlane.xlu1 %1434 }
 0x4f3   : > { %v1442_v37 = vmul.f32 0.0078125, %v1435_v4 }
 0x4f5   : > { %v1446_v31 = vsub.f32 %v1422_v2, %v1442_v37 }
 0x4f7   : > { %v1450_v34 = vmul.f32 %v1446_v31, %v1446_v31 }
 0x4f9   : > { %v1437_v28 = vpop.xlane.xlu2 %1436  ;;  %1454 = vadd.xlane.f32.xlu2 %v1450_v34  ;;  %v4036_v34 = vmov 28  }
 0x4fa   : > { %v1443_v10 = vmul.f32 0.0078125, %v1437_v28 }
 0x4fc   : > { %v3472_v36 = vsub.f32 %v1425_v18, %v1443_v10  ;;  %v4040_v10 = vmov 31  }
 0x4fe   : > { %v1451_v13 = vmul.f32 %v3472_v36, %v3472_v36 }
 0x500   : > { %1456 = vadd.xlane.f32.xlu0 %v1451_v13  ;;  %v4042_v13 = vmov 2  }
 0x50a   : > { %v3533_v37 = vpop.permute.xlu1 %1610 }
 0x511   : > { %1646 = vperm.xlu2 %2284, %v3464_v30  }
 0x514   : > { %1601 = vperm.xlu0 %2279, %v3464_v30  }
 0x519   : > { %2288 = vset.pattern.permute.xlu2 %v4023_v51  ;;  %v4046_v51 = vmov 29  }
 0x51a   : > { %1682 = vperm.xlu2 %2288, %v3464_v30  }
 0x51c   : > { %2285 = vset.pattern.permute.xlu0 %v4024_v17 }
 0x51d   : > { %1655 = vperm.xlu0 %2285, %v3464_v30  }
 0x522   : > { %2291 = vset.pattern.permute.xlu2 %v2481_v48  ;;  %v4030_v48 = vmov 27  }
 0x523   : > { %1707 = vperm.xlu2 %2291, %v3464_v30  }
 0x525   : > { %2289 = vset.pattern.permute.xlu0 %v4026_v25 }
 0x526   : > { %1691 = vperm.xlu0 %2289, %v3464_v30  }
 0x52b   : > { %2295 = vset.pattern.permute.xlu2 %v2487_v1 }
 0x52c   : > { %1743 = vperm.xlu2 %2295, %v3464_v30  }
 0x52e   : > { %2292 = vset.pattern.permute.xlu0 %v4028_v55 }
 0x52f   : > { %1716 = vperm.xlu0 %2292, %v3464_v30  }
 0x534   : > { %2299 = vset.pattern.permute.xlu2 %v4030_v48  ;;  %v4049_v48 = vmov 30  }
 0x537   : > { %2296 = vset.pattern.permute.xlu0 %v4031_v21 }
 0x538   : > { %1752 = vperm.xlu0 %2296, %v3464_v30  }
 0x540   : > { %2298 = vset.pattern.permute.xlu0 %v4032_v29 }
 0x56c   : > { %v1455_v38 = vpop.xlane.xlu2 %1454 }
 0x56d   : > { %v1462_v32 = vmul.f32 0.0078125, %v1455_v38 }
 0x56f   : > { %v1466_v54 = vadd.f32 1e-05, %v1462_v32  ;;  %v4051_v32 = vmov 5  }
 0x571   : > { %2319 = vrsqrt.f32 %v1466_v54  ;;  %vm1476_vm13 = vweird.f32 %v1466_v54 }
 0x573   : > { %v1457_v1 = vpop.xlane.xlu0 %1456 }
 0x574   : > { %v1463_v27 = vmul.f32 0.0078125, %v1457_v1  ;;  %v3556_v15 = vpop.permute.xlu2 %1646  ;;  %v4052_v1 = vmov 3  }
 0x576   : > { %v1467_v61 = vadd.f32 1e-05, %v1463_v27 }
 0x577   : > { %v2320_v62 = vpop.eup %2319 }
 0x578   : > { %v1471_v22 = vmul.f32 %v2320_v62, %v1466_v54  ;;  %2321 = vrsqrt.f32 %v1467_v61  ;;  %vm1477_vm14 = vweird.f32 %v2320_v62  ;;  %vm1486_vm11 = vweird.f32 %v1467_v61 }
 0x579   : > { %vm1478_vm4 = vmor %vm1476_vm13, %vm1477_vm14  ;;  %vm4076_vm13 = vnez %v3926_v0 }
 0x57a   : > { %v1472_v14 = vmul.f32 %v2320_v62, %v1471_v22  ;;  %v1390_v22 = vld [vmem:[%s2594_s20 + $0x10] sm:$0xff] }
 0x57c   : > { %v1473_v3 = vmul.f32 0.5, %v1472_v14  ;;  %v3567_v9 = vpop.permute.xlu2 %1682 }
 0x57e   : > { %v2322_v7 = vpop.eup %2321  ;;  %v1474_v41 = vsub.f32 1.5, %v1473_v3 }
 0x57f   : > { %v1481_v8 = vmul.f32 %v2322_v7, %v1467_v61  ;;  %vm1487_vm1 = vweird.f32 %v2322_v7 }
 0x580   : > { %v1475_v59 = vmul.f32 %v2320_v62, %v1474_v41  ;;  %vm1488_vm7 = vmor %vm1486_vm11, %vm1487_vm1  ;;  %v4065_v41 = vmov 6   ;;  %vm4080_vm11 = vnez %v3981_v45 }
 0x581   : > { %v1482_v33 = vmul.f32 %v2322_v7, %v1481_v8 }
 0x582   : > { %v1479_v60 = vsel %vm1478_vm4, %v2320_v62, %v1475_v59  ;;  %v4056_v59 = vmov 4   ;;  %vm4077_vm4 = vnez %v3977_v52 }
 0x583   : > { %v1510_v56 = vmul.f32 %v1479_v60, %v1446_v31  ;;  %v1483_v35 = vmul.f32 0.5, %v1482_v33  ;;  %v3540_v31 = vpop.permute.xlu1 %1619 }
 0x584   : > { %v3575_v5 = vpop.permute.xlu2 %1707 }
 0x585   : > { %v3506_v43 = vmax.f32 %v1510_v56, 0.0  ;;  %v1484_v2 = vsub.f32 1.5, %v1483_v35 }
 0x586   : > { %v1602_v25 = vpop.permute.xlu0 %1601 }
 0x587   : > { %v1485_v18 = vmul.f32 %v2322_v7, %v1484_v2  ;;  %1527 = vrot.lane.b32.xlu1 %v3506_v43, %s2395_s26  ;;  %1517 = vrot.lane.b32.xlu2 %v3506_v43, %s2392_s22 }
 0x589   : > { %v1489_v50 = vsel %vm1488_vm7, %v2322_v7, %v1485_v18  ;;  %vm4054_vm7 = vcmask 261120  }
 0x58a   : > { %v1511_v4 = vmul.f32 %v1489_v50, %v3472_v36  ;;  %2055 = vmatmul.msk.f32.gmra.mxu2 %vm4054_vm7, %v1390_v22 }
 0x58b   : > { %v3548_v28 = vpop.permute.xlu1 %1628 }
 0x58c   : > { %v3513_v12 = vmax.f32 %v1511_v4, 0.0  ;;  %v3588_v39 = vpop.permute.xlu2 %1743 }
 0x58e   : > { %1642 = vrot.lane.b32.xlu0 %v3513_v12, %s2404_s18  ;;  %s4045_s18 = smov 122  }
 0x58f   : > { %1597 = vrot.lane.b32.xlu1 %v3513_v12, %s2400_s12  ;;  %1606 = vrot.lane.b32.xlu2 %v3513_v12, %s2402_s15  ;;  %s4039_s12 = smov 7   ;;  %s4044_s15 = smov 114   ;;  %v1656_v57 = vpop.permute.xlu0 %1655 }
 0x593   : > { %v3558_v36 = vpop.permute.xlu1 %1637 }
 0x596   : > { %1678 = vrot.lane.b32.xlu0 %v3513_v12, %s2406_s14  ;;  %s4038_s14 = smov 113  }
 0x597   : > { %1651 = vrot.lane.b32.xlu1 %v3513_v12, %s2392_s22  ;;  %1615 = vrot.lane.b32.xlu2 %v3513_v12, %s2401_s13  ;;  %s4035_s22 = smov 14   ;;  %s4043_s13 = smov 126  }
 0x598   : > { %v1692_v38 = vpop.permute.xlu0 %1691 }
 0x59b   : > { %v3571_v63 = vpop.permute.xlu1 %1664 }
 0x59e   : > { %1739 = vrot.lane.b32.xlu0 %v3513_v12, %s2397_s29 }
 0x59f   : > { %1687 = vrot.lane.b32.xlu1 %v3513_v12, %s2408_s24  ;;  %1624 = vrot.lane.b32.xlu2 %v3513_v12, %s4033_s17  ;;  %s4037_s24 = smov 120  }
 0x5a1   : > { %v3611_v61 = vpop.permute.xlu0 %1716 }
 0x5a3   : > { %v3584_v17 = vpop.permute.xlu1 %1673 }
 0x5a6   : > { %1531 = vperm.xlu0 %2298, %v3464_v30  }
 0x5a7   : > { %1712 = vrot.lane.b32.xlu1 %v3513_v12, %s4034_s23  ;;  %1633 = vrot.lane.b32.xlu2 %v3513_v12, %s4035_s22  ;;  %s1912_s22 = sadd.s32 5, %s3263_s16 }
 0x5aa   : > { %v3622_v7 = vpop.permute.xlu0 %1752 }
 0x5ab   : > { %v3593_v55 = vpop.permute.xlu1 %1700 }
 0x5ae   : > { %2301 = vset.pattern.permute.xlu0 %v4036_v34 }
 0x5af   : > { %1770 = vperm.xlu0 %2301, %v3464_v30   ;;  %1748 = vrot.lane.b32.xlu1 %v3513_v12, %s4037_s24 }
 0x5b0   : > { %1660 = vrot.lane.b32.xlu2 %v3513_v12, %s2395_s26  ;;  %s4041_s26 = smov 1  }
 0x5b3   : > { %v3600_v29 = vpop.permute.xlu1 %1725 }
 0x5b7   : > { %1784 = vrot.lane.b32.xlu0 %v3513_v12, %s4038_s14  ;;  %1522 = vperm.xlu1 %2297, %v3464_v30   ;;  %s3759_s14 = sld [smem:[#allocation6 + %s1912_s22]] }
 0x5b8   : > { %1669 = vrot.lane.b32.xlu2 %v3513_v12, %s4039_s12  ;;  %2307 = vset.pattern.permute.xlu0 %v4040_v10 }
 0x5bb   : > { %v3607_v27 = vpop.permute.xlu1 %1734 }
 0x5bf   : > { %1561 = vrot.lane.b32.xlu0 %v3506_v43, %s4034_s23  ;;  %1536 = vrot.lane.b32.xlu1 %v3506_v43, %s4039_s12 }
 0x5c0   : > { %1696 = vrot.lane.b32.xlu2 %v3513_v12, %s4041_s26  ;;  %2300 = vset.pattern.permute.xlu1 %v4042_v13 }
 0x5c7   : > { %1797 = vperm.xlu0 %2307, %v3464_v30   ;;  %1540 = vperm.xlu1 %2300, %v3464_v30  }
 0x5c8   : > { %1721 = vrot.lane.b32.xlu2 %v3513_v12, %s4043_s13  ;;  %s3768_s13 = sld [smem:[#allocation5 + %s2573_s0]] }
 0x5cf   : > { %1579 = vrot.lane.b32.xlu0 %v3506_v43, %s4037_s24  ;;  %1775 = vrot.lane.b32.xlu1 %v3513_v12, %s4044_s15  ;;  %s1917_s24 = sadd.s32 6, %s3263_s16 }
 0x5d0   : > { %1730 = vrot.lane.b32.xlu2 %v3513_v12, %s4045_s18  ;;  %2303 = vset.pattern.permute.xlu1 %v4046_v51  ;;  %s3761_s12 = sld [smem:[#allocation6 + %s1917_s24]] }
 0x5d1   : > { %2311 = vset.pattern.permute.xlu0 %v4047_v47 }
 0x5d7   : > { %1779 = vperm.xlu1 %2303, %v3464_v30   ;;  %1815 = vperm.xlu0 %2311, %v3464_v30  }
 0x5d8   : > { %1757 = vrot.lane.b32.xlu2 %v3513_v12, %s4048_s30 }
 0x5df   : > { %2305 = vset.pattern.permute.xlu1 %v4049_v48 }
 0x5e0   : > { %1761 = vperm.xlu2 %2299, %v3464_v30   ;;  %1788 = vperm.xlu1 %2305, %v3464_v30  }
 0x5e1   : > { %v3598_v21 = vpop.permute.xlu2 %1517 }
 0x5e8   : > { %1766 = vrot.lane.b32.xlu2 %v3513_v12, %s4050_s1  ;;  %2306 = vset.pattern.permute.xlu1 %v4051_v32 }
 0x5e9   : > { %1565 = vperm.xlu1 %2306, %v3464_v30   ;;  %v1607_v54 = vpop.permute.xlu2 %1606  ;;  %2302 = vset.pattern.permute.xlu2 %v4052_v1 }
 0x5ea   : > { %v1608_v8 = vsel %vm3090_vm3, %v1607_v54, 0.0  ;;  %vm4068_vm3 = vnez %v3970_v19  ;;  %v1705_v19 = vsel %vm2716_vm15, %v3513_v12, 0.0 }
 0x5eb   : > { %v1613_v18 = vmul.f32 %v3533_v37, %v1608_v8 }
 0x5f0   : > { %1545 = vrot.lane.b32.xlu2 %v3506_v43, %s4041_s26  ;;  %s1922_s26 = sadd.s32 7, %s3263_s16 }
 0x5f1   : > { %1802 = vrot.lane.b32.xlu1 %v3513_v12, %s4053_s28  ;;  %v1616_v62 = vpop.permute.xlu2 %1615  ;;  %s1923_s15 = sld [smem:[#allocation6 + %s1922_s26]] }
 0x5f2   : > { %2309 = vset.pattern.permute.xlu1 %v2500_v44  ;;  %v4057_v44 = vmov 7   ;;  %v1617_v56 = vsel %vm3070_vm9, %v1616_v62, 0.0 }
 0x5f3   : > { %v1622_v10 = vmul.f32 %v3540_v31, %v1617_v56  ;;  %v4062_v31 = vld [vmem:[#allocation11_spill] sm:$0xff] }
 0x5f4   : > { %vm4063_vm9 = vnez %v4062_v31 }
 0x5f8   : > { %1549 = vperm.xlu2 %2302, %v3464_v30  }
 0x5f9   : > { %1806 = vperm.xlu1 %2309, %v3464_v30   ;;  %v1625_v14 = vpop.permute.xlu2 %1624  ;;  %v3620_v3 = vpop.permute.xlu1 %1527 }
 0x5fa   : > { %v1626_v34 = vsel %vm3112_vm8, %v1625_v14, 0.0  ;;  %v4064_v14 = vmov 8  }
 0x5fb   : > { %v1631_v58 = vmul.f32 %v3548_v28, %v1626_v34 }
 0x600   : > { %2304 = vset.pattern.permute.xlu2 %v4056_v59  ;;  %v1643_v13 = vpop.permute.xlu0 %1642 }
 0x601   : > { %1556 = vperm.xlu2 %2304, %v3464_v30   ;;  %2310 = vset.pattern.permute.xlu1 %v4057_v44  ;;  %v1634_v33 = vpop.permute.xlu2 %1633  ;;  %v1598_v60 = vpop.permute.xlu1 %1597  ;;  %v1644_v54 = vsel %vm3196_vm6, %v1643_v13, 0.0 }
 0x602   : > { %v1599_v2 = vsel %vm3079_vm2, %v1598_v60, 0.0  ;;  %1583 = vperm.xlu1 %2310, %v3464_v30   ;;  %v1635_v48 = vsel %vm3126_vm10, %v1634_v33, 0.0  ;;  %v1649_v28 = vmul.f32 %v3556_v15, %v1644_v54  ;;  %vm4066_vm10 = vnez %v3913_v49 }
 0x603   : > { %v1604_v50 = vmul.f32 %v1602_v25, %v1599_v2  ;;  %v1640_v1 = vmul.f32 %v3558_v36, %v1635_v48  ;;  %vm4067_vm2 = vnez %v3972_v20  ;;  %v4071_v20 = vld [vmem:[#allocation14_spill] sm:$0xff] }
 0x604   : > { %vm4072_vm6 = vnez %v4071_v20 }
 0x605   : > { %v1614_v51 = vadd.f32 %v1613_v18, %v1604_v50  ;;  %v4069_v18 = vld [vmem:[#allocation12_spill] sm:$0xff] }
 0x606   : > { %vm4070_vm8 = vnez %v4069_v18 }
 0x607   : > { %v1623_v32 = vadd.f32 %v1622_v10, %v1614_v51 }
 0x608   : > { %v1679_v60 = vpop.permute.xlu0 %1678 }
 0x609   : > { %v1632_v37 = vadd.f32 %v1631_v58, %v1623_v32  ;;  %1793 = vrot.lane.b32.xlu2 %v3513_v12, %s4061_s19  ;;  %v1652_v25 = vpop.permute.xlu1 %1651  ;;  %v4073_v32 = vld [vmem:[#allocation13_spill] sm:$0xff] }
 0x60a   : > { %v1661_v62 = vpop.permute.xlu2 %1660  ;;  %v1653_v22 = vsel %vm4063_vm9, %v1652_v25, 0.0  ;;  %2312 = vset.pattern.permute.xlu1 %v4064_v14  ;;  %2308 = vset.pattern.permute.xlu2 %v4065_v41  ;;  %vm4074_vm14 = vnez %v4073_v32 }
 0x60b   : > { %v1641_v8 = vadd.f32 %v1640_v1, %v1632_v37  ;;  %v1658_v40 = vmul.f32 %v1656_v57, %v1653_v22  ;;  %1592 = vperm.xlu1 %2312, %v3464_v30   ;;  %v1662_v36 = vsel %vm4066_vm10, %v1661_v62, 0.0  ;;  %v1680_v57 = vsel %vm4068_vm3, %v1679_v60, 0.0 }
 0x60c   : > { %v1667_v44 = vmul.f32 %v3571_v63, %v1662_v36  ;;  %v1685_v34 = vmul.f32 %v3567_v9, %v1680_v57 }
 0x60d   : > { %v1650_v59 = vadd.f32 %v1649_v28, %v1641_v8  ;;  %v1519_v8 = vsel %vm4063_vm9, %v3598_v21, 0.0  ;;  %vm4081_vm9 = vnez %v3934_v11 }
 0x60f   : > { %v1659_v33 = vadd.f32 %v1658_v40, %v1650_v59 }
 0x610   : > { %v1740_v54 = vpop.permute.xlu0 %1739 }
 0x611   : > { %1570 = vrot.lane.b32.xlu2 %v3506_v43, %s2397_s29  ;;  %v1668_v56 = vadd.f32 %v1667_v44, %v1659_v33  ;;  %v1688_v35 = vpop.permute.xlu1 %1687  ;;  %s4075_s29 = smov 110  }
 0x612   : > { %v1670_v2 = vpop.permute.xlu2 %1669  ;;  %v1689_v15 = vsel %vm4067_vm2, %v1688_v35, 0.0  ;;  %vm4083_vm2 = vnez %v3987_v16  ;;  %v1554_v16 = vsel %vm2716_vm15, %v3506_v43, 0.0  ;;  %vm4084_vm15 = vnez %v3991_v24 }
 0x613   : > { %v1671_v50 = vsel %vm4070_vm8, %v1670_v2, 0.0  ;;  %v1694_v4 = vmul.f32 %v1692_v38, %v1689_v15 }
 0x614   : > { %v1676_v63 = vmul.f32 %v3584_v17, %v1671_v50 }
 0x616   : > { %v1677_v10 = vadd.f32 %v1676_v63, %v1668_v56 }
 0x618   : > { %v1686_v13 = vadd.f32 %v1685_v34, %v1677_v10 }
 0x619   : > { %1574 = vperm.xlu2 %2308, %v3464_v30   ;;  %v1713_v51 = vpop.permute.xlu1 %1712  ;;  %v1710_v30 = vmul.f32 %v3575_v5, %v1705_v19  ;;  %v1532_v5 = vpop.permute.xlu0 %1531  ;;  %v1391_v19 = vld [vmem:[%s2594_s20 + $0x18] sm:$0xff]  ;;  %s1902_s20 = sadd.s32 3, %s3263_s16 }
 0x61a   : > { %v1695_v47 = vadd.f32 %v1694_v4, %v1686_v13  ;;  %v1697_v48 = vpop.permute.xlu2 %1696  ;;  %v1714_v58 = vsel %vm4072_vm6, %v1713_v51, 0.0  ;;  %2056 = vmatmul.msk.f32.vlgmr.msra.gmra.mxu3 %vm4054_vm7, %v1391_v19  ;;  %s3753_s17 = sld [smem:[#allocation6 + %s1902_s20]] }
 0x61b   : > { %v1698_v38 = vsel %vm4074_vm14, %v1697_v48, 0.0  ;;  %v1719_v17 = vmul.f32 %v3611_v61, %v1714_v58 }
 0x61c   : > { %v1703_v9 = vmul.f32 %v3593_v55, %v1698_v38 }
 0x61e   : > { %v1704_v1 = vadd.f32 %v1703_v9, %v1695_v47 }
 0x620   : > { %v1711_v37 = vadd.f32 %v1710_v30, %v1704_v1 }
 0x621   : > { %1811 = vrot.lane.b32.xlu2 %v3513_v12, %s4075_s29  ;;  %v1749_v25 = vpop.permute.xlu1 %1748  ;;  %v1529_v12 = vsel %vm4066_vm10, %v3620_v3, 0.0  ;;  %v1771_v63 = vpop.permute.xlu0 %1770  ;;  %vm4082_vm10 = vnez %v3994_v6 }
 0x622   : > { %v1720_v62 = vadd.f32 %v1719_v17, %v1711_v37  ;;  %v1722_v22 = vpop.permute.xlu2 %1721  ;;  %v1750_v14 = vsel %vm4076_vm13, %v1749_v25, 0.0  ;;  %v1534_v52 = vmul.f32 %v1532_v5, %v1529_v12 }
 0x623   : > { %v1723_v41 = vsel %vm4077_vm4, %v1722_v22, 0.0  ;;  %v1755_v61 = vmul.f32 %v3622_v7, %v1750_v14  ;;  %v4078_v7 = vld [vmem:[#allocation15_spill] sm:$0xff] }
 0x624   : > { %v1728_v55 = vmul.f32 %v3600_v29, %v1723_v41  ;;  %vm4079_vm1 = vnez %v4078_v7 }
 0x625   : > { %v1741_v29 = vsel %vm4079_vm1, %v1740_v54, 0.0 }
 0x626   : > { %v1729_v28 = vadd.f32 %v1728_v55, %v1720_v62  ;;  %v1746_v33 = vmul.f32 %v3588_v39, %v1741_v29 }
 0x629   : > { %1588 = vrot.lane.b32.xlu2 %v3506_v43, %s4048_s30  ;;  %v1523_v40 = vpop.permute.xlu1 %1522  ;;  %v1785_v13 = vpop.permute.xlu0 %1784 }
 0x62a   : > { %v1731_v36 = vpop.permute.xlu2 %1730  ;;  %v1525_v59 = vmul.f32 %v1523_v40, %v1519_v8  ;;  %v1786_v55 = vsel %vm3401_vm5, %v1785_v13, 0.0  ;;  %v1428_v43 = vpop.f32.mrf.mxu2  ;;  %v1821_v13 = vld [vmem:[%s2606_s27 + $0x8] sm:$0xff] }
 0x62b   : > { %v1732_v44 = vsel %vm4080_vm11, %v1731_v36, 0.0  ;;  %1438 = vadd.xlane.f32.xlu0 %v1428_v43 }
 0x62c   : > { %v1737_v31 = vmul.f32 %v3607_v27, %v1732_v44  ;;  %v1535_v21 = vadd.f32 %v1534_v52, %v1525_v59 }
 0x62e   : > { %v1738_v49 = vadd.f32 %v1737_v31, %v1729_v28 }
 0x630   : > { %v1747_v3 = vadd.f32 %v1746_v33, %v1738_v49 }
 0x631   : > { %v1537_v60 = vpop.permute.xlu1 %1536  ;;  %v1562_v47 = vpop.permute.xlu0 %1561 }
 0x632   : > { %v1758_v56 = vpop.permute.xlu2 %1757  ;;  %v1756_v35 = vadd.f32 %v1755_v61, %v1747_v3  ;;  %v1538_v37 = vsel %vm4070_vm8, %v1537_v60, 0.0  ;;  %v1563_v26 = vsel %vm4072_vm6, %v1562_v47, 0.0 }
 0x633   : > { %v1759_v17 = vsel %vm4081_vm9, %v1758_v56, 0.0 }
 0x639   : > { %v1541_v2 = vpop.permute.xlu1 %1540  ;;  %v1798_v58 = vpop.permute.xlu0 %1797 }
 0x63a   : > { %v1762_v15 = vpop.permute.xlu2 %1761  ;;  %v1543_v14 = vmul.f32 %v1541_v2, %v1538_v37 }
 0x63b   : > { %v1764_v54 = vmul.f32 %v1762_v15, %v1759_v17 }
 0x63c   : > { %v1544_v12 = vadd.f32 %v1543_v14, %v1535_v21 }
 0x63d   : > { %v1765_v22 = vadd.f32 %v1764_v54, %v1756_v35 }
 0x641   : > { %v1776_v57 = vpop.permute.xlu1 %1775  ;;  %v1580_v25 = vpop.permute.xlu0 %1579 }
 0x642   : > { %v1767_v50 = vpop.permute.xlu2 %1766  ;;  %v1777_v62 = vsel %vm4083_vm2, %v1776_v57, 0.0  ;;  %v1581_v15 = vsel %vm4076_vm13, %v1580_v25, 0.0 }
 0x643   : > { %v1768_v9 = vsel %vm4082_vm10, %v1767_v50, 0.0 }
 0x644   : > { %v1773_v1 = vmul.f32 %v1771_v63, %v1768_v9 }
 0x646   : > { %v1774_v5 = vadd.f32 %v1773_v1, %v1765_v22 }
 0x649   : > { %v1780_v4 = vpop.permute.xlu1 %1779  ;;  %v1816_v31 = vpop.permute.xlu0 %1815 }
 0x64a   : > { %v1546_v34 = vpop.permute.xlu2 %1545  ;;  %v1782_v41 = vmul.f32 %v1780_v4, %v1777_v62 }
 0x64b   : > { %v1547_v6 = vsel %vm4074_vm14, %v1546_v34, 0.0 }
 0x64c   : > { %v1783_v40 = vadd.f32 %v1782_v41, %v1774_v5 }
 0x652   : > { %v1550_v45 = vpop.permute.xlu2 %1549  ;;  %v1789_v10 = vpop.permute.xlu1 %1788 }
 0x653   : > { %v1552_v18 = vmul.f32 %v1550_v45, %v1547_v6  ;;  %v1791_v8 = vmul.f32 %v1789_v10, %v1786_v55  ;;  %v1820_v10 = vld [vmem:[%s2606_s27] sm:$0xff]  ;;  %s1907_s27 = sadd.s32 4, %s3263_s16 }
 0x654   : > { %s3755_s23 = sld [smem:[#allocation6 + %s1907_s27]] }
 0x655   : > { %v1553_v59 = vadd.f32 %v1552_v18, %v1544_v12  ;;  %v1792_v32 = vadd.f32 %v1791_v8, %v1783_v40 }
 0x65b   : > { %v1557_v27 = vpop.permute.xlu2 %1556  ;;  %v1566_v51 = vpop.permute.xlu1 %1565 }
 0x65c   : > { %v1559_v52 = vmul.f32 %v1557_v27, %v1554_v16  ;;  %v1568_v49 = vmul.f32 %v1566_v51, %v1563_v26 }
 0x65e   : > { %v1560_v33 = vadd.f32 %v1559_v52, %v1553_v59 }
 0x660   : > { %v1569_v20 = vadd.f32 %v1568_v49, %v1560_v33 }
 0x663   : > { %v1794_v39 = vpop.permute.xlu2 %1793  ;;  %v1803_v48 = vpop.permute.xlu1 %1802 }
 0x664   : > { %v1795_v28 = vsel %vm3317_vm12, %v1794_v39, 0.0  ;;  %v1804_v42 = vsel %vm3448_vm0, %v1803_v48, 0.0  ;;  %vm1822_vm12 = vcmask 130048  }
 0x665   : > { %v1800_v36 = vmul.f32 %v1798_v58, %v1795_v28 }
 0x667   : > { %v1801_v3 = vadd.f32 %v1800_v36, %v1792_v32 }
 0x66b   : > { %v1571_v38 = vpop.permute.xlu2 %1570  ;;  %v1807_v30 = vpop.permute.xlu1 %1806 }
 0x66c   : > { %v1809_v29 = vmul.f32 %v1807_v30, %v1804_v42  ;;  %v1572_v21 = vsel %vm4079_vm1, %v1571_v38, 0.0 }
 0x66e   : > { %v1810_v35 = vadd.f32 %v1809_v29, %v1801_v3 }
 0x673   : > { %v1575_v61 = vpop.permute.xlu2 %1574 }
 0x674   : > { %v1584_v44 = vpop.permute.xlu1 %1583  ;;  %v1577_v60 = vmul.f32 %v1575_v61, %v1572_v21 }
 0x675   : > { %v1586_v50 = vmul.f32 %v1584_v44, %v1581_v15 }
 0x676   : > { %v1578_v57 = vadd.f32 %v1577_v60, %v1569_v20  ;;  %v1904_v20 = vstv %s3753_s17 }
 0x678   : > { %v1587_v63 = vadd.f32 %v1586_v50, %v1578_v57  ;;  %v1909_v50 = vstv %s3755_s23 }
 0x67b   : > { %v1812_v53 = vpop.permute.xlu2 %1811 }
 0x67c   : > { %v1813_v46 = vsel %vm4084_vm15, %v1812_v53, 0.0 }
 0x67d   : > { %v1818_v56 = vmul.f32 %v1816_v31, %v1813_v46  ;;  %v1593_v4 = vpop.permute.xlu1 %1592 }
 0x67f   : > { %v1819_v2 = vadd.f32 %v1818_v56, %v1810_v35 }
 0x681   : > { %1843 = vmatpush.msra.mxu1 %v1819_v2 }
 0x683   : > { %v1589_v7 = vpop.permute.xlu2 %1588 }
 0x684   : > { %v1590_v24 = vsel %vm4081_vm9, %v1589_v7, 0.0 }
 0x685   : > { %v1595_v34 = vmul.f32 %v1593_v4, %v1590_v24  ;;  %v2332_v24 = vld [vmem:[%s2623_s21] sm:$0xff]  ;;  %s2060_s21 = sshll.u32 %s3768_s13, 3 }
 0x686   : > { %s1928_s16 = scalar_lea.vmem [#allocation2], %s2060_s21 }
 0x687   : > { %v1596_v45 = vadd.f32 %v1595_v34, %v1587_v63  ;;  %v1905_v63 = vmul.f32 %v2332_v24, %v1904_v20 }
 0x689   : > { %1844 = vmatpush.msra.mxu1 %v1596_v45 }
 0x68a   : > { %2057 = vmatmul.msk.f32.vlgmr.msra.gmra.mxu1 %vm1822_vm12, %v1820_v10 }
 0x692   : > { %2058 = vmatmul.msk.f32.gmra.mxu1 %vm1822_vm12, %v1821_v13 }
 0x69d   : > { %v1431_v51 = vpop.f32.mrf.mxu3 }
 0x69e   : > { %v1439_v0 = vpop.xlane.xlu0 %1438 }
 0x69f   : > { %v1444_v47 = vmul.f32 0.0078125, %v1439_v0  ;;  %v1914_v0 = vstv %s3759_s14 }
 0x6a1   : > { %v3731_v48 = vsub.f32 %v1428_v43, %v1444_v47 }
 0x6a3   : > { %v1452_v11 = vmul.f32 %v3731_v48, %v3731_v48 }
 0x707   : > { %v1846_v27 = vpop.f32.mrf.mxu1 }
 0x708   : > { %1852 = vadd.xlane.f32.xlu2 %v1846_v27 }
 0x70f   : > { %v1849_v39 = vpop.f32.mrf.mxu1 }
 0x710   : > { %1440 = vadd.xlane.f32.xlu2 %v1431_v51  ;;  %1854 = vadd.xlane.f32.xlu1 %v1849_v39 }
 0x718   : > { %1458 = vadd.xlane.f32.xlu2 %v1452_v11 }
 0x77b   : > { %v1853_v58 = vpop.xlane.xlu2 %1852 }
 0x77c   : > { %v1856_v19 = vmul.f32 0.0078125, %v1853_v58 }
 0x77e   : > { %v3735_v38 = vsub.f32 %v1846_v27, %v1856_v19  ;;  %v1919_v19 = vstv %s3761_s12 }
 0x780   : > { %v1860_v17 = vmul.f32 %v3735_v38, %v3735_v38 }
 0x782   : > { %1862 = vadd.xlane.f32.xlu1 %v1860_v17 }
 0x783   : > { %v1441_v9 = vpop.xlane.xlu2 %1440  ;;  %v1855_v54 = vpop.xlane.xlu1 %1854 }
 0x784   : > { %v1445_v30 = vmul.f32 0.0078125, %v1441_v9  ;;  %v1857_v1 = vmul.f32 0.0078125, %v1855_v54  ;;  %v1924_v54 = vstv %s1923_s15 }
 0x786   : > { %v3739_v37 = vsub.f32 %v1431_v51, %v1445_v30  ;;  %v3741_v25 = vsub.f32 %v1849_v39, %v1857_v1  ;;  %v1906_v39 = vadd.f32 %v1905_v63, %v3302_v23 }
 0x788   : > { %v1453_v62 = vmul.f32 %v3739_v37, %v3739_v37  ;;  %v1861_v22 = vmul.f32 %v3741_v25, %v3741_v25 }
 0x78a   : > { %1460 = vadd.xlane.f32.xlu1 %v1453_v62  ;;  %1864 = vadd.xlane.f32.xlu0 %v1861_v22 }
 0x78b   : > { %v1459_v14 = vpop.xlane.xlu2 %1458 }
 0x78c   : > { %v1464_v41 = vmul.f32 0.0078125, %v1459_v14  ;;  %v1929_v14 = vld [vmem:[%s1928_s16] sm:$0xff] }
 0x78e   : > { %v1468_v61 = vadd.f32 1e-05, %v1464_v41 }
 0x790   : > { %2323 = vrsqrt.f32 %v1468_v61  ;;  %vm1496_vm6 = vweird.f32 %v1468_v61 }
 0x796   : > { %v3747_v5 = vpop.eup %2323 }
 0x797   : > { %v1491_v18 = vmul.f32 %v3747_v5, %v1468_v61  ;;  %vm1497_vm8 = vweird.f32 %v3747_v5 }
 0x798   : > { %vm3772_vm13 = vmor %vm1496_vm6, %vm1497_vm8 }
 0x799   : > { %v1492_v59 = vmul.f32 %v3747_v5, %v1491_v18 }
 0x79b   : > { %v1493_v26 = vmul.f32 0.5, %v1492_v59 }
 0x79d   : > { %v1494_v3 = vsub.f32 1.5, %v1493_v26 }
 0x79f   : > { %v1495_v35 = vmul.f32 %v3747_v5, %v1494_v3 }
 0x7a1   : > { %v1499_v45 = vsel %vm3772_vm13, %v3747_v5, %v1495_v35 }
 0x7a2   : > { %v1512_v47 = vmul.f32 %v1499_v45, %v3731_v48 }
 0x7a4   : > { %v1920_v30 = vmul.f32 %v1919_v19, %v1512_v47 }
 0x7f5   : > { %v1863_v55 = vpop.xlane.xlu1 %1862 }
 0x7f6   : > { %v1866_v6 = vmul.f32 0.0078125, %v1863_v55 }
 0x7f8   : > { %v1868_v28 = vadd.f32 1e-05, %v1866_v6 }
 0x7fa   : > { %2325 = vrsqrt.f32 %v1868_v28  ;;  %vm1876_vm0 = vweird.f32 %v1868_v28 }
 0x7fd   : > { %v1865_v8 = vpop.xlane.xlu0 %1864  ;;  %v1461_v16 = vpop.xlane.xlu1 %1460 }
 0x7fe   : > { %v1867_v12 = vmul.f32 0.0078125, %v1865_v8  ;;  %v1465_v40 = vmul.f32 0.0078125, %v1461_v16 }
 0x800   : > { %v2326_v52 = vpop.eup %2325  ;;  %v1869_v36 = vadd.f32 1e-05, %v1867_v12  ;;  %v1469_v42 = vadd.f32 1e-05, %v1465_v40 }
 0x801   : > { %v1871_v32 = vmul.f32 %v2326_v52, %v1868_v28  ;;  %vm1877_vm5 = vweird.f32 %v2326_v52 }
 0x802   : > { %2327 = vrsqrt.f32 %v1869_v36  ;;  %vm1878_vm3 = vmor %vm1876_vm0, %vm1877_vm5  ;;  %vm1886_vm1 = vweird.f32 %v1869_v36  ;;  %vm1506_vm7 = vweird.f32 %v1469_v42 }
 0x803   : > { %v1872_v29 = vmul.f32 %v2326_v52, %v1871_v32  ;;  %2329 = vrsqrt.f32 %v1469_v42 }
 0x805   : > { %v1873_v44 = vmul.f32 0.5, %v1872_v29 }
 0x807   : > { %v1874_v31 = vsub.f32 1.5, %v1873_v44 }
 0x808   : > { %v2328_v33 = vpop.eup %2327 }
 0x809   : > { %v2330_v49 = vpop.eup %2329  ;;  %v1875_v53 = vmul.f32 %v2326_v52, %v1874_v31  ;;  %v1881_v43 = vmul.f32 %v2328_v33, %v1869_v36  ;;  %vm1887_vm14 = vweird.f32 %v2328_v33 }
 0x80a   : > { %v1501_v21 = vmul.f32 %v2330_v49, %v1469_v42  ;;  %vm1507_vm4 = vweird.f32 %v2330_v49  ;;  %vm1888_vm11 = vmor %vm1886_vm1, %vm1887_vm14 }
 0x80b   : > { %v1879_v46 = vsel %vm1878_vm3, %v2326_v52, %v1875_v53  ;;  %v1882_v60 = vmul.f32 %v2328_v33, %v1881_v43  ;;  %vm1508_vm9 = vmor %vm1506_vm7, %vm1507_vm4 }
 0x80c   : > { %v1502_v56 = vmul.f32 %v2330_v49, %v1501_v21  ;;  %v1890_v15 = vmul.f32 %v1879_v46, %v3735_v38 }
 0x80d   : > { %v1883_v2 = vmul.f32 0.5, %v1882_v60 }
 0x80e   : > { %v1503_v57 = vmul.f32 0.5, %v1502_v56  ;;  %v1910_v13 = vmul.f32 %v1909_v50, %v1890_v15 }
 0x80f   : > { %v1884_v4 = vsub.f32 1.5, %v1883_v2 }
 0x810   : > { %v1504_v34 = vsub.f32 1.5, %v1503_v57  ;;  %v1911_v38 = vadd.f32 %v1910_v13, %v1906_v39 }
 0x811   : > { %v1885_v10 = vmul.f32 %v2328_v33, %v1884_v4 }
 0x812   : > { %v1505_v27 = vmul.f32 %v2330_v49, %v1504_v34 }
 0x813   : > { %v1889_v51 = vsel %vm1888_vm11, %v2328_v33, %v1885_v10 }
 0x814   : > { %v1891_v11 = vmul.f32 %v1889_v51, %v3741_v25  ;;  %v1509_v58 = vsel %vm1508_vm9, %v2330_v49, %v1505_v27 }
 0x815   : > { %v1513_v9 = vmul.f32 %v1509_v58, %v3739_v37 }
 0x816   : > { %v1915_v17 = vmul.f32 %v1914_v0, %v1891_v11 }
 0x817   : > { %v1925_v22 = vmul.f32 %v1924_v54, %v1513_v9 }
 0x818   : > { %v1916_v1 = vadd.f32 %v1915_v17, %v1911_v38 }
 0x81a   : > { %v1921_v62 = vadd.f32 %v1920_v30, %v1916_v1 }
 0x81c   : > { %v1926_v41 = vadd.f32 %v1925_v22, %v1921_v62  ;;  %1935 = sbr.rel (%p2061_p8) target bundleno = 2092 (0x82c), region = 68 }
 0x81e   : > { %v1930_v48 = vadd.f32 %v1929_v14, %v1926_v41 }
 0x820   : > { %1931 = vst [vmem:[%s1928_s16] sm:$0xff] %v1930_v48 }
 0x827   : > { %v1937_v23 = vld [vmem:[#allocation2 + $0x10] sm:$0xff]  ;;  %v1940_v25 = vld [vmem:[#allocation2 + $0x18] sm:$0xff]  ;;  %v1943_v61 = vld [vmem:[#allocation2 + $0x20] sm:$0xff] }
 0x828   : > { %1938 = vst [vmem:[%s3813_s11] sm:$0xff] %v1937_v23  ;;  %v1946_v37 = vld [vmem:[#allocation2 + $0x28] sm:$0xff] }
 0x829   : > { %1941 = vst [vmem:[%s3813_s11 + $0x8] sm:$0xff] %v1940_v25 }
 0x82a   : > { %1944 = vst [vmem:[%s3813_s11 + $0x10] sm:$0xff] %v1943_v61 }
 0x82b   : > { %1947 = vst [vmem:[%s3813_s11 + $0x18] sm:$0xff] %v1946_v37 }
 0x82c PF: > { %s35_s25 = sadd.s32 1, %s2384_s25  }
 0x82d   : > { %p32_p9 = scmp.ge.s32.totalorder %s35_s25, 16  }
 0x82f   :  { %34 = sbr.rel (!%p32_p9) target bundleno = 8 (0x8), region = 115 }
 0x834   :  { %1959 = vsyncpa [#allocation7], 1 }
 0x835   :  { %1961 = vsyncpa [#allocation7 + $0x1], 1 }

</bundles_post_ra>
